<compile_context>
chip_gen: v7x
topology: tpu7x:2x2x1
jax: 0.10.0
libtpu: 0.0.40
codegen_flags: <defaults>
</compile_context>

<pallas_src>
import functools

import jax
import jax.numpy as jnp
import numpy as np
from jax.experimental import pallas as pl
from jax.experimental.pallas import tpu as pltpu

FC2_ROWS = 17   # fc2 = Linear(17*2, 2) in the PyTorch module


# ----------------------------- fused Pallas kernel -----------------------------

def _make_fused_kernel(num_layers, hidden, input_size, num_classes, batch, with_fc2):
    H, L, nc, B = hidden, num_layers, num_classes, batch

    def kernel(*refs):
        it = iter(refs)
        x_ref = next(it)
        gw_ref = next(it)
        lw_refs = [next(it) for _ in range(L)]
        hw_ref = next(it)
        slab_ref = next(it)
        idx_ref, o2_ref = next(it), next(it)

        # generator stand-in: Linear(g_in -> input_size)
        gen_b = slab_ref[L:L + 1, 4 * H:4 * H + input_size]
        acts = jnp.dot(x_ref[...].astype(jnp.bfloat16), gw_ref[...],
                       preferred_element_type=jnp.float32) + gen_b

        # Bidirectional multi-layer LSTM, seq_len == 1, h0 == c0 == 0.  Weight columns packed
        # [i_fwd|i_bwd | g_fwd|g_bwd | o_fwd|o_bwd] (f-gate and W_hh are dead), so both
        # directions run in one vectorized pass and `acts` is already in [fwd|bwd] order.
        for l in range(L):
            gates = jnp.dot(acts.astype(jnp.bfloat16), lw_refs[l][...],
                            preferred_element_type=jnp.float32) + slab_ref[l:l + 1, :]
            i_g = jax.nn.sigmoid(gates[:, 0:2 * H])
            g_g = jnp.tanh(gates[:, 2 * H:4 * H])
            o_g = jax.nn.sigmoid(gates[:, 4 * H:6 * H])
            acts = o_g * jnp.tanh(i_g * g_g)                           # (B, 2H)
        out = acts

        # Attention(2H, 1): step_dim == 1 -> normalization is a / (a + 1e-10).
        # Logits as VPU/XLU lane reductions (no 1-lane-wide MXU pass).
        misc = slab_ref[L + 1:L + 2, 0:128]                            # packed tiny biases
        al_w = slab_ref[L:L + 1, 0:2 * H]
        at_w = slab_ref[L:L + 1, 2 * H:4 * H]
        e1 = jnp.sum(out * al_w, axis=-1, keepdims=True) + misc[:, nc + 2:nc + 3]
        a1 = jnp.exp(jnp.tanh(e1))
        a1 = a1 / (a1 + 1e-10)
        e2 = jnp.sum(out * at_w, axis=-1, keepdims=True) + misc[:, nc + 3:nc + 4]
        a2 = jnp.exp(jnp.tanh(e2))
        a2 = a2 / (a2 + 1e-10)

        # relu(a*out) == a*relu(out) for a > 0, so both heads share one MXU pass over
        # relu(out) with the fc | fc1 weights concatenated along the output dim.
        r = jnp.maximum(out, 0.0)
        heads = jnp.dot(r.astype(jnp.bfloat16), hw_ref[...],
                        preferred_element_type=jnp.float32)            # (B, nc + 2)
        fc_out = a1 * heads[:, 0:nc] + misc[:, 0:nc]                   # fc output, VMEM only
        out_fc1 = a2 * heads[:, nc:nc + 2] + misc[:, nc:nc + 2]        # fc1 output

        # In-kernel argmax over the flattened (B, nc) fc output (first-occurrence tie-break).
        m = jnp.max(jnp.max(fc_out, axis=1, keepdims=True), axis=0, keepdims=True)
        rows = jax.lax.broadcasted_iota(jnp.int32, (B, nc), 0)
        cols = jax.lax.broadcasted_iota(jnp.int32, (B, nc), 1)
        flat = rows * nc + cols
        sel = jnp.where(fc_out >= m, flat, 2 ** 30)
        idx_ref[...] = jnp.min(jnp.min(sel, axis=1, keepdims=True), axis=0, keepdims=True)

        if with_fc2:
            # fc2(out_fc1.view(B*2)): elementwise multiply + reduce against the (17, 2, 2)
            # reshaped W^T (avoids a (B,2) -> (1,2B) in-kernel reshape).
            w2 = slab_ref[L + 2:L + 2 + FC2_ROWS, 0:4]
            s0 = jnp.sum(jnp.sum(out_fc1 * w2[:, 0:2], axis=0, keepdims=True),
                         axis=1, keepdims=True)
            s1 = jnp.sum(jnp.sum(out_fc1 * w2[:, 2:4], axis=0, keepdims=True),
                         axis=1, keepdims=True)
            o2_ref[...] = jnp.concatenate([s0, s1], axis=1) + misc[:, nc + 4:nc + 6]
        else:
            o2_ref[...] = out_fc1

    return kernel


# ----------------------------- parameter setup -----------------------------

def init_params(key, g_in, input_size, hidden, num_layers, num_classes):
    def uniform(k, shape, bound):
        return jax.random.uniform(k, shape, jnp.float32, -bound, bound)

    keys = iter(jax.random.split(key, 128))
    H = hidden
    params = {}

    # generator stand-in: Linear(g_in -> input_size)
    kg = 1.0 / float(g_in) ** 0.5
    params["gen_w_t"] = uniform(next(keys), (g_in, input_size), kg).astype(jnp.bfloat16)
    params["gen_b"] = uniform(next(keys), (1, input_size), kg)

    # Bidirectional LSTM: per layer W_ih^T columns packed [i_f|i_b|g_f|g_b|o_f|o_b] -> (in, 6H)
    # bf16 (f-gate and W_hh are dead: c0 = 0, seq_len = 1); biases (b_ih + b_hh) packed the
    # same way -> (1, 6H) f32.
    kh = 1.0 / float(H) ** 0.5
    lstm_w, lstm_b = [], []
    for l in range(num_layers):
        in_sz = input_size if l == 0 else 2 * H
        wi, wg, wo, bi, bg, bo = [], [], [], [], [], []
        for _d in range(2):                                 # fwd, bwd; PyTorch order i,f,g,o
            wih = uniform(next(keys), (4 * H, in_sz), kh)
            bsum = (uniform(next(keys), (4 * H,), kh)
                    + uniform(next(keys), (4 * H,), kh))    # b_ih + b_hh
            wi.append(wih[0 * H:1 * H].T); bi.append(bsum[0 * H:1 * H])
            wg.append(wih[2 * H:3 * H].T); bg.append(bsum[2 * H:3 * H])
            wo.append(wih[3 * H:4 * H].T); bo.append(bsum[3 * H:4 * H])
        lstm_w.append(jnp.concatenate(wi + wg + wo, axis=1).astype(jnp.bfloat16))
        lstm_b.append(jnp.concatenate(bi + bg + bo).reshape(1, 6 * H))
    params["lstm_w"], params["lstm_b"] = lstm_w, lstm_b

    feat = 2 * H                                            # == 512, matching Attention(512, 1)
    kaiming = 6.0 ** 0.5                                    # kaiming_uniform_ for (feat, 1)
    params["al_w_row"] = uniform(next(keys), (1, feat), kaiming)
    params["al_b"] = jnp.zeros((1, 1), jnp.float32)
    params["attn_w_row"] = uniform(next(keys), (1, feat), kaiming)
    params["attn_b"] = jnp.zeros((1, 1), jnp.float32)

    # fc (feat -> nc) and fc1 (feat -> 2) packed into one (feat, nc+2) bf16 matrix.
    kf = 1.0 / float(feat) ** 0.5
    fc_w_t = uniform(next(keys), (feat, num_classes), kf)
    fc1_w_t = uniform(next(keys), (feat, 2), kf)
    params["head_w_t"] = jnp.concatenate([fc_w_t, fc1_w_t], axis=1).astype(jnp.bfloat16)
    params["fc_b"] = uniform(next(keys), (1, num_classes), kf)
    params["fc1_b"] = uniform(next(keys), (1, 2), kf)

    # fc2 = Linear(17*2, 2): W^T reshaped to (17, 2, 2) and split along the output dim.
    k2 = 1.0 / float(FC2_ROWS * 2) ** 0.5
    w2r = uniform(next(keys), (FC2_ROWS * 2, 2), k2).reshape(FC2_ROWS, 2, 2)
    params["fc2_wa"], params["fc2_wb"] = w2r[:, :, 0], w2r[:, :, 1]
    params["fc2_b"] = uniform(next(keys), (1, 2), k2)

    # Pack every small side input into ONE f32 slab (fewer, bigger DMAs):
    #   rows 0..L-1            : lstm_b[l]                                      (1, 6H)
    #   row  L                 : [ al_w_row (0:2H) | attn_w_row (2H:4H) | gen_b (4H:4H+in) ]
    #   row  L+1, cols 0..127  : [ fc_b | fc1_b | al_b | attn_b | fc2_b ]
    #   rows L+2..L+2+16       : [ fc2_wa | fc2_wb ] in cols 0..3
    L, nc = num_layers, num_classes
    width = 6 * H
    assert 4 * H + input_size <= width and nc + 6 <= 128
    slab = np.zeros((L + 2 + FC2_ROWS, width), np.float32)
    for l in range(L):
        slab[l, :] = np.asarray(params["lstm_b"][l][0])
    slab[L, 0:2 * H] = np.asarray(params["al_w_row"][0])
    slab[L, 2 * H:4 * H] = np.asarray(params["attn_w_row"][0])
    slab[L, 4 * H:4 * H + input_size] = np.asarray(params["gen_b"][0])
    slab[L + 1, 0:nc] = np.asarray(params["fc_b"][0])
    slab[L + 1, nc:nc + 2] = np.asarray(params["fc1_b"][0])
    slab[L + 1, nc + 2] = float(params["al_b"][0, 0])
    slab[L + 1, nc + 3] = float(params["attn_b"][0, 0])
    slab[L + 1, nc + 4:nc + 6] = np.asarray(params["fc2_b"][0])
    slab[L + 2:L + 2 + FC2_ROWS, 0:2] = np.asarray(params["fc2_wa"])
    slab[L + 2:L + 2 + FC2_ROWS, 2:4] = np.asarray(params["fc2_wb"])
    params["slab"] = jnp.asarray(slab)
    return params


# ----------------------------- forward pass -----------------------------

def rnn_model_forward(params, x, *, hidden, num_layers):
    B = x.shape[0]
    num_classes = params["fc_b"].shape[1]
    input_size = params["gen_b"].shape[1]
    with_fc2 = (B != 1)
    if with_fc2 and B != FC2_ROWS:
        raise ValueError("fc2 = Linear(17*2, 2) requires batch == 17 (or batch == 1).")

    inputs = ([x, params["gen_w_t"]] + list(params["lstm_w"])
              + [params["head_w_t"], params["slab"]])

    vmem = pl.BlockSpec(memory_space=pltpu.MemorySpace.VMEM)
    idx2d, out2 = pl.pallas_call(
        _make_fused_kernel(num_layers, hidden, input_size, num_classes, B, with_fc2),
        out_shape=(jax.ShapeDtypeStruct((1, 1), jnp.int32),
                   jax.ShapeDtypeStruct((1, 2) if with_fc2 else (B, 2), jnp.float32)),
        in_specs=[vmem] * len(inputs),
        out_specs=(vmem, vmem),
        compiler_params=pltpu.CompilerParams(vmem_limit_bytes=8 * 1024 * 1024),
    )(*inputs)

    idx = idx2d[0, 0]                     # torch.argmax over the flattened fc output
    out_final = out2.reshape(-1) if with_fc2 else out2
    return idx, out_final


# ----------------------------- pure-jnp reference (for checking) -----------------------------

def reference_forward(params, x, *, hidden, num_layers, num_classes):
    """Mirrors the PyTorch forward (same bf16-rounded weights, f32 math, no Pallas).
    The attention / fc path is written in the original un-fused PyTorch order, so it also
    validates the relu(a*x) = a*relu(x) and a/(a+1e-10) identities used by the kernel."""
    f32 = lambda a: a.astype(jnp.float32)
    B, H, nc = x.shape[0], hidden, num_classes
    acts = x @ f32(params["gen_w_t"]) + params["gen_b"]
    for l in range(num_layers):
        gates = acts @ f32(params["lstm_w"][l]) + params["lstm_b"][l]
        hs = []
        for d in range(2):                                   # per-direction, like nn.LSTM
            i = jax.nn.sigmoid(gates[:, d * H:(d + 1) * H])
            g = jnp.tanh(gates[:, 2 * H + d * H:2 * H + (d + 1) * H])
            o = jax.nn.sigmoid(gates[:, 4 * H + d * H:4 * H + (d + 1) * H])
            c = i * g                                        # + f * c0 == 0 (c0 = 0, seq = 1)
            hs.append(o * jnp.tanh(c))
        acts = jnp.concatenate(hs, axis=-1)
    out = acts

    def attention(xx, w_row, bias):
        eij = jnp.tanh(xx @ w_row.T + bias)                  # (B, 1), step_dim == 1
        a = jnp.exp(eij)
        a = a / (jnp.sum(a, axis=1, keepdims=True) + 1e-10)
        return xx * a                                        # sum over step dim (== 1)

    head_w = f32(params["head_w_t"])
    out1 = jax.nn.relu(attention(out, params["al_w_row"], params["al_b"]))
    out1 = out1 @ head_w[:, :nc] + params["fc_b"]
    o = jax.nn.relu(attention(out, params["attn_w_row"], params["attn_b"]))
    o = o @ head_w[:, nc:nc + 2] + params["fc1_b"]
    if B != 1:
        fc2_w_t = jnp.stack([params["fc2_wa"], params["fc2_wb"]], axis=-1).reshape(B * 2, 2)
        o = (o.reshape(1, B * 2) @ fc2_w_t + params["fc2_b"]).reshape(-1)
    return out1, o


# ----------------------------- demo -----------------------------

if __name__ == "__main__":
    B, G_IN = 17, 32          # batch must be 17 so fc2 = Linear(17*2, 2) type-checks
    INPUT_SIZE = 64           # LSTM input_size
    HIDDEN = 256              # hidden_size; 2*HIDDEN == 512 matches Attention(512, 1)
    NUM_LAYERS = 2
    NUM_CLASSES = 10

    key = jax.random.PRNGKey(0)
    kp, kx = jax.random.split(key)
    params = init_params(kp, G_IN, INPUT_SIZE, HIDDEN, NUM_LAYERS, NUM_CLASSES)
    x = jax.random.normal(kx, (B, G_IN), jnp.float32)

    fwd = jax.jit(functools.partial(rnn_model_forward,
                                    hidden=HIDDEN, num_layers=NUM_LAYERS))
    idx, out = fwd(params, x)
    jax.block_until_ready((idx, out))
    assert out.shape == (2,), out.shape
    assert idx.shape == (), idx.shape

    # Correctness check against the pure-jnp reference (same bf16-rounded weights).
    ref_out1, ref_out = reference_forward(params, x, hidden=HIDDEN,
                                          num_layers=NUM_LAYERS, num_classes=NUM_CLASSES)
    np.testing.assert_allclose(np.asarray(out), np.asarray(ref_out), rtol=2e-2, atol=2e-2)

    # Validate the in-kernel argmax explicitly (exact agreement, or a near-tie within tol).
    ref_flat = np.asarray(ref_out1).ravel()
    ref_idx = int(np.argmax(ref_flat))
    i = int(idx)
    assert 0 <= i < B * NUM_CLASSES, i
    assert i == ref_idx or ref_flat[i] >= ref_flat[ref_idx] - 1e-2, (i, ref_idx)

    print("KERNEL_OK")
</pallas_src>

<mosaic_0001>
module attributes {stable_mosaic.version = 11 : i64} {
  func.func @kernel(%arg0: memref<17x32xf32, #tpu.memory_space<vmem>>, %arg1: memref<32x64xbf16, #tpu.memory_space<vmem>>, %arg2: memref<64x1536xbf16, #tpu.memory_space<vmem>>, %arg3: memref<512x1536xbf16, #tpu.memory_space<vmem>>, %arg4: memref<512x12xbf16, #tpu.memory_space<vmem>>, %arg5: memref<21x1536xf32, #tpu.memory_space<vmem>>, %arg6: memref<1x1xi32, #tpu.memory_space<vmem>>, %arg7: memref<1x2xf32, #tpu.memory_space<vmem>>) attributes {dimension_semantics = [], scalar_prefetch = 0 : i64, scratch_operands = 0 : i64, tpu.core_type = #tpu.core_type<tc>} {
    %c2 = arith.constant 2 : index
    %c1024 = arith.constant 1024 : index
    %0 = vector.load %arg5[%c2, %c1024] : memref<21x1536xf32, #tpu.memory_space<vmem>>, vector<1x64xf32>
    %c0 = arith.constant 0 : index
    %c0_0 = arith.constant 0 : index
    %1 = vector.load %arg0[%c0, %c0_0] : memref<17x32xf32, #tpu.memory_space<vmem>>, vector<17x32xf32>
    %2 = arith.truncf %1 : vector<17x32xf32> to vector<17x32xbf16>
    %c0_1 = arith.constant 0 : index
    %c0_2 = arith.constant 0 : index
    %3 = vector.load %arg1[%c0_1, %c0_2] : memref<32x64xbf16, #tpu.memory_space<vmem>>, vector<32x64xbf16>
    %cst = arith.constant dense<0.000000e+00> : vector<17x64xf32>
    %4 = tpu.matmul %2, %3, %cst {dimension_numbers = #tpu.dot_dimension_numbers<[1], [0], [0], [1], [0, 0, 1, 1], [], []>} : vector<17x32xbf16>, vector<32x64xbf16>, vector<17x64xf32> -> vector<17x64xf32>
    %5 = vector.broadcast %0 : vector<1x64xf32> to vector<17x64xf32>
    %6 = arith.addf %4, %5 : vector<17x64xf32>
    %7 = arith.truncf %6 : vector<17x64xf32> to vector<17x64xbf16>
    %c0_3 = arith.constant 0 : index
    %c0_4 = arith.constant 0 : index
    %8 = vector.load %arg2[%c0_3, %c0_4] : memref<64x1536xbf16, #tpu.memory_space<vmem>>, vector<64x1536xbf16>
    %cst_5 = arith.constant dense<0.000000e+00> : vector<17x1536xf32>
    %9 = tpu.matmul %7, %8, %cst_5 {dimension_numbers = #tpu.dot_dimension_numbers<[1], [0], [0], [1], [0, 0, 1, 1], [], []>} : vector<17x64xbf16>, vector<64x1536xbf16>, vector<17x1536xf32> -> vector<17x1536xf32>
    %c0_6 = arith.constant 0 : index
    %c0_7 = arith.constant 0 : index
    %10 = vector.load %arg5[%c0_6, %c0_7] : memref<21x1536xf32, #tpu.memory_space<vmem>>, vector<1x1536xf32>
    %11 = vector.broadcast %10 : vector<1x1536xf32> to vector<17x1536xf32>
    %12 = arith.addf %9, %11 : vector<17x1536xf32>
    %13 = vector.extract_strided_slice %12 {offsets = [0, 0], sizes = [17, 512], strides = [1, 1]} : vector<17x1536xf32> to vector<17x512xf32>
    %14 = arith.negf %13 : vector<17x512xf32>
    %15 = math.exp %14 : vector<17x512xf32>
    %cst_8 = arith.constant 1.000000e+00 : f32
    %16 = vector.broadcast %cst_8 : f32 to vector<17x512xf32>
    %17 = arith.addf %16, %15 : vector<17x512xf32>
    %18 = arith.divf %16, %17 : vector<17x512xf32>
    %19 = vector.extract_strided_slice %12 {offsets = [0, 512], sizes = [17, 512], strides = [1, 1]} : vector<17x1536xf32> to vector<17x512xf32>
    %20 = math.tanh %19 : vector<17x512xf32>
    %21 = vector.extract_strided_slice %12 {offsets = [0, 1024], sizes = [17, 512], strides = [1, 1]} : vector<17x1536xf32> to vector<17x512xf32>
    %22 = arith.negf %21 : vector<17x512xf32>
    %23 = math.exp %22 : vector<17x512xf32>
    %cst_9 = arith.constant 1.000000e+00 : f32
    %24 = vector.broadcast %cst_9 : f32 to vector<17x512xf32>
    %25 = arith.addf %24, %23 : vector<17x512xf32>
    %26 = arith.divf %24, %25 : vector<17x512xf32>
    %27 = arith.mulf %18, %20 : vector<17x512xf32>
    %28 = math.tanh %27 : vector<17x512xf32>
    %29 = arith.mulf %26, %28 : vector<17x512xf32>
    %30 = arith.truncf %29 : vector<17x512xf32> to vector<17x512xbf16>
    %c0_10 = arith.constant 0 : index
    %c0_11 = arith.constant 0 : index
    %31 = vector.load %arg3[%c0_10, %c0_11] : memref<512x1536xbf16, #tpu.memory_space<vmem>>, vector<512x1536xbf16>
    %cst_12 = arith.constant dense<0.000000e+00> : vector<17x1536xf32>
    %32 = tpu.matmul %30, %31, %cst_12 {dimension_numbers = #tpu.dot_dimension_numbers<[1], [0], [0], [1], [0, 0, 1, 1], [], []>} : vector<17x512xbf16>, vector<512x1536xbf16>, vector<17x1536xf32> -> vector<17x1536xf32>
    %c1 = arith.constant 1 : index
    %c0_13 = arith.constant 0 : index
    %33 = vector.load %arg5[%c1, %c0_13] : memref<21x1536xf32, #tpu.memory_space<vmem>>, vector<1x1536xf32>
    %34 = vector.broadcast %33 : vector<1x1536xf32> to vector<17x1536xf32>
    %35 = arith.addf %32, %34 : vector<17x1536xf32>
    %36 = vector.extract_strided_slice %35 {offsets = [0, 0], sizes = [17, 512], strides = [1, 1]} : vector<17x1536xf32> to vector<17x512xf32>
    %37 = arith.negf %36 : vector<17x512xf32>
    %38 = math.exp %37 : vector<17x512xf32>
    %cst_14 = arith.constant 1.000000e+00 : f32
    %39 = vector.broadcast %cst_14 : f32 to vector<17x512xf32>
    %40 = arith.addf %39, %38 : vector<17x512xf32>
    %41 = arith.divf %39, %40 : vector<17x512xf32>
    %42 = vector.extract_strided_slice %35 {offsets = [0, 512], sizes = [17, 512], strides = [1, 1]} : vector<17x1536xf32> to vector<17x512xf32>
    %43 = math.tanh %42 : vector<17x512xf32>
    %44 = vector.extract_strided_slice %35 {offsets = [0, 1024], sizes = [17, 512], strides = [1, 1]} : vector<17x1536xf32> to vector<17x512xf32>
    %45 = arith.negf %44 : vector<17x512xf32>
    %46 = math.exp %45 : vector<17x512xf32>
    %cst_15 = arith.constant 1.000000e+00 : f32
    %47 = vector.broadcast %cst_15 : f32 to vector<17x512xf32>
    %48 = arith.addf %47, %46 : vector<17x512xf32>
    %49 = arith.divf %47, %48 : vector<17x512xf32>
    %50 = arith.mulf %41, %43 : vector<17x512xf32>
    %51 = math.tanh %50 : vector<17x512xf32>
    %52 = arith.mulf %49, %51 : vector<17x512xf32>
    %c3 = arith.constant 3 : index
    %c0_16 = arith.constant 0 : index
    %53 = vector.load %arg5[%c3, %c0_16] : memref<21x1536xf32, #tpu.memory_space<vmem>>, vector<1x128xf32>
    %c2_17 = arith.constant 2 : index
    %c0_18 = arith.constant 0 : index
    %54 = vector.load %arg5[%c2_17, %c0_18] : memref<21x1536xf32, #tpu.memory_space<vmem>>, vector<1x512xf32>
    %c2_19 = arith.constant 2 : index
    %c512 = arith.constant 512 : index
    %55 = vector.load %arg5[%c2_19, %c512] : memref<21x1536xf32, #tpu.memory_space<vmem>>, vector<1x512xf32>
    %56 = vector.broadcast %54 : vector<1x512xf32> to vector<17x512xf32>
    %57 = arith.mulf %52, %56 : vector<17x512xf32>
    %cst_20 = arith.constant dense<0.000000e+00> : vector<17xf32>
    %58 = vector.multi_reduction <add>, %57, %cst_20 [1] : vector<17x512xf32> to vector<17xf32>
    %59 = vector.shape_cast %58 : vector<17xf32> to vector<17x1xf32>
    %60 = vector.extract_strided_slice %53 {offsets = [0, 12], sizes = [1, 1], strides = [1, 1]} : vector<1x128xf32> to vector<1x1xf32>
    %61 = vector.broadcast %60 : vector<1x1xf32> to vector<17x1xf32>
    %62 = arith.addf %59, %61 : vector<17x1xf32>
    %63 = math.tanh %62 : vector<17x1xf32>
    %64 = math.exp %63 : vector<17x1xf32>
    %cst_21 = arith.constant 1.000000e-10 : f32
    %65 = vector.broadcast %cst_21 : f32 to vector<17x1xf32>
    %66 = arith.addf %64, %65 : vector<17x1xf32>
    %67 = arith.divf %64, %66 : vector<17x1xf32>
    %68 = vector.broadcast %55 : vector<1x512xf32> to vector<17x512xf32>
    %69 = arith.mulf %52, %68 : vector<17x512xf32>
    %cst_22 = arith.constant dense<0.000000e+00> : vector<17xf32>
    %70 = vector.multi_reduction <add>, %69, %cst_22 [1] : vector<17x512xf32> to vector<17xf32>
    %71 = vector.shape_cast %70 : vector<17xf32> to vector<17x1xf32>
    %72 = vector.extract_strided_slice %53 {offsets = [0, 13], sizes = [1, 1], strides = [1, 1]} : vector<1x128xf32> to vector<1x1xf32>
    %73 = vector.broadcast %72 : vector<1x1xf32> to vector<17x1xf32>
    %74 = arith.addf %71, %73 : vector<17x1xf32>
    %75 = math.tanh %74 : vector<17x1xf32>
    %76 = math.exp %75 : vector<17x1xf32>
    %cst_23 = arith.constant 1.000000e-10 : f32
    %77 = vector.broadcast %cst_23 : f32 to vector<17x1xf32>
    %78 = arith.addf %76, %77 : vector<17x1xf32>
    %79 = arith.divf %76, %78 : vector<17x1xf32>
    %cst_24 = arith.constant 0.000000e+00 : f32
    %80 = vector.broadcast %cst_24 : f32 to vector<17x512xf32>
    %81 = arith.maximumf %52, %80 : vector<17x512xf32>
    %82 = arith.truncf %81 : vector<17x512xf32> to vector<17x512xbf16>
    %c0_25 = arith.constant 0 : index
    %c0_26 = arith.constant 0 : index
    %83 = vector.load %arg4[%c0_25, %c0_26] : memref<512x12xbf16, #tpu.memory_space<vmem>>, vector<512x12xbf16>
    %cst_27 = arith.constant dense<0.000000e+00> : vector<17x12xf32>
    %84 = tpu.matmul %82, %83, %cst_27 {dimension_numbers = #tpu.dot_dimension_numbers<[1], [0], [0], [1], [0, 0, 1, 1], [], []>} : vector<17x512xbf16>, vector<512x12xbf16>, vector<17x12xf32> -> vector<17x12xf32>
    %85 = vector.extract_strided_slice %84 {offsets = [0, 0], sizes = [17, 10], strides = [1, 1]} : vector<17x12xf32> to vector<17x10xf32>
    %86 = vector.broadcast %67 : vector<17x1xf32> to vector<17x10xf32>
    %87 = arith.mulf %86, %85 : vector<17x10xf32>
    %88 = vector.extract_strided_slice %53 {offsets = [0, 0], sizes = [1, 10], strides = [1, 1]} : vector<1x128xf32> to vector<1x10xf32>
    %89 = vector.broadcast %88 : vector<1x10xf32> to vector<17x10xf32>
    %90 = arith.addf %87, %89 : vector<17x10xf32>
    %91 = vector.extract_strided_slice %84 {offsets = [0, 10], sizes = [17, 2], strides = [1, 1]} : vector<17x12xf32> to vector<17x2xf32>
    %92 = vector.broadcast %79 : vector<17x1xf32> to vector<17x2xf32>
    %93 = arith.mulf %92, %91 : vector<17x2xf32>
    %94 = vector.extract_strided_slice %53 {offsets = [0, 10], sizes = [1, 2], strides = [1, 1]} : vector<1x128xf32> to vector<1x2xf32>
    %95 = vector.broadcast %94 : vector<1x2xf32> to vector<17x2xf32>
    %96 = arith.addf %93, %95 : vector<17x2xf32>
    %cst_28 = arith.constant dense<0xFF800000> : vector<17xf32>
    %97 = vector.multi_reduction <maximumf>, %90, %cst_28 [1] : vector<17x10xf32> to vector<17xf32>
    %98 = vector.shape_cast %97 : vector<17xf32> to vector<17x1xf32>
    %cst_29 = arith.constant dense<0xFF800000> : vector<1xf32>
    %99 = vector.multi_reduction <maximumf>, %98, %cst_29 [0] : vector<17x1xf32> to vector<1xf32>
    %100 = vector.shape_cast %99 : vector<1xf32> to vector<1x1xf32>
    %101 = tpu.iota {dimensions = array<i32: 0>} : vector<17x10xi32>
    %102 = tpu.iota {dimensions = array<i32: 1>} : vector<17x10xi32>
    %c10_i32 = arith.constant 10 : i32
    %103 = vector.broadcast %c10_i32 : i32 to vector<17x10xi32>
    %104 = arith.muli %101, %103 : vector<17x10xi32>
    %105 = arith.addi %104, %102 : vector<17x10xi32>
    %106 = vector.broadcast %100 : vector<1x1xf32> to vector<17x10xf32>
    %107 = arith.cmpf oge, %90, %106 : vector<17x10xf32>
    %c1073741824_i32 = arith.constant 1073741824 : i32
    %108 = vector.broadcast %c1073741824_i32 : i32 to vector<17x10xi32>
    %109 = arith.select %107, %105, %108 : vector<17x10xi1>, vector<17x10xi32>
    %cst_30 = arith.constant dense<2147483647> : vector<17xi32>
    %110 = vector.multi_reduction <minsi>, %109, %cst_30 [1] : vector<17x10xi32> to vector<17xi32>
    %111 = vector.shape_cast %110 : vector<17xi32> to vector<17x1xi32>
    %cst_31 = arith.constant dense<2147483647> : vector<1xi32>
    %112 = vector.multi_reduction <minsi>, %111, %cst_31 [0] : vector<17x1xi32> to vector<1xi32>
    %113 = vector.shape_cast %112 : vector<1xi32> to vector<1x1xi32>
    %c0_32 = arith.constant 0 : index
    %c0_33 = arith.constant 0 : index
    %114 = vector.load %arg6[%c0_32, %c0_33] : memref<1x1xi32, #tpu.memory_space<vmem>>, vector<1x1xi32>
    tpu.vector_store %arg6[%c0_32, %c0_33], %113 {strides = array<i32>} : memref<1x1xi32, #tpu.memory_space<vmem>>, vector<1x1xi32>,
    %c4 = arith.constant 4 : index
    %c0_34 = arith.constant 0 : index
    %115 = vector.load %arg5[%c4, %c0_34] : memref<21x1536xf32, #tpu.memory_space<vmem>>, vector<17x4xf32>
    %116 = vector.extract_strided_slice %115 {offsets = [0, 0], sizes = [17, 2], strides = [1, 1]} : vector<17x4xf32> to vector<17x2xf32>
    %117 = arith.mulf %96, %116 : vector<17x2xf32>
    %cst_35 = arith.constant dense<0.000000e+00> : vector<2xf32>
    %118 = vector.multi_reduction <add>, %117, %cst_35 [0] : vector<17x2xf32> to vector<2xf32>
    %119 = vector.shape_cast %118 : vector<2xf32> to vector<1x2xf32>
    %cst_36 = arith.constant dense<0.000000e+00> : vector<1xf32>
    %120 = vector.multi_reduction <add>, %119, %cst_36 [1] : vector<1x2xf32> to vector<1xf32>
    %121 = vector.shape_cast %120 : vector<1xf32> to vector<1x1xf32>
    %122 = vector.extract_strided_slice %115 {offsets = [0, 2], sizes = [17, 2], strides = [1, 1]} : vector<17x4xf32> to vector<17x2xf32>
    %123 = arith.mulf %96, %122 : vector<17x2xf32>
    %cst_37 = arith.constant dense<0.000000e+00> : vector<2xf32>
    %124 = vector.multi_reduction <add>, %123, %cst_37 [0] : vector<17x2xf32> to vector<2xf32>
    %125 = vector.shape_cast %124 : vector<2xf32> to vector<1x2xf32>
    %cst_38 = arith.constant dense<0.000000e+00> : vector<1xf32>
    %126 = vector.multi_reduction <add>, %125, %cst_38 [1] : vector<1x2xf32> to vector<1xf32>
    %127 = vector.shape_cast %126 : vector<1xf32> to vector<1x1xf32>
    %128 = tpu.concatenate %121, %127 in 1 : vector<1x1xf32>, vector<1x1xf32> -> vector<1x2xf32>
    %129 = vector.extract_strided_slice %53 {offsets = [0, 14], sizes = [1, 2], strides = [1, 1]} : vector<1x128xf32> to vector<1x2xf32>
    %130 = arith.addf %128, %129 : vector<1x2xf32>
    %c0_39 = arith.constant 0 : index
    %c0_40 = arith.constant 0 : index
    %131 = vector.load %arg7[%c0_39, %c0_40] : memref<1x2xf32, #tpu.memory_space<vmem>>, vector<1x2xf32>
    tpu.vector_store %arg7[%c0_39, %c0_40], %130 {strides = array<i32>} : memref<1x2xf32, #tpu.memory_space<vmem>>, vector<1x2xf32>,
    return
  }
}

</mosaic_0001>

<bundles_post_ra>
// kernel: rnn_model_forward.1
= control target key start
LH: loop header
LB: loop body
LE: loop exit
PB: predicated region body
PF: predicated region fallthrough
CT: control target
= control target key end

     0   :  { %13 = vsyncpa [#allocation3], 0  ;;  %s7586_s0 = inlined_call_operand.hbm [shape: f32[17,32], index: 0, kind: input, shape index: {}]   ;;  %s7587_s1 = inlined_call_operand.hbm [shape: bf16[32,64], index: 1, kind: input, shape index: {}]   ;;  %s7588_s2 = inlined_call_operand.hbm [shape: bf16[64,1536], index: 2, kind: input, shape index: {}]   ;;  %s7589_s3 = inlined_call_operand.hbm [shape: bf16[512,1536], index: 3, kind: input, shape index: {}]   ;;  %s7590_s4 = inlined_call_operand.vmem [shape: bf16[512,12], index: 4, kind: input, shape index: {}]   ;;  %s7591_s5 = inlined_call_operand.hbm [shape: f32[21,1536], index: 5, kind: input, shape index: {}]   ;;  %s7592_s6 = inlined_call_operand.hbm [shape: s32[1,1], index: 6, kind: output, shape index: {0}]   ;;  %s7593_s7 = inlined_call_operand.hbm [shape: f32[1,2], index: 7, kind: output, shape index: {1}]  }
   0x1   :  { %14 = vsyncpa [#allocation6], 0 }
   0x2   :  { %15 = vsyncpa [#allocation9], 0 }
   0x3   :  { %16 = vsyncpa [#allocation4], 0 }
   0x4   :  { %17 = vsyncpa [#allocation13], 0  ;;  %s6874_s24 = smov [#allocation5]   ;;  %s6710_s28 = scalar_lea.hbm %s7587_s1, 256 }
   0x5   :  { %s35_s25 = sshll.u32 %s6874_s24, 4  ;;  %p6711_p0 = scmp.ne.s32.totalorder %s7587_s1, %s6710_s28  ;;  %s36_s25 = int_to_ptr.vmem [resolvable:$true] %s35_s25 }
   0x6   :  { %p6714_p1 = scmp.lt.u32.totalorder %s6710_s28, %s7587_s1 }
   0x8   :  { %p6716_p2 = pnand %p6714_p1, %p6711_p0 }
   0xa   :  { %6719 = shalt.err (!%p6716_p2)
}
   0xb   :  { %s6720_s10 = scalar_lea.vmem %s36_s25, 256  ;;  %p6725_p4 = scmp.lt.s32.totalorder %s36_s25, %s36_s25 }
   0xc   :  { %p6721_p3 = scmp.ne.s32.totalorder %s36_s25, %s6720_s10  ;;  %p6726_p5 = scmp.lt.s32.totalorder %s6720_s10, %s6720_s10 }
   0xe   :  { %p6727_p6 = por %p6726_p5, %p6725_p4 }
  0x10   :  { %p6728_p7 = pnand %p6727_p6, %p6721_p3 }
  0x12   :  { %6731 = shalt.err (!%p6728_p7)
}
  0x13   :  { %s6875_s11 = smov 64   ;;  %s6876_s12 = smov 4  }
  0x14   :  { %41 = dma.hbm_to_vmem [thread:$0]  %s7587_s1, 256, %s36_s25, [#allocation6], %s6875_s11, %s6875_s11, %s6876_s12  }
  0x15   :  { %s6877_s15 = smov [#allocation8]   ;;  %s6878_s17 = smov [#allocation2]  }
  0x16   :  { %s59_s16 = sshll.u32 %s6877_s15, 4  ;;  %s23_s18 = sshll.u32 %s6878_s17, 4  ;;  %s60_s16 = int_to_ptr.vmem [resolvable:$true] %s59_s16  ;;  %s24_s18 = int_to_ptr.vmem [resolvable:$true] %s23_s18 }
  0x17   :  { %s6732_s21 = scalar_lea.hbm %s7589_s3, 49152 }
  0x18   :  { %p6733_p8 = scmp.ne.s32.totalorder %s7589_s3, %s6732_s21  ;;  %p6736_p9 = scmp.lt.u32.totalorder %s6732_s21, %s7589_s3 }
  0x1a   :  { %p6738_p10 = pnand %p6736_p9, %p6733_p8 }
  0x1c   :  { %6741 = shalt.err (!%p6738_p10)
}
  0x1d   :  { %s6742_s1 = scalar_lea.vmem %s60_s16, 49152  ;;  %p6747_p12 = scmp.lt.s32.totalorder %s60_s16, %s60_s16 }
  0x1e   :  { %p6743_p11 = scmp.ne.s32.totalorder %s60_s16, %s6742_s1  ;;  %p6748_p13 = scmp.lt.s32.totalorder %s6742_s1, %s6742_s1 }
  0x20   :  { %p6749_p0 = por %p6748_p13, %p6747_p12 }
  0x22   :  { %p6750_p1 = pnand %p6749_p0, %p6743_p11 }
  0x24   :  { %6753 = shalt.err (!%p6750_p1)
}
  0x25   :  { %s6879_s25 = smov 768   ;;  %s6880_s27 = smov 48  }
  0x26   :  { %65 = dma.hbm_to_vmem [thread:$0]  %s7589_s3, 49152, %s60_s16, [#allocation9], %s6879_s25, %s6879_s25, %s6880_s27  }
  0x27   :  { %s6754_s9 = scalar_lea.hbm %s7586_s0, 384 }
  0x28   :  { %p6755_p2 = scmp.ne.s32.totalorder %s7586_s0, %s6754_s9  ;;  %p6758_p3 = scmp.lt.u32.totalorder %s6754_s9, %s7586_s0 }
  0x2a   :  { %p6760_p4 = pnand %p6758_p3, %p6755_p2 }
  0x2c   :  { %6763 = shalt.err (!%p6760_p4)
}
  0x2d   :  { %s6764_s14 = scalar_lea.vmem %s24_s18, 384  ;;  %p6769_p6 = scmp.lt.s32.totalorder %s24_s18, %s24_s18 }
  0x2e   :  { %p6765_p5 = scmp.ne.s32.totalorder %s24_s18, %s6764_s14  ;;  %p6770_p7 = scmp.lt.s32.totalorder %s6764_s14, %s6764_s14 }
  0x30   :  { %p6771_p8 = por %p6770_p7, %p6769_p6 }
  0x32   :  { %p6772_p9 = pnand %p6771_p8, %p6765_p5 }
  0x34   :  { %6775 = shalt.err (!%p6772_p9)
}
  0x35   :  { %s6881_s3 = smov 128   ;;  %s6882_s15 = smov 8  }
  0x36   :  { %29 = dma.hbm_to_vmem [thread:$0]  %s7586_s0, 384, %s24_s18, [#allocation3], %s6881_s3, %s6881_s3, %s6882_s15  }
  0x37   :  { %s6883_s19 = smov [#allocation7]   ;;  %s6884_s21 = smov [#allocation10]  }
  0x38   :  { %s47_s20 = sshll.u32 %s6883_s19, 4  ;;  %s73_s22 = sshll.u32 %s6884_s21, 4  ;;  %s48_s20 = int_to_ptr.vmem [resolvable:$true] %s47_s20  ;;  %s74_s22 = int_to_ptr.vmem [resolvable:$true] %s73_s22 }
  0x39   :  { %s6776_s26 = scalar_lea.hbm %s7588_s2, 6144 }
  0x3a   :  { %p6777_p10 = scmp.ne.s32.totalorder %s7588_s2, %s6776_s26  ;;  %p6780_p11 = scmp.lt.u32.totalorder %s6776_s26, %s7588_s2 }
  0x3c   :  { %p6782_p12 = pnand %p6780_p11, %p6777_p10 }
  0x3e   :  { %6785 = shalt.err (!%p6782_p12)
}
  0x3f   :  { %s6786_s0 = scalar_lea.vmem %s48_s20, 6144  ;;  %p6791_p0 = scmp.lt.s32.totalorder %s48_s20, %s48_s20 }
  0x40   :  { %p6787_p13 = scmp.ne.s32.totalorder %s48_s20, %s6786_s0  ;;  %p6792_p1 = scmp.lt.s32.totalorder %s6786_s0, %s6786_s0 }
  0x42   :  { %p6793_p2 = por %p6792_p1, %p6791_p0 }
  0x44   :  { %p6794_p3 = pnand %p6793_p2, %p6787_p13 }
  0x46   :  { %6797 = shalt.err (!%p6794_p3)
}
  0x47   :  { %53 = dma.hbm_to_vmem [thread:$0]  %s7588_s2, 6144, %s48_s20, [#allocation6], %s6879_s25, %s6879_s25, %s6880_s27  }
  0x48   :  { %s6798_s11 = scalar_lea.hbm %s7591_s5, 4608 }
  0x49   :  { %p6799_p4 = scmp.ne.s32.totalorder %s7591_s5, %s6798_s11  ;;  %p6802_p5 = scmp.lt.u32.totalorder %s6798_s11, %s7591_s5 }
  0x4b   :  { %p6804_p6 = pnand %p6802_p5, %p6799_p4 }
  0x4d   :  { %6807 = shalt.err (!%p6804_p6)
}
  0x4e   :  { %s6808_s16 = scalar_lea.vmem %s74_s22, 4608  ;;  %p6813_p8 = scmp.lt.s32.totalorder %s74_s22, %s74_s22 }
  0x4f   :  { %p6809_p7 = scmp.ne.s32.totalorder %s74_s22, %s6808_s16  ;;  %p6814_p9 = scmp.lt.s32.totalorder %s6808_s16, %s6808_s16 }
  0x51   :  { %p6815_p10 = por %p6814_p9, %p6813_p8 }
  0x53   :  { %p6816_p11 = pnand %p6815_p10, %p6809_p7 }
  0x55   :  { %6819 = shalt.err (!%p6816_p11)
}
  0x56   :  { %s6885_s2 = smov 1536   ;;  %s6886_s25 = smov 96  }
  0x57   :  { %79 = dma.hbm_to_vmem [thread:$0]  %s7591_s5, 4608, %s74_s22, [#allocation9], %s6885_s2, %s6885_s2, %s6886_s25  }
  0x58   :  { %6864 = dma.done.wait [#allocation3], 384  }
  0x59   :  { %6865 = vsyncadd [#allocation3], 4294966912 }
  0x5a   :  { %6866 = dma.done.wait [#allocation6], 6400  }
  0x5b   :  { %6867 = vsyncadd [#allocation6], 4294960896 }
  0x5c   :  { %6868 = dma.done.wait [#allocation9], 53760  }
  0x5d   :  { %6869 = vsyncadd [#allocation9], 4294913536  ;;  %v5704_v0 = vld [vmem:[#allocation5] sm:$0xff]   ;;  %v5705_v1 = vld [vmem:[#allocation5 + $0x8] sm:$0xff]   ;;  %vm118_vm0 = vcmask 261120   ;;  %v6887_v24 = vmov 0  }
  0x5e   :  { %5587 = vmatprep.subr.bf16.mxu0 %v5704_v0  ;;  %v97_v2 = vld [vmem:[#allocation2] sm:$0xff]  ;;  %v98_v3 = vld [vmem:[#allocation2 + $0x8] sm:$0xff]  ;;  %v99_v4 = vld [vmem:[#allocation2 + $0x10] sm:$0x1]  ;;  %569 = vmatprep.mubr.bf16.mxu1 %v6887_v24  ;;  %vm530_vm1 = vcmask 523264   ;;  %vm4267_vm2 = vcmask 1040384  }
  0x5f   :  { %5588 = vmatpush3.bf16.msra.mxu0 %v5704_v0  ;;  %v100_v5 = vpack.c.bf16 %v98_v3, %v97_v2  ;;  %v5706_v6 = vld [vmem:[#allocation7 + $0x4] ss:$48 sps:$4 sm:$0xff]   ;;  %v5708_v7 = vld [vmem:[#allocation7] ss:$48 sps:$4 sm:$0xff]   ;;  %v5711_v8 = vld [vmem:[#allocation7 + $0xc] ss:$48 sps:$4 sm:$0xff]   ;;  %v101_v9 = vpack.c.bf16 %v99_v4, %v99_v4 }
  0x60   :  { %5589 = vmatprep.subr.bf16.mxu0 %v5705_v1  ;;  %537 = vmatprep.subr.bf16.mxu1 %v5706_v6  ;;  %v5712_v10 = vld [vmem:[#allocation7 + $0x64] ss:$48 sps:$4 sm:$0xff]   ;;  %v5714_v11 = vld [vmem:[#allocation7 + $0x60] ss:$48 sps:$4 sm:$0xff]   ;;  %v5709_v12 = vld [vmem:[#allocation7 + $0x8] ss:$48 sps:$4 sm:$0xff]  }
  0x61   :  { %5591 = vmatprep.mubr.msk.bf16.mxu0 %vm118_vm0, %v100_v5  ;;  %538 = vmatpush1.bf16.msra.mxu1 %v5708_v7  ;;  %v5717_v13 = vld [vmem:[#allocation7 + $0x6c] ss:$48 sps:$4 sm:$0xff]   ;;  %v5715_v14 = vld [vmem:[#allocation7 + $0x68] ss:$48 sps:$4 sm:$0xff]   ;;  %v5718_v15 = vld [vmem:[#allocation7 + $0xc4] ss:$48 sps:$4 sm:$0xff]  }
  0x62   :  { %539 = vmatprep.subr.bf16.mxu1 %v5712_v10  ;;  %v5723_v16 = vld [vmem:[#allocation7 + $0xcc] ss:$48 sps:$4 sm:$0xff]   ;;  %v5720_v17 = vld [vmem:[#allocation7 + $0xc0] ss:$48 sps:$4 sm:$0xff]   ;;  %v5721_v18 = vld [vmem:[#allocation7 + $0xc8] ss:$48 sps:$4 sm:$0xff]  }
  0x63   :  { %5590 = vmatpush3.bf16.msra.mxu0 %v5705_v1  ;;  %v5724_v19 = vld [vmem:[#allocation7 + $0x124] ss:$48 sps:$4 sm:$0xff]   ;;  %v5729_v20 = vld [vmem:[#allocation7 + $0x12c] ss:$48 sps:$4 sm:$0xff]   ;;  %v5726_v21 = vld [vmem:[#allocation7 + $0x120] ss:$48 sps:$4 sm:$0xff]  }
  0x64   :  { %588 = vmatprep.subr.bf16.mxu0 %v5711_v8  ;;  %v5727_v22 = vld [vmem:[#allocation7 + $0x128] ss:$48 sps:$4 sm:$0xff]   ;;  %v5732_v23 = vld [vmem:[#allocation7 + $0x14] ss:$48 sps:$4 sm:$0xff]   ;;  %v5735_v25 = vld [vmem:[#allocation7 + $0x1c] ss:$48 sps:$4 sm:$0xff]  }
  0x65   :  { %540 = vmatpush1.bf16.msra.mxu1 %v5714_v11  ;;  %v96_v27 = vld [vmem:[#allocation10 + $0x42] ss:$0 sm:$0xff]  ;;  %v5733_v34 = vld [vmem:[#allocation7 + $0x18] ss:$48 sps:$4 sm:$0xff]   ;;  %v5738_v36 = vld [vmem:[#allocation7 + $0x74] ss:$48 sps:$4 sm:$0xff]  }
  0x66   :  { %5592 = vmatmul.mubr.msk.bf16.vlgmr.msra.gmra.mrb[0].mxu0 %vm118_vm0, %v101_v9  ;;  %541 = vmatprep.subr.bf16.mxu1 %v5718_v15  ;;  %v5730_v33 = vld [vmem:[#allocation7 + $0x10] ss:$48 sps:$4 sm:$0xff]   ;;  %v5741_v37 = vld [vmem:[#allocation7 + $0x7c] ss:$48 sps:$4 sm:$0xff]   ;;  %v5739_v39 = vld [vmem:[#allocation7 + $0x78] ss:$48 sps:$4 sm:$0xff]  }
  0x67   :  { %589 = vmatpush1.bf16.msra.mxu0 %v5709_v12  ;;  %620 = vmatprep.mubr.bf16.mxu0 %v6887_v24  ;;  %v5736_v38 = vld [vmem:[#allocation7 + $0x70] ss:$48 sps:$4 sm:$0xff]   ;;  %v5744_v41 = vld [vmem:[#allocation7 + $0xd4] ss:$48 sps:$4 sm:$0xff]   ;;  %v5747_v42 = vld [vmem:[#allocation7 + $0xdc] ss:$48 sps:$4 sm:$0xff]  }
  0x68   :  { %590 = vmatprep.subr.bf16.mxu0 %v5717_v13  ;;  %v5742_v43 = vld [vmem:[#allocation7 + $0xd0] ss:$48 sps:$4 sm:$0xff]   ;;  %v5745_v44 = vld [vmem:[#allocation7 + $0xd8] ss:$48 sps:$4 sm:$0xff]   ;;  %v5750_v46 = vld [vmem:[#allocation7 + $0x134] ss:$48 sps:$4 sm:$0xff]  }
  0x69   :  { %542 = vmatpush1.bf16.msra.mxu1 %v5720_v17  ;;  %v5753_v47 = vld [vmem:[#allocation7 + $0x13c] ss:$48 sps:$4 sm:$0xff]   ;;  %v5748_v48 = vld [vmem:[#allocation7 + $0x130] ss:$48 sps:$4 sm:$0xff]   ;;  %v5751_v49 = vld [vmem:[#allocation7 + $0x138] ss:$48 sps:$4 sm:$0xff]  }
  0x6a   :  { %543 = vmatprep.subr.bf16.mxu1 %v5724_v19  ;;  %v5756_v50 = vld [vmem:[#allocation7 + $0x24] ss:$48 sps:$4 sm:$0xff]   ;;  %v5759_v51 = vld [vmem:[#allocation7 + $0x2c] ss:$48 sps:$4 sm:$0xff]   ;;  %v5754_v52 = vld [vmem:[#allocation7 + $0x20] ss:$48 sps:$4 sm:$0xff]  }
  0x6b   :  { %591 = vmatpush1.bf16.msra.mxu0 %v5715_v14  ;;  %v5757_v53 = vld [vmem:[#allocation7 + $0x28] ss:$48 sps:$4 sm:$0xff]   ;;  %v5762_v54 = vld [vmem:[#allocation7 + $0x84] ss:$48 sps:$4 sm:$0xff]   ;;  %v5765_v55 = vld [vmem:[#allocation7 + $0x8c] ss:$48 sps:$4 sm:$0xff]  }
  0x6c   :  { %592 = vmatprep.subr.bf16.mxu0 %v5723_v16  ;;  %v5760_v56 = vld [vmem:[#allocation7 + $0x80] ss:$48 sps:$4 sm:$0xff]   ;;  %v5763_v57 = vld [vmem:[#allocation7 + $0x88] ss:$48 sps:$4 sm:$0xff]   ;;  %v5768_v58 = vld [vmem:[#allocation7 + $0xe4] ss:$48 sps:$4 sm:$0xff]  }
  0x6d   :  { %544 = vmatpush1.bf16.msra.mxu1 %v5726_v21  ;;  %v5771_v59 = vld [vmem:[#allocation7 + $0xec] ss:$48 sps:$4 sm:$0xff]   ;;  %v5766_v60 = vld [vmem:[#allocation7 + $0xe0] ss:$48 sps:$4 sm:$0xff]   ;;  %v5769_v61 = vld [vmem:[#allocation7 + $0xe8] ss:$48 sps:$4 sm:$0xff]  }
  0x6e   :  { %639 = vmatprep.subr.bf16.mxu1 %v5732_v23  ;;  %v5774_v62 = vld [vmem:[#allocation7 + $0x144] ss:$48 sps:$4 sm:$0xff]   ;;  %v5777_v63 = vld [vmem:[#allocation7 + $0x14c] ss:$48 sps:$4 sm:$0xff]   ;;  %v5772_v0 = vld [vmem:[#allocation7 + $0x140] ss:$48 sps:$4 sm:$0xff]  }
  0x6f   :  { %593 = vmatpush1.bf16.msra.mxu0 %v5721_v18  ;;  %v5775_v1 = vld [vmem:[#allocation7 + $0x148] ss:$48 sps:$4 sm:$0xff]   ;;  %v5780_v2 = vld [vmem:[#allocation8 + $0x4] ss:$48 sps:$4 sm:$0xff]   ;;  %v5783_v3 = vld [vmem:[#allocation8 + $0xc] ss:$48 sps:$4 sm:$0xff]  }
  0x70   :  { %594 = vmatprep.subr.bf16.mxu0 %v5729_v20  ;;  %v5778_v4 = vld [vmem:[#allocation8] ss:$48 sps:$4 sm:$0xff]   ;;  %v5781_v5 = vld [vmem:[#allocation8 + $0x8] ss:$48 sps:$4 sm:$0xff]   ;;  %v5786_v6 = vld [vmem:[#allocation8 + $0x64] ss:$48 sps:$4 sm:$0xff]  }
  0x71   :  { %v5789_v7 = vld [vmem:[#allocation8 + $0x6c] ss:$48 sps:$4 sm:$0xff]   ;;  %v5784_v8 = vld [vmem:[#allocation8 + $0x60] ss:$48 sps:$4 sm:$0xff]   ;;  %v5787_v9 = vld [vmem:[#allocation8 + $0x68] ss:$48 sps:$4 sm:$0xff]  }
  0x72   :  { %v5792_v10 = vld [vmem:[#allocation8 + $0xc4] ss:$48 sps:$4 sm:$0xff]   ;;  %v5795_v11 = vld [vmem:[#allocation8 + $0xcc] ss:$48 sps:$4 sm:$0xff]   ;;  %v5790_v12 = vld [vmem:[#allocation8 + $0xc0] ss:$48 sps:$4 sm:$0xff]  }
  0x73   :  { %595 = vmatpush1.bf16.msra.mxu0 %v5727_v22  ;;  %v5793_v13 = vld [vmem:[#allocation8 + $0xc8] ss:$48 sps:$4 sm:$0xff]   ;;  %v5798_v14 = vld [vmem:[#allocation8 + $0x124] ss:$48 sps:$4 sm:$0xff]   ;;  %v5801_v15 = vld [vmem:[#allocation8 + $0x12c] ss:$48 sps:$4 sm:$0xff]  }
  0x74   :  { %690 = vmatprep.subr.bf16.mxu0 %v5735_v25  ;;  %v5796_v16 = vld [vmem:[#allocation8 + $0x120] ss:$48 sps:$4 sm:$0xff]   ;;  %v5799_v17 = vld [vmem:[#allocation8 + $0x128] ss:$48 sps:$4 sm:$0xff]   ;;  %v5804_v18 = vld [vmem:[#allocation8 + $0x184] ss:$48 sps:$4 sm:$0xff]  }
  0x75   :  { %v5807_v19 = vld [vmem:[#allocation8 + $0x18c] ss:$48 sps:$4 sm:$0xff]   ;;  %v5802_v20 = vld [vmem:[#allocation8 + $0x180] ss:$48 sps:$4 sm:$0xff]   ;;  %v5805_v21 = vld [vmem:[#allocation8 + $0x188] ss:$48 sps:$4 sm:$0xff]  }
  0x76   :  { %v5810_v22 = vld [vmem:[#allocation8 + $0x1e4] ss:$48 sps:$4 sm:$0xff]   ;;  %v5813_v23 = vld [vmem:[#allocation8 + $0x1ec] ss:$48 sps:$4 sm:$0xff]   ;;  %v5811_v25 = vld [vmem:[#allocation8 + $0x1e8] ss:$48 sps:$4 sm:$0xff]  }
  0x77   :  { %vm4785_vm3 = vcmask 80896   ;;  %vm4890_vm4 = vcmask 1043456   ;;  %vm4792_vm5 = vcmask 73728   ;;  %vm4908_vm6 = vcmask 97360   ;;  %s6892_s29 = smov 114   ;;  %s6893_s30 = smov [#allocation12]  }
  0x78   :  { %vm4912_vm7 = vcmask 90192   ;;  %vm4925_vm14 = vcmask 15360   ;;  %vm4959_vm0 = vcmask 7168   ;;  %s4984_s0 = sshll.u32 %s6893_s30, 4  ;;  %s4985_s0 = int_to_ptr.vmem [resolvable:$true] %s4984_s0 }
  0x79   :  { %s6820_s18 = scalar_lea.vmem %s4985_s0, 16  ;;  %s6824_s8 = scalar_lea.vmem %s4985_s0, 32 }
  0x7a   :  { %p6821_p12 = scmp.ne.s32.totalorder %s4985_s0, %s6820_s18  ;;  %p6825_p13 = scmp.lt.s32.totalorder %s4985_s0, %s4985_s0 }
  0x7b   :  { %p6826_p0 = scmp.lt.s32.totalorder %s6824_s8, %s6820_s18 }
  0x7d   :  { %p6827_p1 = por %p6826_p0, %p6825_p13 }
  0x7f   :  { %p6828_p2 = pnand %p6827_p1, %p6821_p12 }
 0x139   :  { %v5593_v26 = vpop.f32.mrb[0].mxu0 }
 0x13a   :  { %v159_v28 = vpop.f32.mrb[1].mxu0  ;;  %v168_v40 = vadd.f32 %v5593_v26, %v96_v27  ;;  %v5816_v26 = vld [vmem:[#allocation8 + $0x244] ss:$48 sps:$4 sm:$0xff]  }
 0x13b   :  { %v5594_v29 = vpop.f32.mrb[2].mxu0  ;;  %v160_v31 = vadd.f32 %v159_v28, %v96_v27  ;;  %v5814_v28 = vld [vmem:[#allocation8 + $0x240] ss:$48 sps:$4 sm:$0xff]  }
 0x13c   :  { %v162_v30 = vpop.f32.mrb[3].mxu0  ;;  %v174_v45 = vpack.c.bf16 %v168_v40, %v168_v40  ;;  %v5817_v29 = vld [vmem:[#allocation8 + $0x248] ss:$48 sps:$4 sm:$0xff]   ;;  %v5832_v40 = vld [vmem:[#allocation8 + $0x360] ss:$48 sps:$4 sm:$0xff]  }
 0x13d   :  { %v163_v32 = vadd.f32 %v162_v30, %v96_v27  ;;  %v5819_v27 = vld [vmem:[#allocation8 + $0x24c] ss:$48 sps:$4 sm:$0xff]   ;;  %v5822_v30 = vld [vmem:[#allocation8 + $0x2a4] ss:$48 sps:$4 sm:$0xff]  }
 0x13f   :  { %v7006_v35 = vpack.c.bf16 %v163_v32, %v160_v31  ;;  %v5825_v31 = vld [vmem:[#allocation8 + $0x2ac] ss:$48 sps:$4 sm:$0xff]   ;;  %v5820_v32 = vld [vmem:[#allocation8 + $0x2a0] ss:$48 sps:$4 sm:$0xff]  }
 0x141   :  { %5051 = vmatmul.mubr.msk.bf16.vlgmr.msra.gmra.mrb[0].mxu1 %vm530_vm1, %v7006_v35  ;;  %5053 = vmatmul.mubr.msk.bf16.vlgmr.msra.gmra.mrb[4].mxu0 %vm530_vm1, %v7006_v35 }
 0x142   :  { %640 = vmatpush1.bf16.msra.mxu1 %v5730_v33  ;;  %691 = vmatpush1.bf16.msra.mxu0 %v5733_v34  ;;  %v5823_v33 = vld [vmem:[#allocation8 + $0x2a8] ss:$48 sps:$4 sm:$0xff]   ;;  %v5828_v34 = vld [vmem:[#allocation8 + $0x304] ss:$48 sps:$4 sm:$0xff]  }
 0x143   :  { %641 = vmatprep.subr.bf16.mxu1 %v5738_v36  ;;  %692 = vmatprep.subr.bf16.mxu0 %v5741_v37  ;;  %v5826_v36 = vld [vmem:[#allocation8 + $0x300] ss:$48 sps:$4 sm:$0xff]   ;;  %v5829_v37 = vld [vmem:[#allocation8 + $0x308] ss:$48 sps:$4 sm:$0xff]  }
 0x144   :  { %579 = vmatprep.mubr.bf16.mxu1 %v6887_v24  ;;  %630 = vmatprep.mubr.bf16.mxu0 %v6887_v24 }
 0x146   :  { %642 = vmatpush1.bf16.msra.mxu1 %v5736_v38  ;;  %693 = vmatpush1.bf16.msra.mxu0 %v5739_v39  ;;  %v5834_v38 = vld [vmem:[#allocation8 + $0x364] ss:$48 sps:$4 sm:$0xff]   ;;  %v5837_v39 = vld [vmem:[#allocation8 + $0x36c] ss:$48 sps:$4 sm:$0xff]  }
 0x147   :  { %643 = vmatprep.subr.bf16.mxu1 %v5744_v41  ;;  %694 = vmatprep.subr.bf16.mxu0 %v5747_v42  ;;  %v5835_v41 = vld [vmem:[#allocation8 + $0x368] ss:$48 sps:$4 sm:$0xff]   ;;  %v5840_v42 = vld [vmem:[#allocation8 + $0x3c4] ss:$48 sps:$4 sm:$0xff]  }
 0x149   :  { %5052 = vmatmul.mubr.msk.bf16.gmra.mrb[4].mxu1 %vm530_vm1, %v174_v45  ;;  %5054 = vmatmul.mubr.msk.bf16.gmra.mrb[8].mxu0 %vm530_vm1, %v174_v45 }
 0x14a   :  { %644 = vmatpush1.bf16.msra.mxu1 %v5742_v43  ;;  %695 = vmatpush1.bf16.msra.mxu0 %v5745_v44  ;;  %v5843_v43 = vld [vmem:[#allocation8 + $0x3cc] ss:$48 sps:$4 sm:$0xff]   ;;  %v5838_v44 = vld [vmem:[#allocation8 + $0x3c0] ss:$48 sps:$4 sm:$0xff]  }
 0x14b   :  { %645 = vmatprep.subr.bf16.mxu1 %v5750_v46  ;;  %696 = vmatprep.subr.bf16.mxu0 %v5753_v47  ;;  %v5846_v46 = vld [vmem:[#allocation8 + $0x424] ss:$48 sps:$4 sm:$0xff]   ;;  %v5849_v47 = vld [vmem:[#allocation8 + $0x42c] ss:$48 sps:$4 sm:$0xff]  }
 0x14c   :  { %671 = vmatprep.mubr.bf16.mxu1 %v6887_v24  ;;  %722 = vmatprep.mubr.bf16.mxu0 %v6887_v24 }
 0x14e   :  { %646 = vmatpush1.bf16.msra.mxu1 %v5748_v48  ;;  %697 = vmatpush1.bf16.msra.mxu0 %v5751_v49  ;;  %v5844_v48 = vld [vmem:[#allocation8 + $0x420] ss:$48 sps:$4 sm:$0xff]   ;;  %v5847_v49 = vld [vmem:[#allocation8 + $0x428] ss:$48 sps:$4 sm:$0xff]  }
 0x14f   :  { %741 = vmatprep.subr.bf16.mxu1 %v5756_v50  ;;  %792 = vmatprep.subr.bf16.mxu0 %v5759_v51  ;;  %v5852_v50 = vld [vmem:[#allocation8 + $0x484] ss:$48 sps:$4 sm:$0xff]   ;;  %v5855_v51 = vld [vmem:[#allocation8 + $0x48c] ss:$48 sps:$4 sm:$0xff]  }
 0x151   :  { %5055 = vmatmul.mubr.msk.bf16.vlgmr.msra.gmra.mrb[8].mxu1 %vm530_vm1, %v7006_v35  ;;  %5057 = vmatmul.mubr.msk.bf16.vlgmr.msra.gmra.mrb[12].mxu0 %vm530_vm1, %v7006_v35 }
 0x152   :  { %742 = vmatpush1.bf16.msra.mxu1 %v5754_v52  ;;  %793 = vmatpush1.bf16.msra.mxu0 %v5757_v53  ;;  %v5850_v52 = vld [vmem:[#allocation8 + $0x480] ss:$48 sps:$4 sm:$0xff]   ;;  %v5853_v53 = vld [vmem:[#allocation8 + $0x488] ss:$48 sps:$4 sm:$0xff]  }
 0x153   :  { %743 = vmatprep.subr.bf16.mxu1 %v5762_v54  ;;  %794 = vmatprep.subr.bf16.mxu0 %v5765_v55  ;;  %v5858_v54 = vld [vmem:[#allocation8 + $0x4e4] ss:$48 sps:$4 sm:$0xff]   ;;  %v5861_v55 = vld [vmem:[#allocation8 + $0x4ec] ss:$48 sps:$4 sm:$0xff]  }
 0x154   :  { %681 = vmatprep.mubr.bf16.mxu1 %v6887_v24  ;;  %732 = vmatprep.mubr.bf16.mxu0 %v6887_v24 }
 0x156   :  { %744 = vmatpush1.bf16.msra.mxu1 %v5760_v56  ;;  %795 = vmatpush1.bf16.msra.mxu0 %v5763_v57  ;;  %v5856_v56 = vld [vmem:[#allocation8 + $0x4e0] ss:$48 sps:$4 sm:$0xff]   ;;  %v5859_v57 = vld [vmem:[#allocation8 + $0x4e8] ss:$48 sps:$4 sm:$0xff]  }
 0x157   :  { %745 = vmatprep.subr.bf16.mxu1 %v5768_v58  ;;  %796 = vmatprep.subr.bf16.mxu0 %v5771_v59  ;;  %v5864_v58 = vld [vmem:[#allocation8 + $0x544] ss:$48 sps:$4 sm:$0xff]   ;;  %v5867_v59 = vld [vmem:[#allocation8 + $0x54c] ss:$48 sps:$4 sm:$0xff]  }
 0x159   :  { %5056 = vmatmul.mubr.msk.bf16.gmra.mrb[12].mxu1 %vm530_vm1, %v174_v45  ;;  %5058 = vmatmul.mubr.msk.bf16.gmra.mrb[16].mxu0 %vm530_vm1, %v174_v45 }
 0x15a   :  { %746 = vmatpush1.bf16.msra.mxu1 %v5766_v60  ;;  %797 = vmatpush1.bf16.msra.mxu0 %v5769_v61  ;;  %v5862_v60 = vld [vmem:[#allocation8 + $0x540] ss:$48 sps:$4 sm:$0xff]   ;;  %v5865_v61 = vld [vmem:[#allocation8 + $0x548] ss:$48 sps:$4 sm:$0xff]  }
 0x15b   :  { %747 = vmatprep.subr.bf16.mxu1 %v5774_v62  ;;  %798 = vmatprep.subr.bf16.mxu0 %v5777_v63  ;;  %v5870_v62 = vld [vmem:[#allocation8 + $0x5a4] ss:$48 sps:$4 sm:$0xff]   ;;  %v5873_v63 = vld [vmem:[#allocation8 + $0x5ac] ss:$48 sps:$4 sm:$0xff]  }
 0x15c   :  { %773 = vmatprep.mubr.bf16.mxu1 %v6887_v24  ;;  %824 = vmatprep.mubr.bf16.mxu0 %v6887_v24 }
 0x15e   :  { %748 = vmatpush1.bf16.msra.mxu1 %v5772_v0  ;;  %799 = vmatpush1.bf16.msra.mxu0 %v5775_v1  ;;  %v5868_v0 = vld [vmem:[#allocation8 + $0x5a0] ss:$48 sps:$4 sm:$0xff]   ;;  %v5871_v1 = vld [vmem:[#allocation8 + $0x5a8] ss:$48 sps:$4 sm:$0xff]  }
 0x15f   :  { %3415 = vmatprep.subr.bf16.mxu1 %v5780_v2  ;;  %3517 = vmatprep.subr.bf16.mxu0 %v5783_v3  ;;  %v5876_v2 = vld [vmem:[#allocation8 + $0x604] ss:$48 sps:$4 sm:$0xff]   ;;  %v5879_v3 = vld [vmem:[#allocation8 + $0x60c] ss:$48 sps:$4 sm:$0xff]  }
 0x161   :  { %5059 = vmatmul.mubr.msk.bf16.vlgmr.msra.gmra.mrb[16].mxu1 %vm530_vm1, %v7006_v35  ;;  %5061 = vmatmul.mubr.msk.bf16.vlgmr.msra.gmra.mrb[20].mxu0 %vm530_vm1, %v7006_v35  ;;  %v5831_v35 = vld [vmem:[#allocation8 + $0x30c] ss:$48 sps:$4 sm:$0xff]  }
 0x162   :  { %783 = vmatprep.mubr.bf16.mxu1 %v6887_v24  ;;  %834 = vmatprep.mubr.bf16.mxu0 %v6887_v24  ;;  %v5808_v24 = vld [vmem:[#allocation8 + $0x1e0] ss:$48 sps:$4 sm:$0xff]  }
 0x163   :  { %3416 = vmatpush1.bf16.msra.mxu1 %v5778_v4  ;;  %3518 = vmatpush1.bf16.msra.mxu0 %v5781_v5  ;;  %v230_v4 = vlaneseq }
 0x164   :  { %3417 = vmatprep.subr.bf16.mxu1 %v5786_v6  ;;  %3519 = vmatprep.subr.bf16.mxu0 %v5789_v7  ;;  %v223_v6 = vld [vmem:[#allocation10] ss:$8 sm:$0xf] }
 0x165   :  { %v7037_v5 = vshrl.u32 %v230_v4, 7  ;;  %v224_v7 = vld [vmem:[#allocation10] ss:$8 sm:$0xf0] }
 0x167   :  { %3418 = vmatpush1.bf16.msra.mxu1 %v5784_v8  ;;  %3520 = vmatpush1.bf16.msra.mxu0 %v5787_v9  ;;  %v7039_v8 = vor.u32 %v224_v7, %v223_v6  ;;  %v7042_v9 = vsub.s32 0, %v7037_v5  ;;  %v248_v6 = vsub.s32 4, %v7037_v5 }
 0x168   :  { %3419 = vmatprep.subr.bf16.mxu1 %v5792_v10  ;;  %3521 = vmatprep.subr.bf16.mxu0 %v5795_v11  ;;  %v7045_v10 = vsub.s32 2, %v7037_v5  ;;  %v7048_v11 = vsub.s32 1, %v7037_v5 }
 0x169   :  { %5060 = vmatmul.mubr.msk.bf16.gmra.mrb[20].mxu1 %vm530_vm1, %v174_v45  ;;  %5062 = vmatmul.mubr.msk.bf16.gmra.mrb[24].mxu0 %vm530_vm1, %v174_v45  ;;  %v5841_v45 = vld [vmem:[#allocation8 + $0x3c8] ss:$48 sps:$4 sm:$0xff]  }
 0x16b   :  { %3420 = vmatpush1.bf16.msra.mxu1 %v5790_v12  ;;  %3522 = vmatpush1.bf16.msra.mxu0 %v5793_v13  ;;  %v7051_v12 = vsub.s32 3, %v7037_v5  ;;  %v233_v13 = vrot.slane %v7039_v8, %v7042_v9 }
 0x16c   :  { %3421 = vmatprep.subr.bf16.mxu1 %v5798_v14  ;;  %3523 = vmatprep.subr.bf16.mxu0 %v5801_v15  ;;  %v241_v14 = vrot.slane %v7039_v8, %v7045_v10  ;;  %v237_v15 = vrot.slane %v7039_v8, %v7048_v11 }
 0x16f   :  { %3422 = vmatpush1.bf16.msra.mxu1 %v5796_v16  ;;  %3524 = vmatpush1.bf16.msra.mxu0 %v5799_v17  ;;  %v245_v16 = vrot.slane %v7039_v8, %v7051_v12 }
 0x170   :  { %3423 = vmatprep.subr.bf16.mxu1 %v5804_v18  ;;  %3525 = vmatprep.subr.bf16.mxu0 %v5807_v19 }
 0x173   :  { %3424 = vmatpush1.bf16.msra.mxu1 %v5802_v20  ;;  %3526 = vmatpush1.bf16.msra.mxu0 %v5805_v21 }
 0x174   :  { %3425 = vmatprep.subr.bf16.mxu1 %v5810_v22  ;;  %3527 = vmatprep.subr.bf16.mxu0 %v5813_v23 }
 0x177   :  { %3426 = vmatpush1.bf16.msra.mxu1 %v5808_v24  ;;  %3528 = vmatpush1.bf16.msra.mxu0 %v5811_v25 }
 0x178   :  { %3427 = vmatprep.subr.bf16.mxu1 %v5816_v26  ;;  %3529 = vmatprep.subr.bf16.mxu0 %v5819_v27 }
 0x17b   :  { %3428 = vmatpush1.bf16.msra.mxu1 %v5814_v28  ;;  %3530 = vmatpush1.bf16.msra.mxu0 %v5817_v29 }
 0x17c   :  { %3429 = vmatprep.subr.bf16.mxu1 %v5822_v30  ;;  %3531 = vmatprep.subr.bf16.mxu0 %v5825_v31 }
 0x17f   :  { %3430 = vmatpush1.bf16.msra.mxu1 %v5820_v32  ;;  %3532 = vmatpush1.bf16.msra.mxu0 %v5823_v33 }
 0x180   :  { %3431 = vmatprep.subr.bf16.mxu1 %v5828_v34  ;;  %3533 = vmatprep.subr.bf16.mxu0 %v5831_v35 }
 0x183   :  { %3432 = vmatpush1.bf16.msra.mxu1 %v5826_v36  ;;  %3534 = vmatpush1.bf16.msra.mxu0 %v5829_v37 }
 0x184   :  { %3433 = vmatprep.subr.bf16.mxu1 %v5834_v38  ;;  %3535 = vmatprep.subr.bf16.mxu0 %v5837_v39 }
 0x187   :  { %3434 = vmatpush1.bf16.msra.mxu1 %v5832_v40  ;;  %3536 = vmatpush1.bf16.msra.mxu0 %v5835_v41 }
 0x188   :  { %3435 = vmatprep.subr.bf16.mxu1 %v5840_v42  ;;  %3537 = vmatprep.subr.bf16.mxu0 %v5843_v43 }
 0x18b   :  { %3436 = vmatpush1.bf16.msra.mxu1 %v5838_v44  ;;  %3538 = vmatpush1.bf16.msra.mxu0 %v5841_v45 }
 0x18c   :  { %3437 = vmatprep.subr.bf16.mxu1 %v5846_v46  ;;  %3539 = vmatprep.subr.bf16.mxu0 %v5849_v47 }
 0x18f   :  { %3438 = vmatpush1.bf16.msra.mxu1 %v5844_v48  ;;  %3540 = vmatpush1.bf16.msra.mxu0 %v5847_v49 }
 0x190   :  { %3439 = vmatprep.subr.bf16.mxu1 %v5852_v50  ;;  %3541 = vmatprep.subr.bf16.mxu0 %v5855_v51 }
 0x193   :  { %3440 = vmatpush1.bf16.msra.mxu1 %v5850_v52  ;;  %3542 = vmatpush1.bf16.msra.mxu0 %v5853_v53 }
 0x194   :  { %3441 = vmatprep.subr.bf16.mxu1 %v5858_v54  ;;  %3543 = vmatprep.subr.bf16.mxu0 %v5861_v55 }
 0x197   :  { %3442 = vmatpush1.bf16.msra.mxu1 %v5856_v56  ;;  %3544 = vmatpush1.bf16.msra.mxu0 %v5859_v57 }
 0x198   :  { %3443 = vmatprep.subr.bf16.mxu1 %v5864_v58  ;;  %3545 = vmatprep.subr.bf16.mxu0 %v5867_v59 }
 0x19b   :  { %3444 = vmatpush1.bf16.msra.mxu1 %v5862_v60  ;;  %3546 = vmatpush1.bf16.msra.mxu0 %v5865_v61 }
 0x19c   :  { %3445 = vmatprep.subr.bf16.mxu1 %v5870_v62  ;;  %3547 = vmatprep.subr.bf16.mxu0 %v5873_v63 }
 0x19f   :  { %3446 = vmatpush1.bf16.msra.mxu1 %v5868_v0  ;;  %3548 = vmatpush1.bf16.msra.mxu0 %v5871_v1 }
 0x1a0   :  { %3466 = vmatprep.subr.bf16.mxu1 %v5876_v2  ;;  %3568 = vmatprep.subr.bf16.mxu0 %v5879_v3 }
 0x214   :  { %v571_v17 = vpop.f32.mrb[0].mxu1  ;;  %v622_v18 = vpop.f32.mrb[4].mxu0 }
 0x215   :  { %v572_v19 = vadd.f32 %v571_v17, %v233_v13  ;;  %v623_v20 = vadd.f32 %v622_v18, %v241_v14  ;;  %v573_v21 = vpop.f32.mrb[1].mxu1  ;;  %v624_v22 = vpop.f32.mrb[5].mxu0 }
 0x216   :  { %v574_v23 = vadd.f32 %v573_v21, %v237_v15  ;;  %v625_v24 = vadd.f32 %v624_v22, %v245_v16  ;;  %v575_v25 = vpop.f32.mrb[2].mxu1  ;;  %v626_v26 = vpop.f32.mrb[6].mxu0  ;;  %v252_v21 = vsub.s32 5, %v7037_v5 }
 0x217   :  { %v5063_v27 = vmul.f32 -1.442695, %v572_v19  ;;  %v5065_v28 = vmul.f32 -1.442695, %v623_v20  ;;  %v576_v29 = vadd.f32 %v575_v25, %v233_v13  ;;  %v627_v30 = vadd.f32 %v626_v26, %v241_v14  ;;  %v577_v31 = vpop.f32.mrb[3].mxu1  ;;  %v628_v32 = vpop.f32.mrb[7].mxu0 }
 0x218   :  { %v5064_v33 = vmul.f32 -1.442695, %v574_v23  ;;  %v5066_v34 = vmul.f32 -1.442695, %v625_v24  ;;  %v578_v35 = vadd.f32 %v577_v31, %v237_v15  ;;  %v629_v36 = vadd.f32 %v628_v32, %v245_v16 }
 0x219   :  { %6386 = vpow2.f32 %v5063_v27  ;;  %v5067_v37 = vmul.f32 -1.442695, %v576_v29  ;;  %v5069_v38 = vmul.f32 -1.442695, %v627_v30  ;;  %v260_v24 = vsub.s32 7, %v7037_v5 }
 0x21a   :  { %6388 = vpow2.f32 %v5065_v28  ;;  %v5068_v39 = vmul.f32 -1.442695, %v578_v35  ;;  %v5070_v40 = vmul.f32 -1.442695, %v629_v36  ;;  %v249_v27 = vrot.slane %v7039_v8, %v248_v6 }
 0x21b   :  { %6390 = vpow2.f32 %v5064_v33  ;;  %v253_v33 = vrot.slane %v7039_v8, %v252_v21 }
 0x21c   :  { %6392 = vpow2.f32 %v5066_v34  ;;  %v581_v41 = vpop.f32.mrb[4].mxu1  ;;  %v632_v42 = vpop.f32.mrb[8].mxu0 }
 0x21d   :  { %6394 = vpow2.f32 %v5067_v37  ;;  %v582_v43 = vadd.f32 %v581_v41, %v233_v13  ;;  %v633_v44 = vadd.f32 %v632_v42, %v241_v14  ;;  %v583_v45 = vpop.f32.mrb[5].mxu1  ;;  %v634_v46 = vpop.f32.mrb[9].mxu0 }
 0x21e   :  { %6396 = vpow2.f32 %v5069_v38  ;;  %v584_v47 = vadd.f32 %v583_v45, %v237_v15  ;;  %v635_v48 = vadd.f32 %v634_v46, %v245_v16  ;;  %v585_v49 = vpop.f32.mrb[6].mxu1  ;;  %v636_v50 = vpop.f32.mrb[10].mxu0  ;;  %v256_v16 = vsub.s32 6, %v7037_v5  ;;  %v7077_v46 = vld [vmem:[#allocation10 + $0x40] ss:$8 sm:$0xf] }
 0x21f   :  { %6398 = vpow2.f32 %v5068_v39  ;;  %v5071_v51 = vmul.f32 -1.442695, %v582_v43  ;;  %v5073_v52 = vmul.f32 -1.442695, %v633_v44  ;;  %v586_v53 = vpop.f32.mrb[7].mxu1  ;;  %v637_v54 = vpop.f32.mrb[11].mxu0  ;;  %v261_v38 = vrot.slane %v7039_v8, %v260_v24 }
 0x220   :  { %6400 = vpow2.f32 %v5070_v40  ;;  %v5072_v55 = vmul.f32 -1.442695, %v584_v47  ;;  %v5074_v56 = vmul.f32 -1.442695, %v635_v48  ;;  %v257_v30 = vrot.slane %v7039_v8, %v256_v16 }
 0x221   :  { %6402 = vpow2.f32 %v5071_v51  ;;  %v273_v54 = vrot.slane %v7077_v46, %v7045_v10 }
 0x222   :  { %6404 = vpow2.f32 %v5073_v52 }
 0x223   :  { %v6387_v57 = vpop.eup %6386  ;;  %6406 = vpow2.f32 %v5072_v55 }
 0x224   :  { %v6389_v58 = vpop.eup %6388  ;;  %v879_v59 = vadd.f32 1.0, %v6387_v57  ;;  %6408 = vpow2.f32 %v5074_v56  ;;  %v673_v60 = vpop.f32.mrb[8].mxu1  ;;  %v7083_v57 = vrot.slane %v7077_v46, %v7042_v9 }
 0x225   :  { %v724_v61 = vpop.f32.mrb[12].mxu0  ;;  %v6391_v62 = vpop.eup %6390  ;;  %v881_v63 = vadd.f32 1.0, %v6389_v58  ;;  %v674_v43 = vadd.f32 %v673_v60, %v249_v27 }
 0x226   :  { %v675_v0 = vpop.f32.mrb[9].mxu1  ;;  %v726_v1 = vpop.f32.mrb[13].mxu0  ;;  %6410 = vrcp.f32 %v879_v59  ;;  %v880_v3 = vadd.f32 1.0, %v6391_v62  ;;  %v725_v48 = vadd.f32 %v724_v61, %v257_v30 }
 0x227   :  { %v6393_v2 = vpop.eup %6392  ;;  %v677_v7 = vpop.f32.mrb[10].mxu1  ;;  %6412 = vrcp.f32 %v881_v63  ;;  %v676_v52 = vadd.f32 %v675_v0, %v253_v33  ;;  %v727_v8 = vadd.f32 %v726_v1, %v261_v38 }
 0x228   :  { %v728_v13 = vpop.f32.mrb[14].mxu0  ;;  %v6395_v14 = vpop.eup %6394  ;;  %v882_v15 = vadd.f32 1.0, %v6393_v2  ;;  %6414 = vrcp.f32 %v880_v3  ;;  %v678_v56 = vadd.f32 %v677_v7, %v249_v27 }
 0x229   :  { %v679_v17 = vpop.f32.mrb[11].mxu1  ;;  %v730_v18 = vpop.f32.mrb[15].mxu0  ;;  %v883_v20 = vadd.f32 1.0, %v6395_v14  ;;  %v729_v59 = vadd.f32 %v728_v13, %v257_v30 }
 0x22a   :  { %v6397_v19 = vpop.eup %6396  ;;  %6416 = vrcp.f32 %v882_v15  ;;  %v680_v61 = vadd.f32 %v679_v17, %v253_v33  ;;  %v731_v1 = vadd.f32 %v730_v18, %v261_v38 }
 0x22b   :  { %v6399_v22 = vpop.eup %6398  ;;  %v885_v23 = vadd.f32 1.0, %v6397_v19  ;;  %6418 = vrcp.f32 %v883_v20 }
 0x22c   :  { %v6401_v25 = vpop.eup %6400  ;;  %v884_v26 = vadd.f32 1.0, %v6399_v22  ;;  %v683_v34 = vpop.f32.mrb[12].mxu1 }
 0x22d   :  { %v6403_v28 = vpop.eup %6402  ;;  %6420 = vrcp.f32 %v885_v23  ;;  %v886_v29 = vadd.f32 1.0, %v6401_v25  ;;  %v734_v35 = vpop.f32.mrb[16].mxu0  ;;  %v684_v15 = vadd.f32 %v683_v34, %v249_v27 }
 0x22e   :  { %v6405_v31 = vpop.eup %6404  ;;  %6422 = vrcp.f32 %v884_v26  ;;  %v887_v32 = vadd.f32 1.0, %v6403_v28  ;;  %v685_v39 = vpop.f32.mrb[13].mxu1  ;;  %v735_v22 = vadd.f32 %v734_v35, %v257_v30 }
 0x22f   :  { %v6407_v36 = vpop.eup %6406  ;;  %6424 = vrcp.f32 %v886_v29  ;;  %v889_v37 = vadd.f32 1.0, %v6405_v31  ;;  %v736_v40 = vpop.f32.mrb[17].mxu0  ;;  %v686_v26 = vadd.f32 %v685_v39, %v253_v33 }
 0x230   :  { %v6409_v41 = vpop.eup %6408  ;;  %6426 = vrcp.f32 %v887_v32  ;;  %v888_v42 = vadd.f32 1.0, %v6407_v36  ;;  %v687_v44 = vpop.f32.mrb[14].mxu1  ;;  %v737_v27 = vadd.f32 %v736_v40, %v261_v38 }
 0x231   :  { %v738_v45 = vpop.f32.mrb[18].mxu0  ;;  %6428 = vrcp.f32 %v889_v37  ;;  %v890_v47 = vadd.f32 1.0, %v6409_v41  ;;  %v688_v49 = vpop.f32.mrb[15].mxu1 }
 0x232   :  { %v739_v50 = vpop.f32.mrb[19].mxu0  ;;  %v6411_v51 = vpop.eup %6410  ;;  %6430 = vrcp.f32 %v888_v42 }
 0x233   :  { %v6413_v53 = vpop.eup %6412  ;;  %6432 = vrcp.f32 %v890_v47 }
 0x234   :  { %v6415_v55 = vpop.eup %6414  ;;  %6434 = vtanh.f32 %v674_v43  ;;  %v775_v62 = vpop.f32.mrb[16].mxu1 }
 0x235   :  { %v6417_v58 = vpop.eup %6416  ;;  %6436 = vtanh.f32 %v725_v48  ;;  %v826_v63 = vpop.f32.mrb[20].mxu0  ;;  %v776_v19 = vadd.f32 %v775_v62, %v7083_v57 }
 0x236   :  { %v6419_v60 = vpop.eup %6418  ;;  %6438 = vtanh.f32 %v676_v52  ;;  %v7085_v2 = vadd.f32 %v826_v63, %v273_v54  ;;  %v7087_v3 = vpop.f32.mrb[17].mxu1 }
 0x237   :  { %v6421_v0 = vpop.eup %6420  ;;  %6440 = vtanh.f32 %v727_v8  ;;  %v7089_v7 = vpop.f32.mrb[21].mxu0  ;;  %v5075_v32 = vmul.f32 -1.442695, %v776_v19 }
 0x238   :  { %v6423_v14 = vpop.eup %6422  ;;  %6442 = vtanh.f32 %v678_v56  ;;  %v7092_v13 = vpop.f32.mrb[18].mxu1 }
 0x239   :  { %v830_v20 = vpop.f32.mrb[22].mxu0  ;;  %v6425_v17 = vpop.eup %6424  ;;  %6444 = vtanh.f32 %v729_v59 }
 0x23a   :  { %v7094_v23 = vpop.f32.mrb[19].mxu1  ;;  %v7096_v18 = vpop.f32.mrb[23].mxu0  ;;  %6446 = vtanh.f32 %v680_v61  ;;  %v7098_v28 = vadd.f32 %v830_v20, %v273_v54 }
 0x23b   :  { %v6427_v25 = vpop.eup %6426  ;;  %6448 = vtanh.f32 %v731_v1 }
 0x23c   :  { %v6429_v29 = vpop.eup %6428  ;;  %6450 = vtanh.f32 %v684_v15  ;;  %v785_v30 = vpop.f32.mrb[20].mxu1 }
 0x23d   :  { %v6431_v31 = vpop.eup %6430  ;;  %6452 = vtanh.f32 %v735_v22  ;;  %v836_v35 = vpop.f32.mrb[24].mxu0 }
 0x23e   :  { %v6433_v34 = vpop.eup %6432  ;;  %6454 = vtanh.f32 %v686_v26  ;;  %v7100_v42 = vadd.f32 %v836_v35, %v273_v54  ;;  %v787_v33 = vpop.f32.mrb[21].mxu1  ;;  %v269_v54 = vrot.slane %v7077_v46, %v7048_v11 }
 0x23f   :  { %v6435_v36 = vpop.eup %6434  ;;  %6456 = vtanh.f32 %v737_v27  ;;  %v7102_v39 = vpop.f32.mrb[25].mxu0 }
 0x240   :  { %v6437_v37 = vpop.eup %6436  ;;  %v999_v41 = vmul.f32 %v6435_v36, %v6411_v51  ;;  %6458 = vpow2.f32 %v5075_v32  ;;  %v789_v38 = vpop.f32.mrb[22].mxu1  ;;  %v786_v36 = vadd.f32 %v785_v30, %v7083_v57 }
 0x241   :  { %v6439_v43 = vpop.eup %6438  ;;  %v1001_v44 = vmul.f32 %v6437_v37, %v6413_v53  ;;  %v840_v40 = vpop.f32.mrb[26].mxu0  ;;  %v277_v53 = vrot.slane %v7077_v46, %v7051_v12  ;;  %v780_v46 = vadd.f32 %v7092_v13, %v7083_v57  ;;  %v788_v37 = vadd.f32 %v787_v33, %v269_v54 }
 0x242   :  { %v6441_v45 = vpop.eup %6440  ;;  %v1000_v47 = vmul.f32 %v6439_v43, %v6415_v55  ;;  %v790_v48 = vpop.f32.mrb[23].mxu1  ;;  %6460 = vtanh.f32 %v999_v41  ;;  %v5083_v57 = vmul.f32 -1.442695, %v786_v36 }
 0x243   :  { %v841_v49 = vpop.f32.mrb[27].mxu0  ;;  %v6443_v50 = vpop.eup %6442  ;;  %v1002_v52 = vmul.f32 %v6441_v45, %v6417_v58  ;;  %6462 = vtanh.f32 %v1001_v44  ;;  %v829_v20 = vadd.f32 %v7089_v7, %v277_v53  ;;  %v833_v7 = vadd.f32 %v7096_v18, %v277_v53 }
 0x244   :  { %v6445_v8 = vpop.eup %6444  ;;  %v1003_v51 = vmul.f32 %v6443_v50, %v6419_v60  ;;  %6464 = vtanh.f32 %v1000_v47  ;;  %v778_v60 = vadd.f32 %v7087_v3, %v269_v54  ;;  %v782_v3 = vadd.f32 %v7094_v23, %v269_v54 }
 0x245   :  { %v6447_v56 = vpop.eup %6446  ;;  %v1005_v59 = vmul.f32 %v6445_v8, %v6421_v0  ;;  %6466 = vtanh.f32 %v1002_v52  ;;  %v5082_v41 = vmul.f32 -1.442695, %v833_v7  ;;  %v839_v18 = vadd.f32 %v7102_v39, %v277_v53 }
 0x246   :  { %v6449_v61 = vpop.eup %6448  ;;  %v1004_v62 = vmul.f32 %v6447_v56, %v6423_v14  ;;  %6468 = vtanh.f32 %v1003_v51  ;;  %v5076_v27 = vmul.f32 -1.442695, %v778_v60  ;;  %v5080_v35 = vmul.f32 -1.442695, %v782_v3 }
 0x247   :  { %v6451_v55 = vpop.eup %6450  ;;  %v1006_v63 = vmul.f32 %v6449_v61, %v6425_v17  ;;  %6470 = vtanh.f32 %v1005_v59  ;;  %v5077_v17 = vmul.f32 -1.442695, %v7085_v2  ;;  %v5084_v38 = vmul.f32 -1.442695, %v788_v37 }
 0x248   :  { %v6453_v1 = vpop.eup %6452  ;;  %v1007_v58 = vmul.f32 %v6451_v55, %v6427_v25  ;;  %6472 = vtanh.f32 %v1004_v62  ;;  %v5086_v40 = vmul.f32 -1.442695, %v839_v18 }
 0x249   :  { %v6455_v15 = vpop.eup %6454  ;;  %v1009_v19 = vmul.f32 %v6453_v1, %v6429_v29  ;;  %6474 = vtanh.f32 %v1006_v63  ;;  %v5078_v29 = vmul.f32 -1.442695, %v829_v20 }
 0x24a   :  { %v6457_v0 = vpop.eup %6456  ;;  %v1008_v22 = vmul.f32 %v6455_v15, %v6431_v31  ;;  %6476 = vtanh.f32 %v1007_v58  ;;  %v5079_v31 = vmul.f32 -1.442695, %v780_v46 }
 0x24b   :  { %v6459_v14 = vpop.eup %6458  ;;  %v1010_v26 = vmul.f32 %v6457_v0, %v6433_v34  ;;  %6478 = vtanh.f32 %v1009_v19  ;;  %v5081_v34 = vmul.f32 -1.442695, %v7098_v28  ;;  %v5085_v28 = vmul.f32 -1.442695, %v7100_v42 }
 0x24c   :  { %v963_v25 = vadd.f32 1.0, %v6459_v14  ;;  %v6461_v32 = vpop.eup %6460 }
 0x24d   :  { %v7116_v13 = vpop.eup %6462 }
 0x24e   :  { %6480 = vrcp.f32 %v963_v25  ;;  %v7119_v2 = vpop.eup %6464 }
 0x24f   :  { %6482 = vpow2.f32 %v5077_v17  ;;  %v7121_v23 = vpop.eup %6466 }
 0x250   :  { %6484 = vpow2.f32 %v5076_v27  ;;  %v7124_v43 = vpop.eup %6468 }
 0x251   :  { %6486 = vpow2.f32 %v5078_v29  ;;  %v7126_v30 = vpop.eup %6470 }
 0x252   :  { %6488 = vpow2.f32 %v5079_v31  ;;  %v7129_v44 = vpop.eup %6472 }
 0x253   :  { %6490 = vpow2.f32 %v5081_v34  ;;  %v7131_v33 = vpop.eup %6474 }
 0x254   :  { %6492 = vpow2.f32 %v5080_v35  ;;  %v7133_v45 = vpop.eup %6476 }
 0x255   :  { %6494 = vpow2.f32 %v5082_v41  ;;  %v7135_v39 = vpop.eup %6478 }
 0x256   :  { %6496 = vpow2.f32 %v5083_v57 }
 0x257   :  { %6498 = vpow2.f32 %v5085_v28 }
 0x258   :  { %v6481_v47 = vpop.eup %6480  ;;  %6500 = vpow2.f32 %v5084_v38  ;;  %v5874_v38 = vld [vmem:[#allocation8 + $0x600] ss:$48 sps:$4 sm:$0xff]  }
 0x259   :  { %v6483_v48 = vpop.eup %6482  ;;  %v1023_v49 = vmul.f32 %v6481_v47, %v6461_v32  ;;  %6502 = vpow2.f32 %v5086_v40  ;;  %v5882_v47 = vld [vmem:[#allocation8 + $0x664] ss:$48 sps:$4 sm:$0xff]  }
 0x25a   :  { %v6485_v42 = vpop.eup %6484  ;;  %6504 = vtanh.f32 %v1008_v22  ;;  %v965_v50 = vadd.f32 1.0, %v6483_v48 }
 0x25b   :  { %v6487_v52 = vpop.eup %6486  ;;  %6506 = vtanh.f32 %v1010_v26  ;;  %v964_v8 = vadd.f32 1.0, %v6485_v42 }
 0x25c   :  { %v6489_v51 = vpop.eup %6488  ;;  %6508 = vrcp.f32 %v965_v50  ;;  %v966_v54 = vadd.f32 1.0, %v6487_v52  ;;  %v5883_v50 = vld [vmem:[#allocation8 + $0x668] ss:$48 sps:$4 sm:$0xff]   ;;  %v5888_v52 = vld [vmem:[#allocation8 + $0x6c4] ss:$48 sps:$4 sm:$0xff]  }
 0x25d   :  { %v6491_v56 = vpop.eup %6490  ;;  %6510 = vrcp.f32 %v964_v8  ;;  %v967_v59 = vadd.f32 1.0, %v6489_v51  ;;  %v5891_v8 = vld [vmem:[#allocation8 + $0x6cc] ss:$48 sps:$4 sm:$0xff]   ;;  %v5886_v51 = vld [vmem:[#allocation8 + $0x6c0] ss:$48 sps:$4 sm:$0xff]  }
 0x25e   :  { %v6493_v53 = vpop.eup %6492  ;;  %6512 = vrcp.f32 %v966_v54  ;;  %v969_v61 = vadd.f32 1.0, %v6491_v56  ;;  %v5889_v54 = vld [vmem:[#allocation8 + $0x6c8] ss:$48 sps:$4 sm:$0xff]  }
 0x25f   :  { %v6495_v62 = vpop.eup %6494  ;;  %6514 = vrcp.f32 %v967_v59  ;;  %v968_v55 = vadd.f32 1.0, %v6493_v53  ;;  %v5894_v59 = vld [vmem:[#allocation8 + $0x724] ss:$48 sps:$4 sm:$0xff]   ;;  %v5897_v53 = vld [vmem:[#allocation8 + $0x72c] ss:$48 sps:$4 sm:$0xff]  }
 0x260   :  { %v6497_v63 = vpop.eup %6496  ;;  %6516 = vrcp.f32 %v969_v61  ;;  %v970_v1 = vadd.f32 1.0, %v6495_v62  ;;  %v5892_v61 = vld [vmem:[#allocation8 + $0x720] ss:$48 sps:$4 sm:$0xff]   ;;  %v5895_v62 = vld [vmem:[#allocation8 + $0x728] ss:$48 sps:$4 sm:$0xff]  }
 0x261   :  { %v6499_v58 = vpop.eup %6498  ;;  %6518 = vrcp.f32 %v968_v55  ;;  %v971_v60 = vadd.f32 1.0, %v6497_v63  ;;  %v5900_v55 = vld [vmem:[#allocation8 + $0x784] ss:$48 sps:$4 sm:$0xff]   ;;  %v5903_v63 = vld [vmem:[#allocation8 + $0x78c] ss:$48 sps:$4 sm:$0xff]  }
 0x262   :  { %v6501_v15 = vpop.eup %6500  ;;  %6520 = vrcp.f32 %v970_v1  ;;  %v973_v19 = vadd.f32 1.0, %v6499_v58  ;;  %v5898_v1 = vld [vmem:[#allocation8 + $0x780] ss:$48 sps:$4 sm:$0xff]   ;;  %v5901_v58 = vld [vmem:[#allocation8 + $0x788] ss:$48 sps:$4 sm:$0xff]  }
 0x263   :  { %v6503_v20 = vpop.eup %6502  ;;  %6522 = vrcp.f32 %v971_v60  ;;  %v972_v0 = vadd.f32 1.0, %v6501_v15  ;;  %v5906_v60 = vld [vmem:[#allocation8 + $0x7e4] ss:$48 sps:$4 sm:$0xff]   ;;  %v5909_v15 = vld [vmem:[#allocation8 + $0x7ec] ss:$48 sps:$4 sm:$0xff]  }
 0x264   :  { %v6505_v22 = vpop.eup %6504  ;;  %6524 = vrcp.f32 %v973_v19  ;;  %v974_v46 = vadd.f32 1.0, %v6503_v20  ;;  %v5904_v19 = vld [vmem:[#allocation8 + $0x7e0] ss:$48 sps:$4 sm:$0xff]   ;;  %v5907_v20 = vld [vmem:[#allocation8 + $0x7e8] ss:$48 sps:$4 sm:$0xff]  }
 0x265   :  { %v6507_v14 = vpop.eup %6506  ;;  %6526 = vrcp.f32 %v972_v0  ;;  %v5912_v0 = vld [vmem:[#allocation8 + $0x844] ss:$48 sps:$4 sm:$0xff]  }
 0x266   :  { %v6509_v26 = vpop.eup %6508  ;;  %6528 = vrcp.f32 %v974_v46  ;;  %v5910_v46 = vld [vmem:[#allocation8 + $0x840] ss:$48 sps:$4 sm:$0xff]  }
 0x267   :  { %v6511_v17 = vpop.eup %6510  ;;  %v1025_v25 = vmul.f32 %v6509_v26, %v7116_v13  ;;  %v5918_v26 = vld [vmem:[#allocation8 + $0x8a4] ss:$48 sps:$4 sm:$0xff]  }
 0x268   :  { %v6513_v27 = vpop.eup %6512  ;;  %v1024_v3 = vmul.f32 %v6511_v17, %v7119_v2  ;;  %v5921_v17 = vld [vmem:[#allocation8 + $0x8ac] ss:$48 sps:$4 sm:$0xff]  }
 0x269   :  { %v6515_v29 = vpop.eup %6514  ;;  %v1026_v7 = vmul.f32 %v6513_v27, %v7121_v23  ;;  %v5919_v27 = vld [vmem:[#allocation8 + $0x8a8] ss:$48 sps:$4 sm:$0xff]  }
 0x26a   :  { %v6517_v32 = vpop.eup %6516  ;;  %v1027_v31 = vmul.f32 %v6515_v29, %v7124_v43  ;;  %v5877_v43 = vld [vmem:[#allocation8 + $0x608] ss:$48 sps:$4 sm:$0xff]   ;;  %v5927_v29 = vld [vmem:[#allocation8 + $0x90c] ss:$48 sps:$4 sm:$0xff]  }
 0x26b   :  { %v6519_v36 = vpop.eup %6518  ;;  %v1029_v34 = vmul.f32 %v6517_v32, %v7126_v30  ;;  %v5925_v32 = vld [vmem:[#allocation8 + $0x908] ss:$48 sps:$4 sm:$0xff]  }
 0x26c   :  { %v6521_v35 = vpop.eup %6520  ;;  %v1028_v37 = vmul.f32 %v6519_v36, %v7129_v44  ;;  %v7143_v41 = vpack.c.bf16 %v1027_v31, %v1023_v49  ;;  %v5885_v44 = vld [vmem:[#allocation8 + $0x66c] ss:$48 sps:$4 sm:$0xff]   ;;  %v5930_v31 = vld [vmem:[#allocation8 + $0x964] ss:$48 sps:$4 sm:$0xff]  }
 0x26d   :  { %v6523_v18 = vpop.eup %6522  ;;  %v1030_v13 = vmul.f32 %v6521_v35, %v7131_v33  ;;  %v7146_v57 = vpack.c.bf16 %v1029_v34, %v1025_v25  ;;  %v5916_v25 = vld [vmem:[#allocation8 + $0x8a0] ss:$48 sps:$4 sm:$0xff]   ;;  %v5933_v36 = vld [vmem:[#allocation8 + $0x96c] ss:$48 sps:$4 sm:$0xff]   ;;  %v5931_v35 = vld [vmem:[#allocation8 + $0x968] ss:$48 sps:$4 sm:$0xff]  }
 0x26e   :  { %v6525_v2 = vpop.eup %6524  ;;  %v1031_v28 = vmul.f32 %v6523_v18, %v7133_v45  ;;  %v7149_v23 = vpack.c.bf16 %v1028_v37, %v1024_v3  ;;  %v5924_v3 = vld [vmem:[#allocation8 + $0x904] ss:$48 sps:$4 sm:$0xff]   ;;  %v5928_v34 = vld [vmem:[#allocation8 + $0x960] ss:$48 sps:$4 sm:$0xff]   ;;  %v5939_v18 = vld [vmem:[#allocation8 + $0x9cc] ss:$48 sps:$4 sm:$0xff]  }
 0x26f   :  { %v6527_v40 = vpop.eup %6526  ;;  %v7152_v30 = vmul.f32 %v6525_v2, %v7135_v39  ;;  %v7154_v48 = vpack.c.bf16 %v1030_v13, %v1026_v7  ;;  %v5880_v39 = vld [vmem:[#allocation8 + $0x660] ss:$48 sps:$4 sm:$0xff]   ;;  %v5936_v37 = vld [vmem:[#allocation8 + $0x9c4] ss:$48 sps:$4 sm:$0xff]   ;;  %v5937_v2 = vld [vmem:[#allocation8 + $0x9c8] ss:$48 sps:$4 sm:$0xff]  }
 0x270   :  { %v6529_v49 = vpop.eup %6528  ;;  %v1032_v42 = vmul.f32 %v6527_v40, %v6505_v22  ;;  %3447 = vmatprep.mubr.bf16.mxu1 %v7149_v23  ;;  %3549 = vmatprep.mubr.bf16.mxu0 %v7149_v23  ;;  %v7166_v56 = vpack.c.bf16 %v1031_v28, %v1031_v28  ;;  %v5915_v22 = vld [vmem:[#allocation8 + $0x84c] ss:$48 sps:$4 sm:$0xff]   ;;  %v5922_v7 = vld [vmem:[#allocation8 + $0x900] ss:$48 sps:$4 sm:$0xff]   ;;  %v5942_v28 = vld [vmem:[#allocation8 + $0xa24] ss:$48 sps:$4 sm:$0xff]  }
 0x271   :  { %v7158_v33 = vmul.f32 %v6529_v49, %v6507_v14  ;;  %3448 = vmatmul.mubr.bf16.vlgmr.msra.gmra.mrb[24].mxu1 %v7143_v41  ;;  %3550 = vmatmul.mubr.bf16.vlgmr.msra.gmra.mrb[28].mxu0 %v7143_v41  ;;  %v5913_v14 = vld [vmem:[#allocation8 + $0x848] ss:$48 sps:$4 sm:$0xff]   ;;  %v5934_v13 = vld [vmem:[#allocation8 + $0x9c0] ss:$48 sps:$4 sm:$0xff]  }
 0x272   :  { %v7162_v45 = vpack.c.bf16 %v1032_v42, %v1032_v42  ;;  %3467 = vmatpush1.bf16.msra.mxu1 %v5874_v38  ;;  %3569 = vmatpush1.bf16.msra.mxu0 %v5877_v43  ;;  %v5945_v38 = vld [vmem:[#allocation8 + $0xa2c] ss:$48 sps:$4 sm:$0xff]   ;;  %v5940_v43 = vld [vmem:[#allocation8 + $0xa20] ss:$48 sps:$4 sm:$0xff]   ;;  %v5943_v40 = vld [vmem:[#allocation8 + $0xa28] ss:$48 sps:$4 sm:$0xff]  }
 0x273   :  { %3468 = vmatprep.subr.bf16.mxu1 %v5882_v47  ;;  %3570 = vmatprep.subr.bf16.mxu0 %v5885_v44  ;;  %v5948_v47 = vld [vmem:[#allocation8 + $0xa84] ss:$48 sps:$4 sm:$0xff]   ;;  %v5951_v44 = vld [vmem:[#allocation8 + $0xa8c] ss:$48 sps:$4 sm:$0xff]   ;;  %v5946_v49 = vld [vmem:[#allocation8 + $0xa80] ss:$48 sps:$4 sm:$0xff]  }
 0x274   :  { %3457 = vmatprep.mubr.bf16.mxu1 %v7162_v45  ;;  %3559 = vmatprep.mubr.bf16.mxu0 %v7162_v45  ;;  %v5949_v42 = vld [vmem:[#allocation8 + $0xa88] ss:$48 sps:$4 sm:$0xff]  }
 0x276   :  { %3469 = vmatpush1.bf16.msra.mxu1 %v5880_v39  ;;  %3571 = vmatpush1.bf16.msra.mxu0 %v5883_v50  ;;  %v5954_v39 = vld [vmem:[#allocation8 + $0xae4] ss:$48 sps:$4 sm:$0xff]   ;;  %v5957_v50 = vld [vmem:[#allocation8 + $0xaec] ss:$48 sps:$4 sm:$0xff]  }
 0x277   :  { %3470 = vmatprep.subr.bf16.mxu1 %v5888_v52  ;;  %3572 = vmatprep.subr.bf16.mxu0 %v5891_v8  ;;  %v5952_v52 = vld [vmem:[#allocation8 + $0xae0] ss:$48 sps:$4 sm:$0xff]   ;;  %v5955_v8 = vld [vmem:[#allocation8 + $0xae8] ss:$48 sps:$4 sm:$0xff]  }
 0x279   :  { %3458 = vmatmul.mubr.bf16.gmra.mrb[28].mxu1 %v7166_v56  ;;  %3560 = vmatmul.mubr.bf16.gmra.mrb[32].mxu0 %v7166_v56 }
 0x27a   :  { %3471 = vmatpush1.bf16.msra.mxu1 %v5886_v51  ;;  %3573 = vmatpush1.bf16.msra.mxu0 %v5889_v54  ;;  %v5960_v51 = vld [vmem:[#allocation8 + $0xb44] ss:$48 sps:$4 sm:$0xff]   ;;  %v5963_v54 = vld [vmem:[#allocation8 + $0xb4c] ss:$48 sps:$4 sm:$0xff]  }
 0x27b   :  { %3498 = vmatprep.mubr.bf16.mxu1 %v7154_v48  ;;  %3600 = vmatprep.mubr.bf16.mxu0 %v7154_v48 }
 0x27c   :  { %3472 = vmatprep.subr.bf16.mxu1 %v5894_v59  ;;  %3574 = vmatprep.subr.bf16.mxu0 %v5897_v53  ;;  %v5958_v59 = vld [vmem:[#allocation8 + $0xb40] ss:$48 sps:$4 sm:$0xff]   ;;  %v5961_v53 = vld [vmem:[#allocation8 + $0xb48] ss:$48 sps:$4 sm:$0xff]  }
 0x27e   :  { %3473 = vmatpush1.bf16.msra.mxu1 %v5892_v61  ;;  %3575 = vmatpush1.bf16.msra.mxu0 %v5895_v62  ;;  %v5966_v61 = vld [vmem:[#allocation8 + $0xba4] ss:$48 sps:$4 sm:$0xff]   ;;  %v5969_v62 = vld [vmem:[#allocation8 + $0xbac] ss:$48 sps:$4 sm:$0xff]  }
 0x27f   :  { %3474 = vmatprep.subr.bf16.mxu1 %v5900_v55  ;;  %3576 = vmatprep.subr.bf16.mxu0 %v5903_v63  ;;  %v5964_v55 = vld [vmem:[#allocation8 + $0xba0] ss:$48 sps:$4 sm:$0xff]   ;;  %v5967_v63 = vld [vmem:[#allocation8 + $0xba8] ss:$48 sps:$4 sm:$0xff]  }
 0x282   :  { %3475 = vmatpush1.bf16.msra.mxu1 %v5898_v1  ;;  %3577 = vmatpush1.bf16.msra.mxu0 %v5901_v58  ;;  %v5972_v1 = vld [vmem:[#allocation8 + $0x14] ss:$48 sps:$4 sm:$0xff]   ;;  %v5975_v58 = vld [vmem:[#allocation8 + $0x1c] ss:$48 sps:$4 sm:$0xff]  }
 0x283   :  { %3476 = vmatprep.subr.bf16.mxu1 %v5906_v60  ;;  %3578 = vmatprep.subr.bf16.mxu0 %v5909_v15  ;;  %v5970_v60 = vld [vmem:[#allocation8 + $0x10] ss:$48 sps:$4 sm:$0xff]   ;;  %v5973_v15 = vld [vmem:[#allocation8 + $0x18] ss:$48 sps:$4 sm:$0xff]  }
 0x286   :  { %3477 = vmatpush1.bf16.msra.mxu1 %v5904_v19  ;;  %3579 = vmatpush1.bf16.msra.mxu0 %v5907_v20  ;;  %v7174_v19 = vpack.c.bf16 %v7158_v33, %v7158_v33  ;;  %v5978_v20 = vld [vmem:[#allocation8 + $0x74] ss:$48 sps:$4 sm:$0xff]   ;;  %v7182_v33 = vpack.c.bf16 %v7152_v30, %v7152_v30  ;;  %v5988_v30 = vld [vmem:[#allocation8 + $0x130] ss:$48 sps:$4 sm:$0xff]  }
 0x287   :  { %3478 = vmatprep.subr.bf16.mxu1 %v5912_v0  ;;  %3580 = vmatprep.subr.bf16.mxu0 %v5915_v22  ;;  %v5981_v0 = vld [vmem:[#allocation8 + $0x7c] ss:$48 sps:$4 sm:$0xff]   ;;  %v5976_v22 = vld [vmem:[#allocation8 + $0x70] ss:$48 sps:$4 sm:$0xff]  }
 0x28a   :  { %3479 = vmatpush1.bf16.msra.mxu1 %v5910_v46  ;;  %3581 = vmatpush1.bf16.msra.mxu0 %v5913_v14  ;;  %v5979_v46 = vld [vmem:[#allocation8 + $0x78] ss:$48 sps:$4 sm:$0xff]   ;;  %v5984_v14 = vld [vmem:[#allocation8 + $0xd4] ss:$48 sps:$4 sm:$0xff]  }
 0x28b   :  { %3480 = vmatprep.subr.bf16.mxu1 %v5918_v26  ;;  %3582 = vmatprep.subr.bf16.mxu0 %v5921_v17  ;;  %v5987_v26 = vld [vmem:[#allocation8 + $0xdc] ss:$48 sps:$4 sm:$0xff]   ;;  %v5982_v17 = vld [vmem:[#allocation8 + $0xd0] ss:$48 sps:$4 sm:$0xff]  }
 0x28e   :  { %3481 = vmatpush1.bf16.msra.mxu1 %v5916_v25  ;;  %3583 = vmatpush1.bf16.msra.mxu0 %v5919_v27  ;;  %v5985_v25 = vld [vmem:[#allocation8 + $0xd8] ss:$48 sps:$4 sm:$0xff]   ;;  %v5990_v27 = vld [vmem:[#allocation8 + $0x134] ss:$48 sps:$4 sm:$0xff]  }
 0x28f   :  { %3482 = vmatprep.subr.bf16.mxu1 %v5924_v3  ;;  %3584 = vmatprep.subr.bf16.mxu0 %v5927_v29  ;;  %v5993_v3 = vld [vmem:[#allocation8 + $0x13c] ss:$48 sps:$4 sm:$0xff]   ;;  %v5991_v29 = vld [vmem:[#allocation8 + $0x138] ss:$48 sps:$4 sm:$0xff]  }
 0x292   :  { %3483 = vmatpush1.bf16.msra.mxu1 %v5922_v7  ;;  %3585 = vmatpush1.bf16.msra.mxu0 %v5925_v32  ;;  %v5996_v7 = vld [vmem:[#allocation8 + $0x194] ss:$48 sps:$4 sm:$0xff]   ;;  %v5999_v32 = vld [vmem:[#allocation8 + $0x19c] ss:$48 sps:$4 sm:$0xff]  }
 0x293   :  { %3484 = vmatprep.subr.bf16.mxu1 %v5930_v31  ;;  %3586 = vmatprep.subr.bf16.mxu0 %v5933_v36  ;;  %v5994_v31 = vld [vmem:[#allocation8 + $0x190] ss:$48 sps:$4 sm:$0xff]   ;;  %v5997_v36 = vld [vmem:[#allocation8 + $0x198] ss:$48 sps:$4 sm:$0xff]  }
 0x296   :  { %3485 = vmatpush1.bf16.msra.mxu1 %v5928_v34  ;;  %3587 = vmatpush1.bf16.msra.mxu0 %v5931_v35  ;;  %v6002_v34 = vld [vmem:[#allocation8 + $0x1f4] ss:$48 sps:$4 sm:$0xff]   ;;  %v6005_v35 = vld [vmem:[#allocation8 + $0x1fc] ss:$48 sps:$4 sm:$0xff]  }
 0x297   :  { %3486 = vmatprep.subr.bf16.mxu1 %v5936_v37  ;;  %3588 = vmatprep.subr.bf16.mxu0 %v5939_v18  ;;  %v6000_v37 = vld [vmem:[#allocation8 + $0x1f0] ss:$48 sps:$4 sm:$0xff]   ;;  %v6003_v18 = vld [vmem:[#allocation8 + $0x1f8] ss:$48 sps:$4 sm:$0xff]  }
 0x29a   :  { %3487 = vmatpush1.bf16.msra.mxu1 %v5934_v13  ;;  %3589 = vmatpush1.bf16.msra.mxu0 %v5937_v2  ;;  %v6008_v13 = vld [vmem:[#allocation8 + $0x254] ss:$48 sps:$4 sm:$0xff]   ;;  %v6011_v2 = vld [vmem:[#allocation8 + $0x25c] ss:$48 sps:$4 sm:$0xff]  }
 0x29b   :  { %3488 = vmatprep.subr.bf16.mxu1 %v5942_v28  ;;  %3590 = vmatprep.subr.bf16.mxu0 %v5945_v38  ;;  %v6006_v28 = vld [vmem:[#allocation8 + $0x250] ss:$48 sps:$4 sm:$0xff]   ;;  %v6009_v38 = vld [vmem:[#allocation8 + $0x258] ss:$48 sps:$4 sm:$0xff]  }
 0x29e   :  { %3489 = vmatpush1.bf16.msra.mxu1 %v5940_v43  ;;  %3591 = vmatpush1.bf16.msra.mxu0 %v5943_v40  ;;  %v6014_v43 = vld [vmem:[#allocation8 + $0x2b4] ss:$48 sps:$4 sm:$0xff]   ;;  %v6017_v40 = vld [vmem:[#allocation8 + $0x2bc] ss:$48 sps:$4 sm:$0xff]  }
 0x29f   :  { %3490 = vmatprep.subr.bf16.mxu1 %v5948_v47  ;;  %3592 = vmatprep.subr.bf16.mxu0 %v5951_v44  ;;  %v6012_v47 = vld [vmem:[#allocation8 + $0x2b0] ss:$48 sps:$4 sm:$0xff]   ;;  %v6015_v44 = vld [vmem:[#allocation8 + $0x2b8] ss:$48 sps:$4 sm:$0xff]  }
 0x2a2   :  { %3491 = vmatpush1.bf16.msra.mxu1 %v5946_v49  ;;  %3593 = vmatpush1.bf16.msra.mxu0 %v5949_v42  ;;  %v6020_v49 = vld [vmem:[#allocation8 + $0x314] ss:$48 sps:$4 sm:$0xff]   ;;  %v6023_v42 = vld [vmem:[#allocation8 + $0x31c] ss:$48 sps:$4 sm:$0xff]  }
 0x2a3   :  { %3492 = vmatprep.subr.bf16.mxu1 %v5954_v39  ;;  %3594 = vmatprep.subr.bf16.mxu0 %v5957_v50  ;;  %v6018_v39 = vld [vmem:[#allocation8 + $0x310] ss:$48 sps:$4 sm:$0xff]   ;;  %v6021_v50 = vld [vmem:[#allocation8 + $0x318] ss:$48 sps:$4 sm:$0xff]  }
 0x2a6   :  { %3493 = vmatpush1.bf16.msra.mxu1 %v5952_v52  ;;  %3595 = vmatpush1.bf16.msra.mxu0 %v5955_v8  ;;  %v6026_v52 = vld [vmem:[#allocation8 + $0x374] ss:$48 sps:$4 sm:$0xff]   ;;  %v6029_v8 = vld [vmem:[#allocation8 + $0x37c] ss:$48 sps:$4 sm:$0xff]  }
 0x2a7   :  { %3494 = vmatprep.subr.bf16.mxu1 %v5960_v51  ;;  %3596 = vmatprep.subr.bf16.mxu0 %v5963_v54  ;;  %v6024_v51 = vld [vmem:[#allocation8 + $0x370] ss:$48 sps:$4 sm:$0xff]   ;;  %v6027_v54 = vld [vmem:[#allocation8 + $0x378] ss:$48 sps:$4 sm:$0xff]  }
 0x2aa   :  { %3495 = vmatpush1.bf16.msra.mxu1 %v5958_v59  ;;  %3597 = vmatpush1.bf16.msra.mxu0 %v5961_v53  ;;  %v6032_v59 = vld [vmem:[#allocation8 + $0x3d4] ss:$48 sps:$4 sm:$0xff]   ;;  %v6035_v53 = vld [vmem:[#allocation8 + $0x3dc] ss:$48 sps:$4 sm:$0xff]  }
 0x2ab   :  { %3496 = vmatprep.subr.bf16.mxu1 %v5966_v61  ;;  %3598 = vmatprep.subr.bf16.mxu0 %v5969_v62  ;;  %v6030_v61 = vld [vmem:[#allocation8 + $0x3d0] ss:$48 sps:$4 sm:$0xff]   ;;  %v6033_v62 = vld [vmem:[#allocation8 + $0x3d8] ss:$48 sps:$4 sm:$0xff]  }
 0x2ae   :  { %3497 = vmatpush1.bf16.msra.mxu1 %v5964_v55  ;;  %3599 = vmatpush1.bf16.msra.mxu0 %v5967_v63  ;;  %v6038_v55 = vld [vmem:[#allocation8 + $0x434] ss:$48 sps:$4 sm:$0xff]   ;;  %v6041_v63 = vld [vmem:[#allocation8 + $0x43c] ss:$48 sps:$4 sm:$0xff]  }
 0x2af   :  { %3619 = vmatprep.subr.bf16.mxu1 %v5972_v1  ;;  %3721 = vmatprep.subr.bf16.mxu0 %v5975_v58  ;;  %v6036_v1 = vld [vmem:[#allocation8 + $0x430] ss:$48 sps:$4 sm:$0xff]   ;;  %v6039_v58 = vld [vmem:[#allocation8 + $0x438] ss:$48 sps:$4 sm:$0xff]  }
 0x2b1   :  { %3499 = vmatmul.mubr.bf16.vlgmr.msra.gmra.mrb[24].mxu1 %v7146_v57  ;;  %3601 = vmatmul.mubr.bf16.vlgmr.msra.gmra.mrb[28].mxu0 %v7146_v57 }
 0x2b2   :  { %3508 = vmatprep.mubr.bf16.mxu1 %v7174_v19  ;;  %3610 = vmatprep.mubr.bf16.mxu0 %v7174_v19 }
 0x2b3   :  { %3620 = vmatpush1.bf16.msra.mxu1 %v5970_v60  ;;  %3722 = vmatpush1.bf16.msra.mxu0 %v5973_v15  ;;  %v6044_v60 = vld [vmem:[#allocation8 + $0x494] ss:$48 sps:$4 sm:$0xff]   ;;  %v6047_v15 = vld [vmem:[#allocation8 + $0x49c] ss:$48 sps:$4 sm:$0xff]  }
 0x2b4   :  { %3621 = vmatprep.subr.bf16.mxu1 %v5978_v20  ;;  %3723 = vmatprep.subr.bf16.mxu0 %v5981_v0  ;;  %v6042_v20 = vld [vmem:[#allocation8 + $0x490] ss:$48 sps:$4 sm:$0xff]   ;;  %v6045_v0 = vld [vmem:[#allocation8 + $0x498] ss:$48 sps:$4 sm:$0xff]  }
 0x2b7   :  { %3622 = vmatpush1.bf16.msra.mxu1 %v5976_v22  ;;  %3724 = vmatpush1.bf16.msra.mxu0 %v5979_v46  ;;  %v6050_v22 = vld [vmem:[#allocation8 + $0x4f4] ss:$48 sps:$4 sm:$0xff]   ;;  %v6053_v46 = vld [vmem:[#allocation8 + $0x4fc] ss:$48 sps:$4 sm:$0xff]  }
 0x2b8   :  { %3623 = vmatprep.subr.bf16.mxu1 %v5984_v14  ;;  %3725 = vmatprep.subr.bf16.mxu0 %v5987_v26  ;;  %v6048_v14 = vld [vmem:[#allocation8 + $0x4f0] ss:$48 sps:$4 sm:$0xff]   ;;  %v6051_v26 = vld [vmem:[#allocation8 + $0x4f8] ss:$48 sps:$4 sm:$0xff]  }
 0x2b9   :  { %3509 = vmatmul.mubr.bf16.gmra.mrb[28].mxu1 %v7182_v33  ;;  %3611 = vmatmul.mubr.bf16.gmra.mrb[32].mxu0 %v7182_v33 }
 0x2ba   :  { %3651 = vmatprep.mubr.bf16.mxu1 %v7149_v23  ;;  %3753 = vmatprep.mubr.bf16.mxu0 %v7149_v23 }
 0x2bb   :  { %3624 = vmatpush1.bf16.msra.mxu1 %v5982_v17  ;;  %3726 = vmatpush1.bf16.msra.mxu0 %v5985_v25  ;;  %v6056_v17 = vld [vmem:[#allocation8 + $0x554] ss:$48 sps:$4 sm:$0xff]   ;;  %v6059_v25 = vld [vmem:[#allocation8 + $0x55c] ss:$48 sps:$4 sm:$0xff]  }
 0x2bc   :  { %3625 = vmatprep.subr.bf16.mxu1 %v5990_v27  ;;  %3727 = vmatprep.subr.bf16.mxu0 %v5993_v3  ;;  %v6054_v27 = vld [vmem:[#allocation8 + $0x550] ss:$48 sps:$4 sm:$0xff]   ;;  %v6057_v3 = vld [vmem:[#allocation8 + $0x558] ss:$48 sps:$4 sm:$0xff]  }
 0x2bf   :  { %3626 = vmatpush1.bf16.msra.mxu1 %v5988_v30  ;;  %3728 = vmatpush1.bf16.msra.mxu0 %v5991_v29  ;;  %v6062_v30 = vld [vmem:[#allocation8 + $0x5b4] ss:$48 sps:$4 sm:$0xff]   ;;  %v6065_v29 = vld [vmem:[#allocation8 + $0x5bc] ss:$48 sps:$4 sm:$0xff]  }
 0x2c0   :  { %3627 = vmatprep.subr.bf16.mxu1 %v5996_v7  ;;  %3729 = vmatprep.subr.bf16.mxu0 %v5999_v32  ;;  %v6060_v7 = vld [vmem:[#allocation8 + $0x5b0] ss:$48 sps:$4 sm:$0xff]   ;;  %v6063_v32 = vld [vmem:[#allocation8 + $0x5b8] ss:$48 sps:$4 sm:$0xff]  }
 0x2c3   :  { %3628 = vmatpush1.bf16.msra.mxu1 %v5994_v31  ;;  %3730 = vmatpush1.bf16.msra.mxu0 %v5997_v36  ;;  %v6068_v31 = vld [vmem:[#allocation8 + $0x614] ss:$48 sps:$4 sm:$0xff]   ;;  %v6071_v36 = vld [vmem:[#allocation8 + $0x61c] ss:$48 sps:$4 sm:$0xff]  }
 0x2c4   :  { %3629 = vmatprep.subr.bf16.mxu1 %v6002_v34  ;;  %3731 = vmatprep.subr.bf16.mxu0 %v6005_v35  ;;  %v6066_v34 = vld [vmem:[#allocation8 + $0x610] ss:$48 sps:$4 sm:$0xff]   ;;  %v6069_v35 = vld [vmem:[#allocation8 + $0x618] ss:$48 sps:$4 sm:$0xff]  }
 0x2c7   :  { %3630 = vmatpush1.bf16.msra.mxu1 %v6000_v37  ;;  %3732 = vmatpush1.bf16.msra.mxu0 %v6003_v18  ;;  %v6074_v37 = vld [vmem:[#allocation8 + $0x674] ss:$48 sps:$4 sm:$0xff]   ;;  %v6077_v18 = vld [vmem:[#allocation8 + $0x67c] ss:$48 sps:$4 sm:$0xff]  }
 0x2c8   :  { %3631 = vmatprep.subr.bf16.mxu1 %v6008_v13  ;;  %3733 = vmatprep.subr.bf16.mxu0 %v6011_v2  ;;  %v6072_v13 = vld [vmem:[#allocation8 + $0x670] ss:$48 sps:$4 sm:$0xff]   ;;  %v6075_v2 = vld [vmem:[#allocation8 + $0x678] ss:$48 sps:$4 sm:$0xff]  }
 0x2cb   :  { %3632 = vmatpush1.bf16.msra.mxu1 %v6006_v28  ;;  %3734 = vmatpush1.bf16.msra.mxu0 %v6009_v38  ;;  %v6080_v28 = vld [vmem:[#allocation8 + $0x6d4] ss:$48 sps:$4 sm:$0xff]   ;;  %v6083_v38 = vld [vmem:[#allocation8 + $0x6dc] ss:$48 sps:$4 sm:$0xff]  }
 0x2cc   :  { %3633 = vmatprep.subr.bf16.mxu1 %v6014_v43  ;;  %3735 = vmatprep.subr.bf16.mxu0 %v6017_v40  ;;  %v6078_v43 = vld [vmem:[#allocation8 + $0x6d0] ss:$48 sps:$4 sm:$0xff]   ;;  %v6081_v40 = vld [vmem:[#allocation8 + $0x6d8] ss:$48 sps:$4 sm:$0xff]  }
 0x2cf   :  { %3634 = vmatpush1.bf16.msra.mxu1 %v6012_v47  ;;  %3736 = vmatpush1.bf16.msra.mxu0 %v6015_v44  ;;  %v6086_v47 = vld [vmem:[#allocation8 + $0x734] ss:$48 sps:$4 sm:$0xff]   ;;  %v6089_v44 = vld [vmem:[#allocation8 + $0x73c] ss:$48 sps:$4 sm:$0xff]  }
 0x2d0   :  { %3635 = vmatprep.subr.bf16.mxu1 %v6020_v49  ;;  %3737 = vmatprep.subr.bf16.mxu0 %v6023_v42  ;;  %v6084_v49 = vld [vmem:[#allocation8 + $0x730] ss:$48 sps:$4 sm:$0xff]   ;;  %v6087_v42 = vld [vmem:[#allocation8 + $0x738] ss:$48 sps:$4 sm:$0xff]  }
 0x2d3   :  { %3636 = vmatpush1.bf16.msra.mxu1 %v6018_v39  ;;  %3738 = vmatpush1.bf16.msra.mxu0 %v6021_v50  ;;  %v6092_v39 = vld [vmem:[#allocation8 + $0x794] ss:$48 sps:$4 sm:$0xff]   ;;  %v6095_v50 = vld [vmem:[#allocation8 + $0x79c] ss:$48 sps:$4 sm:$0xff]  }
 0x2d4   :  { %3637 = vmatprep.subr.bf16.mxu1 %v6026_v52  ;;  %3739 = vmatprep.subr.bf16.mxu0 %v6029_v8  ;;  %v6090_v52 = vld [vmem:[#allocation8 + $0x790] ss:$48 sps:$4 sm:$0xff]   ;;  %v6093_v8 = vld [vmem:[#allocation8 + $0x798] ss:$48 sps:$4 sm:$0xff]  }
 0x2d7   :  { %3638 = vmatpush1.bf16.msra.mxu1 %v6024_v51  ;;  %3740 = vmatpush1.bf16.msra.mxu0 %v6027_v54  ;;  %v6098_v51 = vld [vmem:[#allocation8 + $0x7f4] ss:$48 sps:$4 sm:$0xff]   ;;  %v6101_v54 = vld [vmem:[#allocation8 + $0x7fc] ss:$48 sps:$4 sm:$0xff]  }
 0x2d8   :  { %3639 = vmatprep.subr.bf16.mxu1 %v6032_v59  ;;  %3741 = vmatprep.subr.bf16.mxu0 %v6035_v53  ;;  %v6096_v59 = vld [vmem:[#allocation8 + $0x7f0] ss:$48 sps:$4 sm:$0xff]   ;;  %v6099_v53 = vld [vmem:[#allocation8 + $0x7f8] ss:$48 sps:$4 sm:$0xff]  }
 0x2db   :  { %3640 = vmatpush1.bf16.msra.mxu1 %v6030_v61  ;;  %3742 = vmatpush1.bf16.msra.mxu0 %v6033_v62  ;;  %v6104_v61 = vld [vmem:[#allocation8 + $0x854] ss:$48 sps:$4 sm:$0xff]   ;;  %v6107_v62 = vld [vmem:[#allocation8 + $0x85c] ss:$48 sps:$4 sm:$0xff]  }
 0x2dc   :  { %3641 = vmatprep.subr.bf16.mxu1 %v6038_v55  ;;  %3743 = vmatprep.subr.bf16.mxu0 %v6041_v63  ;;  %v6102_v55 = vld [vmem:[#allocation8 + $0x850] ss:$48 sps:$4 sm:$0xff]   ;;  %v6105_v63 = vld [vmem:[#allocation8 + $0x858] ss:$48 sps:$4 sm:$0xff]  }
 0x2df   :  { %3642 = vmatpush1.bf16.msra.mxu1 %v6036_v1  ;;  %3744 = vmatpush1.bf16.msra.mxu0 %v6039_v58  ;;  %v6110_v1 = vld [vmem:[#allocation8 + $0x8b4] ss:$48 sps:$4 sm:$0xff]   ;;  %v6113_v58 = vld [vmem:[#allocation8 + $0x8bc] ss:$48 sps:$4 sm:$0xff]  }
 0x2e0   :  { %3643 = vmatprep.subr.bf16.mxu1 %v6044_v60  ;;  %3745 = vmatprep.subr.bf16.mxu0 %v6047_v15  ;;  %v6108_v60 = vld [vmem:[#allocation8 + $0x8b0] ss:$48 sps:$4 sm:$0xff]   ;;  %v6111_v15 = vld [vmem:[#allocation8 + $0x8b8] ss:$48 sps:$4 sm:$0xff]  }
 0x2e3   :  { %3644 = vmatpush1.bf16.msra.mxu1 %v6042_v20  ;;  %3746 = vmatpush1.bf16.msra.mxu0 %v6045_v0  ;;  %v6116_v20 = vld [vmem:[#allocation8 + $0x914] ss:$48 sps:$4 sm:$0xff]   ;;  %v6119_v0 = vld [vmem:[#allocation8 + $0x91c] ss:$48 sps:$4 sm:$0xff]  }
 0x2e4   :  { %3645 = vmatprep.subr.bf16.mxu1 %v6050_v22  ;;  %3747 = vmatprep.subr.bf16.mxu0 %v6053_v46  ;;  %v6114_v22 = vld [vmem:[#allocation8 + $0x910] ss:$48 sps:$4 sm:$0xff]   ;;  %v6117_v46 = vld [vmem:[#allocation8 + $0x918] ss:$48 sps:$4 sm:$0xff]  }
 0x2e7   :  { %3646 = vmatpush1.bf16.msra.mxu1 %v6048_v14  ;;  %3748 = vmatpush1.bf16.msra.mxu0 %v6051_v26  ;;  %v6122_v14 = vld [vmem:[#allocation8 + $0x974] ss:$48 sps:$4 sm:$0xff]   ;;  %v6125_v26 = vld [vmem:[#allocation8 + $0x97c] ss:$48 sps:$4 sm:$0xff]  }
 0x2e8   :  { %3647 = vmatprep.subr.bf16.mxu1 %v6056_v17  ;;  %3749 = vmatprep.subr.bf16.mxu0 %v6059_v25  ;;  %v6120_v17 = vld [vmem:[#allocation8 + $0x970] ss:$48 sps:$4 sm:$0xff]   ;;  %v6123_v25 = vld [vmem:[#allocation8 + $0x978] ss:$48 sps:$4 sm:$0xff]  }
 0x2eb   :  { %3648 = vmatpush1.bf16.msra.mxu1 %v6054_v27  ;;  %3750 = vmatpush1.bf16.msra.mxu0 %v6057_v3  ;;  %v6128_v27 = vld [vmem:[#allocation8 + $0x9d4] ss:$48 sps:$4 sm:$0xff]   ;;  %v6131_v3 = vld [vmem:[#allocation8 + $0x9dc] ss:$48 sps:$4 sm:$0xff]  }
 0x2ec   :  { %3649 = vmatprep.subr.bf16.mxu1 %v6062_v30  ;;  %3751 = vmatprep.subr.bf16.mxu0 %v6065_v29  ;;  %v6126_v30 = vld [vmem:[#allocation8 + $0x9d0] ss:$48 sps:$4 sm:$0xff]   ;;  %v6129_v29 = vld [vmem:[#allocation8 + $0x9d8] ss:$48 sps:$4 sm:$0xff]  }
 0x2ef   :  { %3650 = vmatpush1.bf16.msra.mxu1 %v6060_v7  ;;  %3752 = vmatpush1.bf16.msra.mxu0 %v6063_v32  ;;  %v6134_v7 = vld [vmem:[#allocation8 + $0xa34] ss:$48 sps:$4 sm:$0xff]   ;;  %v6137_v32 = vld [vmem:[#allocation8 + $0xa3c] ss:$48 sps:$4 sm:$0xff]  }
 0x2f0   :  { %3670 = vmatprep.subr.bf16.mxu1 %v6068_v31  ;;  %3772 = vmatprep.subr.bf16.mxu0 %v6071_v36  ;;  %v6132_v31 = vld [vmem:[#allocation8 + $0xa30] ss:$48 sps:$4 sm:$0xff]   ;;  %v6135_v36 = vld [vmem:[#allocation8 + $0xa38] ss:$48 sps:$4 sm:$0xff]  }
 0x2f2   :  { %3652 = vmatmul.mubr.bf16.vlgmr.msra.gmra.mrb[32].mxu1 %v7143_v41  ;;  %3754 = vmatmul.mubr.bf16.vlgmr.msra.gmra.mrb[36].mxu0 %v7143_v41 }
 0x2f3   :  { %3661 = vmatprep.mubr.bf16.mxu1 %v7162_v45  ;;  %3671 = vmatpush1.bf16.msra.mxu1 %v6066_v34  ;;  %v6140_v34 = vld [vmem:[#allocation8 + $0xa94] ss:$48 sps:$4 sm:$0xff]  }
 0x2f4   :  { %3763 = vmatprep.mubr.bf16.mxu0 %v7162_v45  ;;  %3773 = vmatpush1.bf16.msra.mxu0 %v6069_v35  ;;  %v6143_v35 = vld [vmem:[#allocation8 + $0xa9c] ss:$48 sps:$4 sm:$0xff]  }
 0x2f5   :  { %3672 = vmatprep.subr.bf16.mxu1 %v6074_v37  ;;  %3774 = vmatprep.subr.bf16.mxu0 %v6077_v18  ;;  %v6138_v37 = vld [vmem:[#allocation8 + $0xa90] ss:$48 sps:$4 sm:$0xff]   ;;  %v6141_v18 = vld [vmem:[#allocation8 + $0xa98] ss:$48 sps:$4 sm:$0xff]  }
 0x2f7   :  { %3673 = vmatpush1.bf16.msra.mxu1 %v6072_v13  ;;  %v6146_v13 = vld [vmem:[#allocation8 + $0xaf4] ss:$48 sps:$4 sm:$0xff]  }
 0x2f8   :  { %3775 = vmatpush1.bf16.msra.mxu0 %v6075_v2  ;;  %3674 = vmatprep.subr.bf16.mxu1 %v6080_v28  ;;  %v6149_v2 = vld [vmem:[#allocation8 + $0xafc] ss:$48 sps:$4 sm:$0xff]   ;;  %v6144_v28 = vld [vmem:[#allocation8 + $0xaf0] ss:$48 sps:$4 sm:$0xff]  }
 0x2f9   :  { %3776 = vmatprep.subr.bf16.mxu0 %v6083_v38  ;;  %v6147_v38 = vld [vmem:[#allocation8 + $0xaf8] ss:$48 sps:$4 sm:$0xff]  }
 0x2fa   :  { %3662 = vmatmul.mubr.bf16.gmra.mrb[36].mxu1 %v7166_v56  ;;  %3764 = vmatmul.mubr.bf16.gmra.mrb[40].mxu0 %v7166_v56 }
 0x2fb   :  { %3675 = vmatpush1.bf16.msra.mxu1 %v6078_v43  ;;  %3702 = vmatprep.mubr.bf16.mxu1 %v7154_v48  ;;  %v6152_v43 = vld [vmem:[#allocation8 + $0xb54] ss:$48 sps:$4 sm:$0xff]  }
 0x2fc   :  { %3777 = vmatpush1.bf16.msra.mxu0 %v6081_v40  ;;  %3804 = vmatprep.mubr.bf16.mxu0 %v7154_v48  ;;  %v6155_v40 = vld [vmem:[#allocation8 + $0xb5c] ss:$48 sps:$4 sm:$0xff]  }
 0x2fd   :  { %3676 = vmatprep.subr.bf16.mxu1 %v6086_v47  ;;  %3778 = vmatprep.subr.bf16.mxu0 %v6089_v44  ;;  %v6150_v47 = vld [vmem:[#allocation8 + $0xb50] ss:$48 sps:$4 sm:$0xff]   ;;  %v6153_v44 = vld [vmem:[#allocation8 + $0xb58] ss:$48 sps:$4 sm:$0xff]  }
 0x2ff   :  { %3677 = vmatpush1.bf16.msra.mxu1 %v6084_v49  ;;  %v6158_v49 = vld [vmem:[#allocation8 + $0xbb4] ss:$48 sps:$4 sm:$0xff]  }
 0x300   :  { %3779 = vmatpush1.bf16.msra.mxu0 %v6087_v42  ;;  %3678 = vmatprep.subr.bf16.mxu1 %v6092_v39  ;;  %v6161_v42 = vld [vmem:[#allocation8 + $0xbbc] ss:$48 sps:$4 sm:$0xff]   ;;  %v6156_v39 = vld [vmem:[#allocation8 + $0xbb0] ss:$48 sps:$4 sm:$0xff]  }
 0x301   :  { %3780 = vmatprep.subr.bf16.mxu0 %v6095_v50  ;;  %v6159_v50 = vld [vmem:[#allocation8 + $0xbb8] ss:$48 sps:$4 sm:$0xff]  }
 0x303   :  { %3679 = vmatpush1.bf16.msra.mxu1 %v6090_v52  ;;  %v6164_v52 = vld [vmem:[#allocation8 + $0x24] ss:$48 sps:$4 sm:$0xff]  }
 0x304   :  { %3781 = vmatpush1.bf16.msra.mxu0 %v6093_v8  ;;  %3680 = vmatprep.subr.bf16.mxu1 %v6098_v51  ;;  %v6167_v8 = vld [vmem:[#allocation8 + $0x2c] ss:$48 sps:$4 sm:$0xff]   ;;  %v6162_v51 = vld [vmem:[#allocation8 + $0x20] ss:$48 sps:$4 sm:$0xff]  }
 0x305   :  { %3782 = vmatprep.subr.bf16.mxu0 %v6101_v54  ;;  %v6165_v54 = vld [vmem:[#allocation8 + $0x28] ss:$48 sps:$4 sm:$0xff]  }
 0x307   :  { %3681 = vmatpush1.bf16.msra.mxu1 %v6096_v59  ;;  %v6170_v59 = vld [vmem:[#allocation8 + $0x84] ss:$48 sps:$4 sm:$0xff]  }
 0x308   :  { %3783 = vmatpush1.bf16.msra.mxu0 %v6099_v53  ;;  %3682 = vmatprep.subr.bf16.mxu1 %v6104_v61  ;;  %v6173_v53 = vld [vmem:[#allocation8 + $0x8c] ss:$48 sps:$4 sm:$0xff]   ;;  %v6168_v61 = vld [vmem:[#allocation8 + $0x80] ss:$48 sps:$4 sm:$0xff]  }
 0x309   :  { %3784 = vmatprep.subr.bf16.mxu0 %v6107_v62  ;;  %v6171_v62 = vld [vmem:[#allocation8 + $0x88] ss:$48 sps:$4 sm:$0xff]  }
 0x30b   :  { %3683 = vmatpush1.bf16.msra.mxu1 %v6102_v55  ;;  %v6176_v55 = vld [vmem:[#allocation8 + $0xe4] ss:$48 sps:$4 sm:$0xff]  }
 0x30c   :  { %3785 = vmatpush1.bf16.msra.mxu0 %v6105_v63  ;;  %3684 = vmatprep.subr.bf16.mxu1 %v6110_v1  ;;  %v6179_v63 = vld [vmem:[#allocation8 + $0xec] ss:$48 sps:$4 sm:$0xff]   ;;  %v6174_v1 = vld [vmem:[#allocation8 + $0xe0] ss:$48 sps:$4 sm:$0xff]  }
 0x30d   :  { %3786 = vmatprep.subr.bf16.mxu0 %v6113_v58  ;;  %v6177_v58 = vld [vmem:[#allocation8 + $0xe8] ss:$48 sps:$4 sm:$0xff]  }
 0x30f   :  { %3685 = vmatpush1.bf16.msra.mxu1 %v6108_v60  ;;  %v6182_v60 = vld [vmem:[#allocation8 + $0x144] ss:$48 sps:$4 sm:$0xff]  }
 0x310   :  { %3787 = vmatpush1.bf16.msra.mxu0 %v6111_v15  ;;  %3686 = vmatprep.subr.bf16.mxu1 %v6116_v20  ;;  %v6185_v15 = vld [vmem:[#allocation8 + $0x14c] ss:$48 sps:$4 sm:$0xff]   ;;  %v6180_v20 = vld [vmem:[#allocation8 + $0x140] ss:$48 sps:$4 sm:$0xff]  }
 0x311   :  { %3788 = vmatprep.subr.bf16.mxu0 %v6119_v0  ;;  %v6183_v0 = vld [vmem:[#allocation8 + $0x148] ss:$48 sps:$4 sm:$0xff]  }
 0x313   :  { %3687 = vmatpush1.bf16.msra.mxu1 %v6114_v22  ;;  %v6188_v22 = vld [vmem:[#allocation8 + $0x1a4] ss:$48 sps:$4 sm:$0xff]  }
 0x314   :  { %3789 = vmatpush1.bf16.msra.mxu0 %v6117_v46  ;;  %3688 = vmatprep.subr.bf16.mxu1 %v6122_v14  ;;  %v6191_v46 = vld [vmem:[#allocation8 + $0x1ac] ss:$48 sps:$4 sm:$0xff]   ;;  %v6186_v14 = vld [vmem:[#allocation8 + $0x1a0] ss:$48 sps:$4 sm:$0xff]  }
 0x315   :  { %3790 = vmatprep.subr.bf16.mxu0 %v6125_v26  ;;  %v6189_v26 = vld [vmem:[#allocation8 + $0x1a8] ss:$48 sps:$4 sm:$0xff]  }
 0x317   :  { %3689 = vmatpush1.bf16.msra.mxu1 %v6120_v17  ;;  %v6194_v17 = vld [vmem:[#allocation8 + $0x204] ss:$48 sps:$4 sm:$0xff]  }
 0x318   :  { %3791 = vmatpush1.bf16.msra.mxu0 %v6123_v25  ;;  %3690 = vmatprep.subr.bf16.mxu1 %v6128_v27  ;;  %v6197_v25 = vld [vmem:[#allocation8 + $0x20c] ss:$48 sps:$4 sm:$0xff]   ;;  %v6192_v27 = vld [vmem:[#allocation8 + $0x200] ss:$48 sps:$4 sm:$0xff]  }
 0x319   :  { %3792 = vmatprep.subr.bf16.mxu0 %v6131_v3  ;;  %v6200_v3 = vld [vmem:[#allocation8 + $0x264] ss:$48 sps:$4 sm:$0xff]  }
 0x31b   :  { %3691 = vmatpush1.bf16.msra.mxu1 %v6126_v30  ;;  %v6203_v30 = vld [vmem:[#allocation8 + $0x26c] ss:$48 sps:$4 sm:$0xff]  }
 0x31c   :  { %3793 = vmatpush1.bf16.msra.mxu0 %v6129_v29  ;;  %3692 = vmatprep.subr.bf16.mxu1 %v6134_v7  ;;  %v6198_v29 = vld [vmem:[#allocation8 + $0x260] ss:$48 sps:$4 sm:$0xff]   ;;  %v6201_v7 = vld [vmem:[#allocation8 + $0x268] ss:$48 sps:$4 sm:$0xff]  }
 0x31d   :  { %3794 = vmatprep.subr.bf16.mxu0 %v6137_v32  ;;  %v6206_v32 = vld [vmem:[#allocation8 + $0x2c4] ss:$48 sps:$4 sm:$0xff]  }
 0x31f   :  { %3693 = vmatpush1.bf16.msra.mxu1 %v6132_v31  ;;  %v6209_v31 = vld [vmem:[#allocation8 + $0x2cc] ss:$48 sps:$4 sm:$0xff]  }
 0x320   :  { %3795 = vmatpush1.bf16.msra.mxu0 %v6135_v36  ;;  %3694 = vmatprep.subr.bf16.mxu1 %v6140_v34  ;;  %v6204_v36 = vld [vmem:[#allocation8 + $0x2c0] ss:$48 sps:$4 sm:$0xff]   ;;  %v6207_v34 = vld [vmem:[#allocation8 + $0x2c8] ss:$48 sps:$4 sm:$0xff]  }
 0x321   :  { %3796 = vmatprep.subr.bf16.mxu0 %v6143_v35  ;;  %v6212_v35 = vld [vmem:[#allocation8 + $0x324] ss:$48 sps:$4 sm:$0xff]  }
 0x323   :  { %3695 = vmatpush1.bf16.msra.mxu1 %v6138_v37  ;;  %v6215_v37 = vld [vmem:[#allocation8 + $0x32c] ss:$48 sps:$4 sm:$0xff]  }
 0x324   :  { %3797 = vmatpush1.bf16.msra.mxu0 %v6141_v18  ;;  %3696 = vmatprep.subr.bf16.mxu1 %v6146_v13  ;;  %v6210_v18 = vld [vmem:[#allocation8 + $0x320] ss:$48 sps:$4 sm:$0xff]   ;;  %v6213_v13 = vld [vmem:[#allocation8 + $0x328] ss:$48 sps:$4 sm:$0xff]  }
 0x325   :  { %3798 = vmatprep.subr.bf16.mxu0 %v6149_v2  ;;  %v6218_v2 = vld [vmem:[#allocation8 + $0x384] ss:$48 sps:$4 sm:$0xff]  }
 0x327   :  { %3697 = vmatpush1.bf16.msra.mxu1 %v6144_v28  ;;  %v6221_v28 = vld [vmem:[#allocation8 + $0x38c] ss:$48 sps:$4 sm:$0xff]  }
 0x328   :  { %3799 = vmatpush1.bf16.msra.mxu0 %v6147_v38  ;;  %3698 = vmatprep.subr.bf16.mxu1 %v6152_v43  ;;  %v6216_v38 = vld [vmem:[#allocation8 + $0x380] ss:$48 sps:$4 sm:$0xff]   ;;  %v6219_v43 = vld [vmem:[#allocation8 + $0x388] ss:$48 sps:$4 sm:$0xff]  }
 0x329   :  { %3800 = vmatprep.subr.bf16.mxu0 %v6155_v40  ;;  %v6224_v40 = vld [vmem:[#allocation8 + $0x3e4] ss:$48 sps:$4 sm:$0xff]  }
 0x32b   :  { %3699 = vmatpush1.bf16.msra.mxu1 %v6150_v47  ;;  %v6227_v47 = vld [vmem:[#allocation8 + $0x3ec] ss:$48 sps:$4 sm:$0xff]  }
 0x32c   :  { %3801 = vmatpush1.bf16.msra.mxu0 %v6153_v44  ;;  %3700 = vmatprep.subr.bf16.mxu1 %v6158_v49  ;;  %v6222_v44 = vld [vmem:[#allocation8 + $0x3e0] ss:$48 sps:$4 sm:$0xff]   ;;  %v6225_v49 = vld [vmem:[#allocation8 + $0x3e8] ss:$48 sps:$4 sm:$0xff]  }
 0x32d   :  { %3802 = vmatprep.subr.bf16.mxu0 %v6161_v42  ;;  %v6230_v42 = vld [vmem:[#allocation8 + $0x444] ss:$48 sps:$4 sm:$0xff]  }
 0x32f   :  { %3701 = vmatpush1.bf16.msra.mxu1 %v6156_v39  ;;  %v6233_v39 = vld [vmem:[#allocation8 + $0x44c] ss:$48 sps:$4 sm:$0xff]  }
 0x330   :  { %3803 = vmatpush1.bf16.msra.mxu0 %v6159_v50  ;;  %3823 = vmatprep.subr.bf16.mxu1 %v6164_v52  ;;  %v6228_v50 = vld [vmem:[#allocation8 + $0x440] ss:$48 sps:$4 sm:$0xff]   ;;  %v6231_v52 = vld [vmem:[#allocation8 + $0x448] ss:$48 sps:$4 sm:$0xff]  }
 0x331   :  { %3925 = vmatprep.subr.bf16.mxu0 %v6167_v8  ;;  %v6236_v8 = vld [vmem:[#allocation8 + $0x4a4] ss:$48 sps:$4 sm:$0xff]  }
 0x332   :  { %3703 = vmatmul.mubr.bf16.vlgmr.msra.gmra.mrb[32].mxu1 %v7146_v57 }
 0x333   :  { %3805 = vmatmul.mubr.bf16.vlgmr.msra.gmra.mrb[36].mxu0 %v7146_v57  ;;  %3712 = vmatprep.mubr.bf16.mxu1 %v7174_v19 }
 0x334   :  { %3814 = vmatprep.mubr.bf16.mxu0 %v7174_v19  ;;  %3824 = vmatpush1.bf16.msra.mxu1 %v6162_v51  ;;  %v6239_v51 = vld [vmem:[#allocation8 + $0x4ac] ss:$48 sps:$4 sm:$0xff]  }
 0x335   :  { %3926 = vmatpush1.bf16.msra.mxu0 %v6165_v54  ;;  %3825 = vmatprep.subr.bf16.mxu1 %v6170_v59  ;;  %v6234_v54 = vld [vmem:[#allocation8 + $0x4a0] ss:$48 sps:$4 sm:$0xff]   ;;  %v6237_v59 = vld [vmem:[#allocation8 + $0x4a8] ss:$48 sps:$4 sm:$0xff]  }
 0x336   :  { %3927 = vmatprep.subr.bf16.mxu0 %v6173_v53  ;;  %v6242_v53 = vld [vmem:[#allocation8 + $0x504] ss:$48 sps:$4 sm:$0xff]  }
 0x338   :  { %3826 = vmatpush1.bf16.msra.mxu1 %v6168_v61  ;;  %v6245_v61 = vld [vmem:[#allocation8 + $0x50c] ss:$48 sps:$4 sm:$0xff]  }
 0x339   :  { %3928 = vmatpush1.bf16.msra.mxu0 %v6171_v62  ;;  %3827 = vmatprep.subr.bf16.mxu1 %v6176_v55  ;;  %v6240_v62 = vld [vmem:[#allocation8 + $0x500] ss:$48 sps:$4 sm:$0xff]   ;;  %v6243_v55 = vld [vmem:[#allocation8 + $0x508] ss:$48 sps:$4 sm:$0xff]  }
 0x33a   :  { %3713 = vmatmul.mubr.bf16.gmra.mrb[36].mxu1 %v7182_v33  ;;  %3929 = vmatprep.subr.bf16.mxu0 %v6179_v63  ;;  %v6248_v63 = vld [vmem:[#allocation8 + $0x564] ss:$48 sps:$4 sm:$0xff]  }
 0x33b   :  { %3815 = vmatmul.mubr.bf16.gmra.mrb[40].mxu0 %v7182_v33  ;;  %3855 = vmatprep.mubr.bf16.mxu1 %v7149_v23 }
 0x33c   :  { %3828 = vmatpush1.bf16.msra.mxu1 %v6174_v1  ;;  %3957 = vmatprep.mubr.bf16.mxu0 %v7149_v23  ;;  %v6195_v23 = vld [vmem:[#allocation8 + $0x208] ss:$48 sps:$4 sm:$0xff]   ;;  %v6251_v1 = vld [vmem:[#allocation8 + $0x56c] ss:$48 sps:$4 sm:$0xff]  }
 0x33d   :  { %3930 = vmatpush1.bf16.msra.mxu0 %v6177_v58  ;;  %3829 = vmatprep.subr.bf16.mxu1 %v6182_v60  ;;  %v6246_v58 = vld [vmem:[#allocation8 + $0x560] ss:$48 sps:$4 sm:$0xff]   ;;  %v6249_v60 = vld [vmem:[#allocation8 + $0x568] ss:$48 sps:$4 sm:$0xff]  }
 0x33e   :  { %3931 = vmatprep.subr.bf16.mxu0 %v6185_v15  ;;  %v6254_v15 = vld [vmem:[#allocation8 + $0x5c4] ss:$48 sps:$4 sm:$0xff]  }
 0x340   :  { %3830 = vmatpush1.bf16.msra.mxu1 %v6180_v20  ;;  %v6257_v20 = vld [vmem:[#allocation8 + $0x5cc] ss:$48 sps:$4 sm:$0xff]  }
 0x341   :  { %3932 = vmatpush1.bf16.msra.mxu0 %v6183_v0  ;;  %3831 = vmatprep.subr.bf16.mxu1 %v6188_v22  ;;  %v6252_v0 = vld [vmem:[#allocation8 + $0x5c0] ss:$48 sps:$4 sm:$0xff]   ;;  %v6255_v22 = vld [vmem:[#allocation8 + $0x5c8] ss:$48 sps:$4 sm:$0xff]  }
 0x342   :  { %3933 = vmatprep.subr.bf16.mxu0 %v6191_v46  ;;  %v6260_v46 = vld [vmem:[#allocation8 + $0x624] ss:$48 sps:$4 sm:$0xff]  }
 0x344   :  { %3832 = vmatpush1.bf16.msra.mxu1 %v6186_v14  ;;  %v6263_v14 = vld [vmem:[#allocation8 + $0x62c] ss:$48 sps:$4 sm:$0xff]  }
 0x345   :  { %3934 = vmatpush1.bf16.msra.mxu0 %v6189_v26  ;;  %3833 = vmatprep.subr.bf16.mxu1 %v6194_v17  ;;  %v6258_v26 = vld [vmem:[#allocation8 + $0x620] ss:$48 sps:$4 sm:$0xff]   ;;  %v6261_v17 = vld [vmem:[#allocation8 + $0x628] ss:$48 sps:$4 sm:$0xff]  }
 0x346   :  { %3935 = vmatprep.subr.bf16.mxu0 %v6197_v25  ;;  %v6266_v25 = vld [vmem:[#allocation8 + $0x684] ss:$48 sps:$4 sm:$0xff]  }
 0x348   :  { %3834 = vmatpush1.bf16.msra.mxu1 %v6192_v27  ;;  %v6269_v27 = vld [vmem:[#allocation8 + $0x68c] ss:$48 sps:$4 sm:$0xff]  }
 0x349   :  { %3936 = vmatpush1.bf16.msra.mxu0 %v6195_v23  ;;  %3835 = vmatprep.subr.bf16.mxu1 %v6200_v3  ;;  %v6264_v23 = vld [vmem:[#allocation8 + $0x680] ss:$48 sps:$4 sm:$0xff]   ;;  %v6267_v3 = vld [vmem:[#allocation8 + $0x688] ss:$48 sps:$4 sm:$0xff]  }
 0x34a   :  { %3937 = vmatprep.subr.bf16.mxu0 %v6203_v30  ;;  %v6272_v30 = vld [vmem:[#allocation8 + $0x6e4] ss:$48 sps:$4 sm:$0xff]  }
 0x34c   :  { %3836 = vmatpush1.bf16.msra.mxu1 %v6198_v29  ;;  %v6275_v29 = vld [vmem:[#allocation8 + $0x6ec] ss:$48 sps:$4 sm:$0xff]  }
 0x34d   :  { %3938 = vmatpush1.bf16.msra.mxu0 %v6201_v7  ;;  %3837 = vmatprep.subr.bf16.mxu1 %v6206_v32  ;;  %v6270_v7 = vld [vmem:[#allocation8 + $0x6e0] ss:$48 sps:$4 sm:$0xff]   ;;  %v6273_v32 = vld [vmem:[#allocation8 + $0x6e8] ss:$48 sps:$4 sm:$0xff]  }
 0x34e   :  { %3939 = vmatprep.subr.bf16.mxu0 %v6209_v31  ;;  %v6278_v31 = vld [vmem:[#allocation8 + $0x744] ss:$48 sps:$4 sm:$0xff]  }
 0x350   :  { %3838 = vmatpush1.bf16.msra.mxu1 %v6204_v36  ;;  %v6279_v36 = vld [vmem:[#allocation8 + $0x748] ss:$48 sps:$4 sm:$0xff]  }
 0x351   :  { %3940 = vmatpush1.bf16.msra.mxu0 %v6207_v34  ;;  %3839 = vmatprep.subr.bf16.mxu1 %v6212_v35  ;;  %v6284_v34 = vld [vmem:[#allocation8 + $0x7a4] ss:$48 sps:$4 sm:$0xff]   ;;  %v6287_v35 = vld [vmem:[#allocation8 + $0x7ac] ss:$48 sps:$4 sm:$0xff]  }
 0x352   :  { %3941 = vmatprep.subr.bf16.mxu0 %v6215_v37  ;;  %v6282_v37 = vld [vmem:[#allocation8 + $0x7a0] ss:$48 sps:$4 sm:$0xff]  }
 0x354   :  { %3840 = vmatpush1.bf16.msra.mxu1 %v6210_v18  ;;  %v6285_v18 = vld [vmem:[#allocation8 + $0x7a8] ss:$48 sps:$4 sm:$0xff]  }
 0x355   :  { %3942 = vmatpush1.bf16.msra.mxu0 %v6213_v13  ;;  %3841 = vmatprep.subr.bf16.mxu1 %v6218_v2  ;;  %v6290_v13 = vld [vmem:[#allocation8 + $0x804] ss:$48 sps:$4 sm:$0xff]  }
 0x356   :  { %3943 = vmatprep.subr.bf16.mxu0 %v6221_v28 }
 0x358   :  { %3842 = vmatpush1.bf16.msra.mxu1 %v6216_v38 }
 0x359   :  { %3944 = vmatpush1.bf16.msra.mxu0 %v6219_v43  ;;  %3843 = vmatprep.subr.bf16.mxu1 %v6224_v40  ;;  %v6288_v43 = vld [vmem:[#allocation8 + $0x800] ss:$48 sps:$4 sm:$0xff]   ;;  %v6291_v40 = vld [vmem:[#allocation8 + $0x808] ss:$48 sps:$4 sm:$0xff]  }
 0x35a   :  { %3945 = vmatprep.subr.bf16.mxu0 %v6227_v47 }
 0x35c   :  { %3844 = vmatpush1.bf16.msra.mxu1 %v6222_v44 }
 0x35d   :  { %3946 = vmatpush1.bf16.msra.mxu0 %v6225_v49  ;;  %3845 = vmatprep.subr.bf16.mxu1 %v6230_v42  ;;  %v6296_v49 = vld [vmem:[#allocation8 + $0x864] ss:$48 sps:$4 sm:$0xff]  }
 0x35e   :  { %3947 = vmatprep.subr.bf16.mxu0 %v6233_v39 }
 0x360   :  { %3846 = vmatpush1.bf16.msra.mxu1 %v6228_v50  ;;  %v6299_v50 = vld [vmem:[#allocation8 + $0x86c] ss:$48 sps:$4 sm:$0xff]  }
 0x361   :  { %3948 = vmatpush1.bf16.msra.mxu0 %v6231_v52  ;;  %3847 = vmatprep.subr.bf16.mxu1 %v6236_v8  ;;  %v6294_v52 = vld [vmem:[#allocation8 + $0x860] ss:$48 sps:$4 sm:$0xff]   ;;  %v6297_v8 = vld [vmem:[#allocation8 + $0x868] ss:$48 sps:$4 sm:$0xff]  }
 0x362   :  { %3949 = vmatprep.subr.bf16.mxu0 %v6239_v51  ;;  %v6302_v51 = vld [vmem:[#allocation8 + $0x8c4] ss:$48 sps:$4 sm:$0xff]  }
 0x364   :  { %3848 = vmatpush1.bf16.msra.mxu1 %v6234_v54  ;;  %v6305_v54 = vld [vmem:[#allocation8 + $0x8cc] ss:$48 sps:$4 sm:$0xff]  }
 0x365   :  { %3950 = vmatpush1.bf16.msra.mxu0 %v6237_v59  ;;  %3849 = vmatprep.subr.bf16.mxu1 %v6242_v53 }
 0x366   :  { %3951 = vmatprep.subr.bf16.mxu0 %v6245_v61 }
 0x368   :  { %3850 = vmatpush1.bf16.msra.mxu1 %v6240_v62 }
 0x369   :  { %3952 = vmatpush1.bf16.msra.mxu0 %v6243_v55  ;;  %3851 = vmatprep.subr.bf16.mxu1 %v6248_v63  ;;  %v6300_v55 = vld [vmem:[#allocation8 + $0x8c0] ss:$48 sps:$4 sm:$0xff]   ;;  %v6303_v63 = vld [vmem:[#allocation8 + $0x8c8] ss:$48 sps:$4 sm:$0xff]  }
 0x36a   :  { %3953 = vmatprep.subr.bf16.mxu0 %v6251_v1 }
 0x36c   :  { %3852 = vmatpush1.bf16.msra.mxu1 %v6246_v58 }
 0x36d   :  { %3954 = vmatpush1.bf16.msra.mxu0 %v6249_v60  ;;  %3853 = vmatprep.subr.bf16.mxu1 %v6254_v15  ;;  %v6308_v60 = vld [vmem:[#allocation8 + $0x924] ss:$48 sps:$4 sm:$0xff]  }
 0x36e   :  { %3955 = vmatprep.subr.bf16.mxu0 %v6257_v20 }
 0x370   :  { %3854 = vmatpush1.bf16.msra.mxu1 %v6252_v0  ;;  %v6311_v0 = vld [vmem:[#allocation8 + $0x92c] ss:$48 sps:$4 sm:$0xff]  }
 0x371   :  { %3956 = vmatpush1.bf16.msra.mxu0 %v6255_v22  ;;  %3874 = vmatprep.subr.bf16.mxu1 %v6260_v46  ;;  %v6306_v22 = vld [vmem:[#allocation8 + $0x920] ss:$48 sps:$4 sm:$0xff]   ;;  %v6309_v46 = vld [vmem:[#allocation8 + $0x928] ss:$48 sps:$4 sm:$0xff]  }
 0x372   :  { %3976 = vmatprep.subr.bf16.mxu0 %v6263_v14  ;;  %v6314_v14 = vld [vmem:[#allocation8 + $0x984] ss:$48 sps:$4 sm:$0xff]  }
 0x373   :  { %3856 = vmatmul.mubr.bf16.vlgmr.msra.gmra.mrb[40].mxu1 %v7143_v41 }
 0x374   :  { %3958 = vmatmul.mubr.bf16.vlgmr.msra.gmra.mrb[44].mxu0 %v7143_v41  ;;  %3865 = vmatprep.mubr.bf16.mxu1 %v7162_v45  ;;  %v6281_v41 = vld [vmem:[#allocation8 + $0x74c] ss:$48 sps:$4 sm:$0xff]  }
 0x375   :  { %3875 = vmatpush1.bf16.msra.mxu1 %v6258_v26  ;;  %3967 = vmatprep.mubr.bf16.mxu0 %v7162_v45  ;;  %v6276_v45 = vld [vmem:[#allocation8 + $0x740] ss:$48 sps:$4 sm:$0xff]   ;;  %v6317_v26 = vld [vmem:[#allocation8 + $0x98c] ss:$48 sps:$4 sm:$0xff]  }
 0x376   :  { %3977 = vmatpush1.bf16.msra.mxu0 %v6261_v17  ;;  %3876 = vmatprep.subr.bf16.mxu1 %v6266_v25  ;;  %v6312_v17 = vld [vmem:[#allocation8 + $0x980] ss:$48 sps:$4 sm:$0xff]   ;;  %v6315_v25 = vld [vmem:[#allocation8 + $0x988] ss:$48 sps:$4 sm:$0xff]  }
 0x377   :  { %3978 = vmatprep.subr.bf16.mxu0 %v6269_v27  ;;  %v6320_v27 = vld [vmem:[#allocation8 + $0x9e4] ss:$48 sps:$4 sm:$0xff]  }
 0x379   :  { %3877 = vmatpush1.bf16.msra.mxu1 %v6264_v23  ;;  %v6323_v23 = vld [vmem:[#allocation8 + $0x9ec] ss:$48 sps:$4 sm:$0xff]  }
 0x37a   :  { %3979 = vmatpush1.bf16.msra.mxu0 %v6267_v3  ;;  %3878 = vmatprep.subr.bf16.mxu1 %v6272_v30  ;;  %v6318_v3 = vld [vmem:[#allocation8 + $0x9e0] ss:$48 sps:$4 sm:$0xff]   ;;  %v6321_v30 = vld [vmem:[#allocation8 + $0x9e8] ss:$48 sps:$4 sm:$0xff]  }
 0x37b   :  { %3866 = vmatmul.mubr.bf16.gmra.mrb[44].mxu1 %v7166_v56  ;;  %3980 = vmatprep.subr.bf16.mxu0 %v6275_v29  ;;  %v6326_v29 = vld [vmem:[#allocation8 + $0xa44] ss:$48 sps:$4 sm:$0xff]  }
 0x37c   :  { %3968 = vmatmul.mubr.bf16.gmra.mrb[48].mxu0 %v7166_v56  ;;  %3906 = vmatprep.mubr.bf16.mxu1 %v7154_v48  ;;  %v6293_v56 = vld [vmem:[#allocation8 + $0x80c] ss:$48 sps:$4 sm:$0xff]  }
 0x37d   :  { %3879 = vmatpush1.bf16.msra.mxu1 %v6270_v7  ;;  %4008 = vmatprep.mubr.bf16.mxu0 %v7154_v48  ;;  %v6329_v7 = vld [vmem:[#allocation8 + $0xa4c] ss:$48 sps:$4 sm:$0xff]  }
 0x37e   :  { %3981 = vmatpush1.bf16.msra.mxu0 %v6273_v32  ;;  %3880 = vmatprep.subr.bf16.mxu1 %v6278_v31  ;;  %v6324_v32 = vld [vmem:[#allocation8 + $0xa40] ss:$48 sps:$4 sm:$0xff]   ;;  %v6327_v31 = vld [vmem:[#allocation8 + $0xa48] ss:$48 sps:$4 sm:$0xff]  }
 0x37f   :  { %3982 = vmatprep.subr.bf16.mxu0 %v6281_v41  ;;  %v6332_v41 = vld [vmem:[#allocation8 + $0xaa4] ss:$48 sps:$4 sm:$0xff]  }
 0x381   :  { %3881 = vmatpush1.bf16.msra.mxu1 %v6276_v45  ;;  %v6335_v45 = vld [vmem:[#allocation8 + $0xaac] ss:$48 sps:$4 sm:$0xff]  }
 0x382   :  { %3983 = vmatpush1.bf16.msra.mxu0 %v6279_v36  ;;  %3882 = vmatprep.subr.bf16.mxu1 %v6284_v34  ;;  %v6330_v36 = vld [vmem:[#allocation8 + $0xaa0] ss:$48 sps:$4 sm:$0xff]   ;;  %v6333_v34 = vld [vmem:[#allocation8 + $0xaa8] ss:$48 sps:$4 sm:$0xff]  }
 0x383   :  { %3984 = vmatprep.subr.bf16.mxu0 %v6287_v35  ;;  %v6338_v35 = vld [vmem:[#allocation8 + $0xb04] ss:$48 sps:$4 sm:$0xff]  }
 0x384   :  { %v7212_v2 = vpop.f32.mrb[24].mxu1  ;;  %v7214_v28 = vpop.f32.mrb[28].mxu0 }
 0x385   :  { %3883 = vmatpush1.bf16.msra.mxu1 %v6282_v37  ;;  %v7216_v48 = vpop.f32.mrb[25].mxu1  ;;  %v7218_v38 = vpop.f32.mrb[29].mxu0  ;;  %v6341_v37 = vld [vmem:[#allocation8 + $0xb0c] ss:$48 sps:$4 sm:$0xff]  }
 0x386   :  { %3985 = vmatpush1.bf16.msra.mxu0 %v6285_v18  ;;  %3884 = vmatprep.subr.bf16.mxu1 %v6290_v13  ;;  %v7220_v47 = vpop.f32.mrb[26].mxu1  ;;  %v7222_v44 = vpop.f32.mrb[30].mxu0  ;;  %v6336_v18 = vld [vmem:[#allocation8 + $0xb00] ss:$48 sps:$4 sm:$0xff]   ;;  %v6339_v13 = vld [vmem:[#allocation8 + $0xb08] ss:$48 sps:$4 sm:$0xff]  }
 0x387   :  { %3986 = vmatprep.subr.bf16.mxu0 %v6293_v56  ;;  %v7224_v42 = vpop.f32.mrb[27].mxu1  ;;  %v7226_v39 = vpop.f32.mrb[31].mxu0  ;;  %v6344_v56 = vld [vmem:[#allocation8 + $0xb64] ss:$48 sps:$4 sm:$0xff]  }
 0x389   :  { %3885 = vmatpush1.bf16.msra.mxu1 %v6288_v43  ;;  %v6347_v43 = vld [vmem:[#allocation8 + $0xb6c] ss:$48 sps:$4 sm:$0xff]  }
 0x38a   :  { %3987 = vmatpush1.bf16.msra.mxu0 %v6291_v40  ;;  %3886 = vmatprep.subr.bf16.mxu1 %v6296_v49  ;;  %v6342_v40 = vld [vmem:[#allocation8 + $0xb60] ss:$48 sps:$4 sm:$0xff]   ;;  %v6345_v49 = vld [vmem:[#allocation8 + $0xb68] ss:$48 sps:$4 sm:$0xff]  }
 0x38b   :  { %3988 = vmatprep.subr.bf16.mxu0 %v6299_v50  ;;  %v6350_v50 = vld [vmem:[#allocation8 + $0xbc4] ss:$48 sps:$4 sm:$0xff]  }
 0x38c   :  { %v7228_v59 = vpop.f32.mrb[28].mxu1  ;;  %v7230_v53 = vpop.f32.mrb[32].mxu0 }
 0x38d   :  { %3887 = vmatpush1.bf16.msra.mxu1 %v6294_v52  ;;  %v7232_v61 = vpop.f32.mrb[29].mxu1  ;;  %v7234_v62 = vpop.f32.mrb[33].mxu0  ;;  %v6353_v52 = vld [vmem:[#allocation8 + $0xbcc] ss:$48 sps:$4 sm:$0xff]  }
 0x38e   :  { %3989 = vmatpush1.bf16.msra.mxu0 %v6297_v8  ;;  %3888 = vmatprep.subr.bf16.mxu1 %v6302_v51  ;;  %v3514_v1 = vpop.f32.mrb[30].mxu1  ;;  %v3616_v58 = vpop.f32.mrb[34].mxu0  ;;  %v6348_v8 = vld [vmem:[#allocation8 + $0xbc0] ss:$48 sps:$4 sm:$0xff]   ;;  %v6351_v51 = vld [vmem:[#allocation8 + $0xbc8] ss:$48 sps:$4 sm:$0xff]  }
 0x38f   :  { %3990 = vmatprep.subr.bf16.mxu0 %v6305_v54  ;;  %v3515_v15 = vpop.f32.mrb[31].mxu1  ;;  %v3617_v20 = vpop.f32.mrb[35].mxu0  ;;  %v1428_v54 = vld [vmem:[#allocation10 + $0x1] ss:$8 sm:$0xf] }
 0x391   :  { %3889 = vmatpush1.bf16.msra.mxu1 %v6300_v55  ;;  %v1429_v55 = vld [vmem:[#allocation10 + $0x1] ss:$8 sm:$0xf0] }
 0x392   :  { %3991 = vmatpush1.bf16.msra.mxu0 %v6303_v63  ;;  %3890 = vmatprep.subr.bf16.mxu1 %v6308_v60  ;;  %v7242_v63 = vor.u32 %v1429_v55, %v1428_v54 }
 0x393   :  { %3992 = vmatprep.subr.bf16.mxu0 %v6311_v0 }
 0x394   :  { %v1438_v1 = vrot.slane %v7242_v63, %v7042_v9  ;;  %v1446_v58 = vrot.slane %v7242_v63, %v7045_v10  ;;  %v1454_v54 = vrot.slane %v7242_v63, %v248_v6 }
 0x395   :  { %3891 = vmatpush1.bf16.msra.mxu1 %v6306_v22 }
 0x396   :  { %3993 = vmatpush1.bf16.msra.mxu0 %v6309_v46  ;;  %3892 = vmatprep.subr.bf16.mxu1 %v6314_v14  ;;  %v5595_v60 = vadd.f32 %v7212_v2, %v1438_v1  ;;  %v5597_v22 = vadd.f32 %v7220_v47, %v1438_v1  ;;  %v5603_v14 = vadd.f32 %v7222_v44, %v1446_v58 }
 0x397   :  { %3994 = vmatprep.subr.bf16.mxu0 %v6317_v26 }
 0x398   :  { %v5471_v0 = vmul.f32 -1.442695, %v5595_v60  ;;  %v5475_v2 = vmul.f32 -1.442695, %v5597_v22 }
 0x399   :  { %3893 = vmatpush1.bf16.msra.mxu1 %v6312_v17 }
 0x39a   :  { %3995 = vmatpush1.bf16.msra.mxu0 %v6315_v25  ;;  %3894 = vmatprep.subr.bf16.mxu1 %v6320_v27  ;;  %6530 = vpow2.f32 %v5471_v0 }
 0x39b   :  { %3996 = vmatprep.subr.bf16.mxu0 %v6323_v23 }
 0x39d   :  { %3895 = vmatpush1.bf16.msra.mxu1 %v6318_v3 }
 0x39e   :  { %3997 = vmatpush1.bf16.msra.mxu0 %v6321_v30  ;;  %3896 = vmatprep.subr.bf16.mxu1 %v6326_v29 }
 0x39f   :  { %3998 = vmatprep.subr.bf16.mxu0 %v6329_v7 }
 0x3a1   :  { %3897 = vmatpush1.bf16.msra.mxu1 %v6324_v32 }
 0x3a2   :  { %3999 = vmatpush1.bf16.msra.mxu0 %v6327_v31  ;;  %3898 = vmatprep.subr.bf16.mxu1 %v6332_v41 }
 0x3a3   :  { %4000 = vmatprep.subr.bf16.mxu0 %v6335_v45 }
 0x3a4   :  { %v6531_v29 = vpop.eup %6530 }
 0x3a5   :  { %3899 = vmatpush1.bf16.msra.mxu1 %v6330_v36  ;;  %v4063_v32 = vadd.f32 1.0, %v6531_v29 }
 0x3a6   :  { %4001 = vmatpush1.bf16.msra.mxu0 %v6333_v34  ;;  %3900 = vmatprep.subr.bf16.mxu1 %v6338_v35 }
 0x3a7   :  { %4002 = vmatprep.subr.bf16.mxu0 %v6341_v37 }
 0x3a9   :  { %3901 = vmatpush1.bf16.msra.mxu1 %v6336_v18 }
 0x3aa   :  { %4003 = vmatpush1.bf16.msra.mxu0 %v6339_v13  ;;  %3902 = vmatprep.subr.bf16.mxu1 %v6344_v56 }
 0x3ab   :  { %4004 = vmatprep.subr.bf16.mxu0 %v6347_v43 }
 0x3ad   :  { %3903 = vmatpush1.bf16.msra.mxu1 %v6342_v40 }
 0x3ae   :  { %4005 = vmatpush1.bf16.msra.mxu0 %v6345_v49  ;;  %3904 = vmatprep.subr.bf16.mxu1 %v6350_v50 }
 0x3af   :  { %4006 = vmatprep.subr.bf16.mxu0 %v6353_v52 }
 0x3b1   :  { %3905 = vmatpush1.bf16.msra.mxu1 %v6348_v8 }
 0x3b2   :  { %4007 = vmatpush1.bf16.msra.mxu0 %v6351_v51 }
 0x3b4   :  { %3907 = vmatmul.mubr.bf16.vlgmr.msra.gmra.mrb[40].mxu1 %v7146_v57 }
 0x3b5   :  { %4009 = vmatmul.mubr.bf16.vlgmr.msra.gmra.mrb[44].mxu0 %v7146_v57  ;;  %3916 = vmatprep.mubr.bf16.mxu1 %v7174_v19  ;;  %v1442_v57 = vrot.slane %v7242_v63, %v7048_v11 }
 0x3b6   :  { %4018 = vmatprep.mubr.bf16.mxu0 %v7174_v19  ;;  %v1450_v19 = vrot.slane %v7242_v63, %v7051_v12 }
 0x3b7   :  { %v5596_v15 = vadd.f32 %v7216_v48, %v1442_v57  ;;  %v5598_v17 = vadd.f32 %v7224_v42, %v1442_v57  ;;  %v5477_v48 = vmul.f32 -1.442695, %v5603_v14  ;;  %v5600_v47 = vadd.f32 %v7232_v61, %v1442_v57 }
 0x3b8   :  { %v5602_v20 = vadd.f32 %v7218_v38, %v1450_v19  ;;  %v5604_v27 = vadd.f32 %v7226_v39, %v1450_v19  ;;  %v5605_v38 = vadd.f32 %v7230_v53, %v1446_v58  ;;  %v5606_v3 = vadd.f32 %v7234_v62, %v1450_v19 }
 0x3b9   :  { %v5472_v26 = vmul.f32 -1.442695, %v5596_v15  ;;  %v5476_v23 = vmul.f32 -1.442695, %v5598_v17  ;;  %v5480_v30 = vmul.f32 -1.442695, %v5600_v47  ;;  %v1466_v57 = vrot.slane %v7242_v63, %v260_v24 }
 0x3ba   :  { %v5474_v25 = vmul.f32 -1.442695, %v5602_v20  ;;  %v5478_v44 = vmul.f32 -1.442695, %v5604_v27  ;;  %v5481_v39 = vmul.f32 -1.442695, %v5605_v38 }
 0x3bc   :  { %3917 = vmatmul.mubr.bf16.gmra.mrb[44].mxu1 %v7182_v33 }
 0x3bd   :  { %4019 = vmatmul.mubr.bf16.gmra.mrb[48].mxu0 %v7182_v33  ;;  %v5601_v33 = vadd.f32 %v7214_v28, %v1446_v58  ;;  %v5599_v28 = vadd.f32 %v7228_v59, %v1438_v1  ;;  %v5482_v59 = vmul.f32 -1.442695, %v5606_v3  ;;  %v1462_v1 = vrot.slane %v7242_v63, %v256_v16 }
 0x3be   :  { %v1458_v58 = vrot.slane %v7242_v63, %v252_v21 }
 0x3bf   :  { %v5473_v46 = vmul.f32 -1.442695, %v5601_v33  ;;  %v5479_v42 = vmul.f32 -1.442695, %v5599_v28 }
 0x3c1   :  { %6532 = vpow2.f32 %v5473_v46 }
 0x3c2   :  { %6534 = vpow2.f32 %v5472_v26 }
 0x3c3   :  { %6536 = vpow2.f32 %v5474_v25 }
 0x3c4   :  { %6538 = vpow2.f32 %v5475_v2 }
 0x3c5   :  { %6540 = vpow2.f32 %v5477_v48 }
 0x3c6   :  { %6542 = vpow2.f32 %v5476_v23 }
 0x3c7   :  { %6544 = vpow2.f32 %v5478_v44 }
 0x3c8   :  { %6546 = vpow2.f32 %v5479_v42 }
 0x3c9   :  { %6548 = vpow2.f32 %v5481_v39 }
 0x3ca   :  { %6550 = vpow2.f32 %v5480_v30 }
 0x3cb   :  { %v6533_v53 = vpop.eup %6532  ;;  %6552 = vpow2.f32 %v5482_v59 }
 0x3cc   :  { %v6535_v7 = vpop.eup %6534  ;;  %v4065_v41 = vadd.f32 1.0, %v6533_v53  ;;  %6554 = vrcp.f32 %v4063_v32 }
 0x3cd   :  { %v6537_v61 = vpop.eup %6536  ;;  %v4064_v45 = vadd.f32 1.0, %v6535_v7 }
 0x3ce   :  { %v6539_v31 = vpop.eup %6538  ;;  %v4066_v34 = vadd.f32 1.0, %v6537_v61  ;;  %6556 = vrcp.f32 %v4065_v41 }
 0x3cf   :  { %v6541_v62 = vpop.eup %6540  ;;  %v4067_v37 = vadd.f32 1.0, %v6539_v31  ;;  %6558 = vrcp.f32 %v4064_v45  ;;  %v6354_v45 = vld [vmem:[%s7590_s4 + $0x40] sm:$0xff]  }
 0x3d0   :  { %v6543_v36 = vpop.eup %6542  ;;  %v4069_v13 = vadd.f32 1.0, %v6541_v62  ;;  %6560 = vrcp.f32 %v4066_v34  ;;  %5531 = vmatprep.subr.bf16.mxu1 %v6354_v45  ;;  %v1432_v45 = vld [vmem:[#allocation10 + $0x41] ss:$8 sm:$0xf] }
 0x3d1   :  { %v6545_v35 = vpop.eup %6544  ;;  %v4068_v43 = vadd.f32 1.0, %v6543_v36  ;;  %6562 = vrcp.f32 %v4067_v37  ;;  %v6355_v36 = vld [vmem:[%s7590_s4 + $0xc0] sm:$0xff]  }
 0x3d2   :  { %v6547_v18 = vpop.eup %6546  ;;  %v4070_v49 = vadd.f32 1.0, %v6545_v35  ;;  %6564 = vrcp.f32 %v4069_v13  ;;  %v6356_v37 = vld [vmem:[%s7590_s4] sm:$0xff]   ;;  %5559 = vmatprep.subr.bf16.mxu0 %v6355_v36  ;;  %v1470_v36 = vrot.slane %v1432_v45, %v7042_v9 }
 0x3d3   :  { %v6549_v56 = vpop.eup %6548  ;;  %v4071_v52 = vadd.f32 1.0, %v6547_v18  ;;  %6566 = vrcp.f32 %v4068_v43  ;;  %v6357_v18 = vld [vmem:[%s7590_s4 + $0x80] sm:$0xff]   ;;  %5532 = vmatpush3.bf16.msra.mxu1 %v6356_v37  ;;  %v1482_v37 = vrot.slane %v1432_v45, %v7051_v12 }
 0x3d4   :  { %v6551_v40 = vpop.eup %6550  ;;  %v4073_v8 = vadd.f32 1.0, %v6549_v56  ;;  %6568 = vrcp.f32 %v4070_v49  ;;  %5560 = vmatpush3.bf16.msra.mxu0 %v6357_v18 }
 0x3d5   :  { %v6553_v50 = vpop.eup %6552  ;;  %v4072_v51 = vadd.f32 1.0, %v6551_v40  ;;  %6570 = vrcp.f32 %v4071_v52  ;;  %v6359_v52 = vld [vmem:[%s7590_s4 + $0xc8] sm:$0xff]  }
 0x3d6   :  { %v4074_v55 = vadd.f32 1.0, %v6553_v50  ;;  %6572 = vrcp.f32 %v4073_v8  ;;  %v6555_v60 = vpop.eup %6554  ;;  %v6358_v50 = vld [vmem:[%s7590_s4 + $0x48] sm:$0xff]   ;;  %5561 = vmatprep.subr.bf16.mxu0 %v6359_v52 }
 0x3d7   :  { %6574 = vrcp.f32 %v4072_v51  ;;  %5533 = vmatprep.subr.bf16.mxu1 %v6358_v50 }
 0x3d8   :  { %v6557_v20 = vpop.eup %6556  ;;  %6576 = vrcp.f32 %v4074_v55  ;;  %v6361_v55 = vld [vmem:[%s7590_s4 + $0x88] sm:$0xff]  }
 0x3d9   :  { %v6559_v14 = vpop.eup %6558  ;;  %5562 = vmatpush3.bf16.msra.mxu0 %v6361_v55 }
 0x3da   :  { %v6561_v24 = vpop.eup %6560 }
 0x3db   :  { %v6563_v2 = vpop.eup %6562 }
 0x3dc   :  { %v6565_v48 = vpop.eup %6564 }
 0x3dd   :  { %v6567_v23 = vpop.eup %6566 }
 0x3de   :  { %v6569_v47 = vpop.eup %6568 }
 0x3df   :  { %v6571_v3 = vpop.eup %6570 }
 0x3e0   :  { %v6573_v59 = vpop.eup %6572 }
 0x3e1   :  { %v6575_v32 = vpop.eup %6574 }
 0x3e2   :  { %v6577_v34 = vpop.eup %6576 }
 0x405   :  { %v3704_v19 = vpop.f32.mrb[32].mxu1 }
 0x406   :  { %v5607_v6 = vadd.f32 %v3704_v19, %v1454_v54  ;;  %v3806_v33 = vpop.f32.mrb[36].mxu0  ;;  %v3706_v15 = vpop.f32.mrb[33].mxu1 }
 0x407   :  { %v5613_v0 = vadd.f32 %v3806_v33, %v1462_v1  ;;  %v5608_v16 = vadd.f32 %v3706_v15, %v1458_v58  ;;  %v3808_v22 = vpop.f32.mrb[37].mxu0  ;;  %v3708_v46 = vpop.f32.mrb[34].mxu1  ;;  %v6362_v33 = vld [vmem:[%s7590_s4 + $0x50] sm:$0xff]  }
 0x408   :  { %6578 = vtanh.f32 %v5607_v6  ;;  %v5614_v21 = vadd.f32 %v3808_v22, %v1466_v57  ;;  %v5609_v26 = vadd.f32 %v3708_v46, %v1454_v54  ;;  %v3810_v17 = vpop.f32.mrb[38].mxu0  ;;  %v3710_v25 = vpop.f32.mrb[35].mxu1  ;;  %v6363_v15 = vld [vmem:[%s7590_s4 + $0xd0] sm:$0xff]  }
 0x409   :  { %6580 = vtanh.f32 %v5613_v0  ;;  %v5615_v63 = vadd.f32 %v3810_v17, %v1462_v1  ;;  %v3812_v27 = vpop.f32.mrb[39].mxu0  ;;  %v5610_v28 = vadd.f32 %v3710_v25, %v1458_v58  ;;  %v6365_v22 = vld [vmem:[%s7590_s4 + $0x90] sm:$0xff]   ;;  %5563 = vmatprep.subr.bf16.mxu0 %v6363_v15 }
 0x40a   :  { %6582 = vtanh.f32 %v5608_v16  ;;  %v5616_v38 = vadd.f32 %v3812_v27, %v1466_v57  ;;  %v6364_v16 = vld [vmem:[%s7590_s4 + $0x10] sm:$0xff]   ;;  %5564 = vmatpush3.bf16.msra.mxu0 %v6365_v22 }
 0x40b   :  { %6584 = vtanh.f32 %v5614_v21 }
 0x40c   :  { %6586 = vtanh.f32 %v5609_v26 }
 0x40d   :  { %6588 = vtanh.f32 %v5615_v63  ;;  %v3714_v44 = vpop.f32.mrb[36].mxu1  ;;  %v6367_v63 = vld [vmem:[%s7590_s4 + $0xd8] sm:$0xff]  }
 0x40e   :  { %6590 = vtanh.f32 %v5610_v28  ;;  %v5611_v42 = vadd.f32 %v3714_v44, %v1454_v54  ;;  %v3816_v39 = vpop.f32.mrb[40].mxu0  ;;  %v3716_v30 = vpop.f32.mrb[37].mxu1  ;;  %v6360_v54 = vld [vmem:[%s7590_s4 + $0x8] sm:$0xff]   ;;  %v6368_v28 = vld [vmem:[%s7590_s4 + $0x18] sm:$0xff]   ;;  %5565 = vmatprep.subr.bf16.mxu0 %v6367_v63  ;;  %v6372_v44 = vld [vmem:[%s7590_s4 + $0x20] sm:$0xff]  }
 0x40f   :  { %6592 = vtanh.f32 %v5616_v38  ;;  %v5617_v29 = vadd.f32 %v3816_v39, %v1462_v1  ;;  %v5612_v53 = vadd.f32 %v3716_v30, %v1458_v58  ;;  %v3818_v7 = vpop.f32.mrb[41].mxu0  ;;  %v3718_v61 = vpop.f32.mrb[38].mxu1  ;;  %5534 = vmatpush3.bf16.msra.mxu1 %v6360_v54  ;;  %v6375_v39 = vld [vmem:[%s7590_s4 + $0xe8] sm:$0xff]  }
 0x410   :  { %6594 = vtanh.f32 %v5611_v42  ;;  %v5618_v31 = vadd.f32 %v3818_v7, %v1466_v57  ;;  %v3820_v41 = vpop.f32.mrb[42].mxu0  ;;  %v3719_v62 = vpop.f32.mrb[39].mxu1  ;;  %5535 = vmatprep.subr.bf16.mxu1 %v6362_v33  ;;  %v6374_v42 = vld [vmem:[%s7590_s4 + $0x68] sm:$0xff]   ;;  %v6380_v7 = vld [vmem:[%s7590_s4 + $0x30] sm:$0xff]  }
 0x411   :  { %6596 = vtanh.f32 %v5617_v29  ;;  %v3821_v35 = vpop.f32.mrb[43].mxu0  ;;  %v6376_v30 = vld [vmem:[%s7590_s4 + $0x28] sm:$0xff]   ;;  %v6378_v29 = vld [vmem:[%s7590_s4 + $0x70] sm:$0xff]   ;;  %v6384_v41 = vld [vmem:[%s7590_s4 + $0x38] sm:$0xff]  }
 0x412   :  { %v6579_v13 = vpop.eup %6578  ;;  %6598 = vtanh.f32 %v5612_v53  ;;  %v6379_v53 = vld [vmem:[%s7590_s4 + $0xf0] sm:$0xff]   ;;  %v6385_v62 = vld [vmem:[%s7590_s4 + $0xb8] sm:$0xff]   ;;  %v1474_v35 = vrot.slane %v1432_v45, %v7048_v11 }
 0x413   :  { %v6581_v56 = vpop.eup %6580  ;;  %v7288_v43 = vmul.f32 %v6579_v13, %v6555_v60  ;;  %6600 = vtanh.f32 %v5618_v31  ;;  %5536 = vmatpush3.bf16.msra.mxu1 %v6364_v16  ;;  %v6381_v61 = vld [vmem:[%s7590_s4 + $0xb0] sm:$0xff]   ;;  %v6383_v31 = vld [vmem:[%s7590_s4 + $0xf8] sm:$0xff]  }
 0x414   :  { %v6583_v40 = vpop.eup %6582  ;;  %v7290_v49 = vmul.f32 %v6581_v56, %v6557_v20 }
 0x415   :  { %v6585_v8 = vpop.eup %6584  ;;  %v7298_v51 = vmul.f32 %v6583_v40, %v6559_v14  ;;  %6602 = vtanh.f32 %v7288_v43 }
 0x416   :  { %v6587_v1 = vpop.eup %6586  ;;  %v7306_v58 = vmul.f32 %v6585_v8, %v6561_v24  ;;  %v6366_v24 = vld [vmem:[%s7590_s4 + $0x58] sm:$0xff]   ;;  %6604 = vtanh.f32 %v7290_v49 }
 0x417   :  { %v6589_v57 = vpop.eup %6588  ;;  %v7308_v19 = vmul.f32 %v6587_v1, %v6563_v2  ;;  %5537 = vmatprep.subr.bf16.mxu1 %v6366_v24  ;;  %6606 = vtanh.f32 %v7298_v51 }
 0x418   :  { %v6591_v60 = vpop.eup %6590  ;;  %v7310_v6 = vmul.f32 %v6589_v57, %v6565_v48  ;;  %v6369_v48 = vld [vmem:[%s7590_s4 + $0x98] sm:$0xff]   ;;  %5538 = vmatpush3.bf16.msra.mxu1 %v6368_v28  ;;  %6608 = vtanh.f32 %v7306_v58 }
 0x419   :  { %v6593_v20 = vpop.eup %6592  ;;  %v7318_v0 = vmul.f32 %v6591_v60, %v6567_v23  ;;  %5566 = vmatpush3.bf16.msra.mxu0 %v6369_v48  ;;  %v6370_v23 = vld [vmem:[%s7590_s4 + $0x60] sm:$0xff]   ;;  %6610 = vtanh.f32 %v7308_v19 }
 0x41a   :  { %v6595_v46 = vpop.eup %6594  ;;  %v7326_v14 = vmul.f32 %v6593_v20, %v6569_v47  ;;  %v6371_v47 = vld [vmem:[%s7590_s4 + $0xe0] sm:$0xff]   ;;  %5539 = vmatprep.subr.bf16.mxu1 %v6370_v23  ;;  %6612 = vtanh.f32 %v7310_v6 }
 0x41b   :  { %v6597_v21 = vpop.eup %6596  ;;  %v4191_v26 = vmul.f32 %v6595_v46, %v6571_v3  ;;  %v6373_v3 = vld [vmem:[%s7590_s4 + $0xa0] sm:$0xff]   ;;  %5567 = vmatprep.subr.bf16.mxu0 %v6371_v47  ;;  %6614 = vtanh.f32 %v7318_v0 }
 0x41c   :  { %v6599_v17 = vpop.eup %6598  ;;  %v4193_v25 = vmul.f32 %v6597_v21, %v6573_v59  ;;  %5540 = vmatpush3.bf16.msra.mxu1 %v6372_v44  ;;  %v6377_v59 = vld [vmem:[%s7590_s4 + $0xa8] sm:$0xff]   ;;  %6616 = vtanh.f32 %v7326_v14 }
 0x41d   :  { %v6601_v27 = vpop.eup %6600  ;;  %v7334_v2 = vmul.f32 %v6599_v17, %v6575_v32  ;;  %5568 = vmatpush3.bf16.msra.mxu0 %v6373_v3  ;;  %5541 = vmatprep.subr.bf16.mxu1 %v6374_v42  ;;  %v6382_v32 = vld [vmem:[%s7590_s4 + $0x78] sm:$0xff]   ;;  %6618 = vtanh.f32 %v4191_v26  ;;  %s6890_s4 = smov 10  }
 0x41e   :  { %v7342_v38 = vmul.f32 %v6601_v27, %v6577_v34  ;;  %5569 = vmatprep.subr.bf16.mxu0 %v6375_v39  ;;  %v1478_v34 = vrot.slane %v1432_v45, %v7045_v10  ;;  %6620 = vtanh.f32 %v4193_v25 }
 0x41f   :  { %v7404_v8 = vpop.eup %6602  ;;  %6622 = vtanh.f32 %v7334_v2 }
 0x420   :  { %5542 = vmatpush3.bf16.msra.mxu1 %v6376_v30  ;;  %v7407_v57 = vpop.eup %6604 }
 0x421   :  { %5570 = vmatpush3.bf16.msra.mxu0 %v6377_v59  ;;  %5543 = vmatprep.subr.bf16.mxu1 %v6378_v29  ;;  %v7409_v20 = vpop.eup %6606 }
 0x422   :  { %5571 = vmatprep.subr.bf16.mxu0 %v6379_v53  ;;  %v7411_v46 = vpop.eup %6608 }
 0x423   :  { %v7413_v21 = vpop.eup %6610 }
 0x424   :  { %5544 = vmatpush3.bf16.msra.mxu1 %v6380_v7  ;;  %v7415_v17 = vpop.eup %6612 }
 0x425   :  { %5572 = vmatpush3.bf16.msra.mxu0 %v6381_v61  ;;  %5545 = vmatprep.subr.bf16.mxu1 %v6382_v32  ;;  %v7417_v63 = vpop.eup %6614 }
 0x426   :  { %5573 = vmatprep.subr.bf16.mxu0 %v6383_v31  ;;  %v7419_v48 = vpop.eup %6616 }
 0x427   :  { %v7421_v42 = vpop.eup %6618 }
 0x428   :  { %5546 = vmatpush3.bf16.msra.mxu1 %v6384_v41  ;;  %v7423_v53 = vpop.eup %6620 }
 0x429   :  { %5574 = vmatpush3.bf16.msra.mxu0 %v6385_v62  ;;  %v7425_v31 = vpop.eup %6622 }
 0x487   :  { %v3908_v18 = vpop.f32.mrb[40].mxu1 }
 0x488   :  { %v5619_v13 = vadd.f32 %v3908_v18, %v1470_v36  ;;  %v4010_v56 = vpop.f32.mrb[44].mxu0  ;;  %v3910_v43 = vpop.f32.mrb[41].mxu1 }
 0x489   :  { %v5625_v40 = vadd.f32 %v4010_v56, %v1478_v34  ;;  %v5620_v49 = vadd.f32 %v3910_v43, %v1474_v35  ;;  %v4012_v50 = vpop.f32.mrb[45].mxu0  ;;  %v3912_v52 = vpop.f32.mrb[42].mxu1 }
 0x48a   :  { %v5483_v51 = vmul.f32 -1.442695, %v5619_v13  ;;  %v5626_v54 = vadd.f32 %v4012_v50, %v1482_v37  ;;  %v5621_v55 = vadd.f32 %v3912_v52, %v1470_v36  ;;  %v4014_v1 = vpop.f32.mrb[46].mxu0  ;;  %v3914_v58 = vpop.f32.mrb[43].mxu1 }
 0x48b   :  { %v5485_v19 = vmul.f32 -1.442695, %v5625_v40  ;;  %v5484_v60 = vmul.f32 -1.442695, %v5620_v49  ;;  %v5627_v6 = vadd.f32 %v4014_v1, %v1478_v34  ;;  %v5622_v33 = vadd.f32 %v3914_v58, %v1474_v35  ;;  %v4016_v15 = vpop.f32.mrb[47].mxu0 }
 0x48c   :  { %6624 = vpow2.f32 %v5483_v51  ;;  %v5486_v0 = vmul.f32 -1.442695, %v5626_v54  ;;  %v5487_v16 = vmul.f32 -1.442695, %v5621_v55  ;;  %v5628_v22 = vadd.f32 %v4016_v15, %v1482_v37 }
 0x48d   :  { %6626 = vpow2.f32 %v5485_v19  ;;  %v5489_v14 = vmul.f32 -1.442695, %v5627_v6  ;;  %v5488_v26 = vmul.f32 -1.442695, %v5622_v33 }
 0x48e   :  { %6628 = vpow2.f32 %v5484_v60  ;;  %v5490_v25 = vmul.f32 -1.442695, %v5628_v22  ;;  %v4221_v58 = vld [vmem:[#allocation10 + $0x2] ss:$8 sm:$0xf] }
 0x48f   :  { %6630 = vpow2.f32 %v5486_v0  ;;  %v3918_v24 = vpop.f32.mrb[44].mxu1  ;;  %v4223_v6 = vld [vmem:[#allocation10 + $0x22] ss:$8 sm:$0xf]  ;;  %v7431_v22 = vrot.slane %v4221_v58, %v7042_v9 }
 0x490   :  { %6632 = vpow2.f32 %v5487_v16  ;;  %v5623_v27 = vadd.f32 %v3918_v24, %v1470_v36  ;;  %v4020_v2 = vpop.f32.mrb[48].mxu0  ;;  %v3920_v28 = vpop.f32.mrb[45].mxu1 }
 0x491   :  { %6634 = vpow2.f32 %v5489_v14  ;;  %v5629_v23 = vadd.f32 %v4020_v2, %v1478_v34  ;;  %v5624_v47 = vadd.f32 %v3920_v28, %v1474_v35  ;;  %v4022_v44 = vpop.f32.mrb[49].mxu0  ;;  %v3922_v3 = vpop.f32.mrb[46].mxu1  ;;  %v7441_v2 = vrot.slane %v4221_v58, %v7048_v11 }
 0x492   :  { %6636 = vpow2.f32 %v5488_v26  ;;  %v5491_v39 = vmul.f32 -1.442695, %v5623_v27  ;;  %v5630_v30 = vadd.f32 %v4022_v44, %v1482_v37  ;;  %v4024_v59 = vpop.f32.mrb[50].mxu0  ;;  %v3923_v29 = vpop.f32.mrb[47].mxu1  ;;  %v7434_v26 = vrot.slane %v4221_v58, %v7045_v10 }
 0x493   :  { %6638 = vpow2.f32 %v5490_v25  ;;  %v5493_v7 = vmul.f32 -1.442695, %v5629_v23  ;;  %v5492_v61 = vmul.f32 -1.442695, %v5624_v47  ;;  %v4025_v32 = vpop.f32.mrb[51].mxu0  ;;  %v7437_v25 = vrot.slane %v4223_v6, %v7042_v9 }
 0x494   :  { %6640 = vpow2.f32 %v5491_v39  ;;  %v5494_v41 = vmul.f32 -1.442695, %v5630_v30  ;;  %v7444_v28 = vrot.slane %v4223_v6, %v7045_v10  ;;  %v7448_v44 = vrot.slane %v4223_v6, %v7048_v11 }
 0x495   :  { %6642 = vpow2.f32 %v5493_v7  ;;  %v7452_v39 = vrot.slane %v4221_v58, %v7051_v12  ;;  %v7456_v30 = vrot.slane %v4223_v6, %v7051_v12 }
 0x496   :  { %v6625_v62 = vpop.eup %6624  ;;  %6644 = vpow2.f32 %v5492_v61 }
 0x497   :  { %v6627_v45 = vpop.eup %6626  ;;  %v4147_v36 = vadd.f32 1.0, %v6625_v62  ;;  %6646 = vpow2.f32 %v5494_v41 }
 0x498   :  { %v6629_v34 = vpop.eup %6628  ;;  %6648 = vtanh.f32 %v7342_v38  ;;  %v4149_v35 = vadd.f32 1.0, %v6627_v45 }
 0x499   :  { %v6631_v37 = vpop.eup %6630  ;;  %6650 = vrcp.f32 %v4147_v36  ;;  %v4148_v18 = vadd.f32 1.0, %v6629_v34 }
 0x49a   :  { %v6633_v13 = vpop.eup %6632  ;;  %6652 = vrcp.f32 %v4149_v35  ;;  %v4150_v56 = vadd.f32 1.0, %v6631_v37 }
 0x49b   :  { %v6635_v43 = vpop.eup %6634  ;;  %6654 = vrcp.f32 %v4148_v18  ;;  %v4151_v40 = vadd.f32 1.0, %v6633_v13 }
 0x49c   :  { %v6637_v49 = vpop.eup %6636  ;;  %6656 = vrcp.f32 %v4150_v56  ;;  %v4153_v50 = vadd.f32 1.0, %v6635_v43 }
 0x49d   :  { %v6639_v52 = vpop.eup %6638  ;;  %6658 = vrcp.f32 %v4151_v40  ;;  %v4152_v51 = vadd.f32 1.0, %v6637_v49 }
 0x49e   :  { %v6641_v54 = vpop.eup %6640  ;;  %6660 = vrcp.f32 %v4153_v50  ;;  %v4154_v55 = vadd.f32 1.0, %v6639_v52 }
 0x49f   :  { %v6643_v38 = vpop.eup %6642  ;;  %6662 = vrcp.f32 %v4152_v51  ;;  %v4155_v1 = vadd.f32 1.0, %v6641_v54 }
 0x4a0   :  { %v6645_v19 = vpop.eup %6644  ;;  %6664 = vrcp.f32 %v4154_v55  ;;  %v4157_v60 = vadd.f32 1.0, %v6643_v38 }
 0x4a1   :  { %v6647_v33 = vpop.eup %6646  ;;  %6666 = vrcp.f32 %v4155_v1  ;;  %v4156_v15 = vadd.f32 1.0, %v6645_v19 }
 0x4a2   :  { %v7428_v0 = vpop.eup %6648  ;;  %6668 = vrcp.f32 %v4157_v60  ;;  %v4158_v16 = vadd.f32 1.0, %v6647_v33 }
 0x4a3   :  { %v6651_v14 = vpop.eup %6650  ;;  %6670 = vrcp.f32 %v4156_v15 }
 0x4a4   :  { %v6653_v24 = vpop.eup %6652  ;;  %v4207_v27 = vmul.f32 %v6651_v14, %v7404_v8  ;;  %6672 = vrcp.f32 %v4158_v16 }
 0x4a5   :  { %v6655_v23 = vpop.eup %6654  ;;  %v4209_v47 = vmul.f32 %v6653_v24, %v7407_v57 }
 0x4a6   :  { %v6657_v3 = vpop.eup %6656  ;;  %v4208_v9 = vmul.f32 %v6655_v23, %v7409_v20  ;;  %v4245_v8 = vmul.f32 %v7431_v22, %v4207_v27  ;;  %v4371_v29 = vmax.f32 %v4207_v27, 0.0  ;;  %v7460_v57 = vmul.f32 %v7437_v25, %v4207_v27 }
 0x4a7   :  { %v6659_v59 = vpop.eup %6658  ;;  %v4210_v10 = vmul.f32 %v6657_v3, %v7411_v46  ;;  %v4373_v7 = vmax.f32 %v4209_v47, 0.0  ;;  %v4247_v32 = vmul.f32 %v7434_v26, %v4209_v47  ;;  %v7466_v41 = vmul.f32 %v7444_v28, %v4209_v47 }
 0x4a8   :  { %v6661_v11 = vpop.eup %6660  ;;  %v4211_v61 = vmul.f32 %v6659_v59, %v7413_v21  ;;  %v4246_v20 = vmul.f32 %v7441_v2, %v4208_v9  ;;  %v4372_v45 = vmax.f32 %v4208_v9, 0.0  ;;  %v4320_v36 = vmul.f32 %v7448_v44, %v4208_v9 }
 0x4a9   :  { %v6663_v12 = vpop.eup %6662  ;;  %v4213_v62 = vmul.f32 %v6661_v11, %v7415_v17  ;;  %v4374_v46 = vmax.f32 %v4210_v10, 0.0  ;;  %v4248_v40 = vmul.f32 %v7452_v39, %v4210_v10 }
 0x4aa   :  { %v6665_v34 = vpop.eup %6664  ;;  %v4212_v35 = vmul.f32 %v6663_v12, %v7417_v63  ;;  %v4375_v37 = vmax.f32 %v4211_v61, 0.0  ;;  %v4257_v21 = vadd.f32 %v4246_v20, %v4245_v8  ;;  %v4249_v18 = vmul.f32 %v7431_v22, %v4211_v61 }
 0x4ab   :  { %v6667_v13 = vpop.eup %6666  ;;  %v4214_v56 = vmul.f32 %v6665_v34, %v7419_v48  ;;  %v4377_v43 = vmax.f32 %v4213_v62, 0.0  ;;  %v4251_v17 = vmul.f32 %v7434_v26, %v4213_v62  ;;  %v4323_v58 = vmul.f32 %v7437_v25, %v4211_v61 }
 0x4ac   :  { %v6669_v49 = vpop.eup %6668  ;;  %v4376_v50 = vmax.f32 %v4212_v35, 0.0  ;;  %v4383_v52 = vpack.c.bf16 %v4375_v37, %v4371_v29  ;;  %v4258_v51 = vadd.f32 %v4257_v21, %v4247_v32  ;;  %v4250_v54 = vmul.f32 %v7441_v2, %v4212_v35 }
 0x4ad   :  { %v6671_v55 = vpop.eup %6670  ;;  %v4378_v63 = vmax.f32 %v4214_v56, 0.0  ;;  %v4385_v38 = vpack.c.bf16 %v4377_v43, %v4373_v7  ;;  %v4215_v1 = vmul.f32 %v6667_v13, %v7421_v42  ;;  %v4217_v24 = vmul.f32 %v6669_v49, %v7423_v53  ;;  %v7504_v49 = vld [vmem:[#allocation10 + $0x3] ss:$0 sm:$0xff] }
 0x4ae   :  { %v6673_v19 = vpop.eup %6672  ;;  %v4384_v48 = vpack.c.bf16 %v4376_v50, %v4372_v45  ;;  %v4259_v60 = vadd.f32 %v4258_v51, %v4248_v40  ;;  %v4216_v6 = vmul.f32 %v6671_v55, %v7425_v31  ;;  %v4262_v33 = vadd.f32 %v4250_v54, %v4249_v18 }
 0x4af   :  { %v4386_v15 = vpack.c.bf16 %v4378_v63, %v4374_v46  ;;  %v4218_v16 = vmul.f32 %v6673_v19, %v7428_v0  ;;  %v4379_v14 = vmax.f32 %v4215_v1, 0.0  ;;  %v4252_v23 = vmul.f32 %v7452_v39, %v4214_v56 }
 0x4b0   :  { %4679 = vmatprep.mubr.bf16.mxu1 %v4384_v48  ;;  %4260 = vadd.xlane.f32.xlu0 %v4259_v60  ;;  %v4380_v27 = vmax.f32 %v4216_v6, 0.0  ;;  %v4263_v42 = vadd.f32 %v4262_v33, %v4251_v17  ;;  %v4324_v47 = vmul.f32 %v7448_v44, %v4212_v35  ;;  %v4325_v31 = vmul.f32 %v7444_v28, %v4213_v62 }
 0x4b1   :  { %4727 = vmatprep.mubr.bf16.mxu0 %v4386_v15  ;;  %4680 = vmatmul.mubr.bf16.vlgmr.msra.gmra.mrb[48].mxu1 %v4383_v52  ;;  %v4382_v3 = vmax.f32 %v4218_v16, 0.0  ;;  %v4387_v9 = vpack.c.bf16 %v4379_v14, %v4379_v14  ;;  %v4322_v8 = vmul.f32 %v7456_v30, %v4210_v10  ;;  %v4253_v29 = vmul.f32 %v7431_v22, %v4215_v1 }
 0x4b2   :  { %4728 = vmatmul.mubr.bf16.vlgmr.msra.gmra.mrb[52].mxu0 %v4385_v38  ;;  %v4388_v0 = vpack.c.bf16 %v4380_v27, %v4380_v27  ;;  %v4264_v59 = vadd.f32 %v4263_v42, %v4252_v23  ;;  %v4336_v53 = vadd.f32 %v4324_v47, %v4323_v58  ;;  %v4381_v11 = vmax.f32 %v4217_v24, 0.0 }
 0x4b3   :  { %v4390_v7 = vpack.c.bf16 %v4382_v3, %v4382_v3  ;;  %v4254_v61 = vmul.f32 %v7441_v2, %v4216_v6  ;;  %v4255_v20 = vmul.f32 %v7434_v26, %v4217_v24  ;;  %v4326_v32 = vmul.f32 %v7456_v30, %v4214_v56 }
 0x4b4   :  { %4687 = vmatprep.mubr.bf16.mxu1 %v4388_v0  ;;  %4265 = vadd.xlane.f32.xlu0 %v4264_v59  ;;  %v4337_v12 = vadd.f32 %v4336_v53, %v4325_v31  ;;  %v4268_v62 = vsel %vm4267_vm2, %v4253_v29, 0.0  ;;  %v4331_v10 = vadd.f32 %v4320_v36, %v7460_v57  ;;  %v4256_v45 = vmul.f32 %v7452_v39, %v4218_v16 }
 0x4b5   :  { %4735 = vmatprep.mubr.bf16.mxu0 %v4390_v7  ;;  %v4269_v22 = vsel %vm4267_vm2, %v4254_v61, 0.0  ;;  %v4327_v46 = vmul.f32 %v7437_v25, %v4215_v1  ;;  %v4328_v2 = vmul.f32 %v7448_v44, %v4216_v6  ;;  %v4271_v35 = vsel %vm4267_vm2, %v4255_v20, 0.0 }
 0x4b6   :  { %v4338_v34 = vadd.f32 %v4337_v12, %v4326_v32  ;;  %v4270_v26 = vadd.f32 %v4269_v22, %v4268_v62  ;;  %v4332_v37 = vadd.f32 %v4331_v10, %v7466_v41  ;;  %v4329_v21 = vmul.f32 %v7444_v28, %v4217_v24 }
 0x4b7   :  { %v4330_v18 = vmul.f32 %v7456_v30, %v4218_v16  ;;  %v4341_v57 = vsel %vm4267_vm2, %v4327_v46, 0.0  ;;  %v4342_v39 = vsel %vm4267_vm2, %v4328_v2, 0.0  ;;  %v4389_v36 = vpack.c.bf16 %v4381_v11, %v4381_v11 }
 0x4b8   :  { %4339 = vadd.xlane.f32.xlu0 %v4338_v34  ;;  %v4272_v13 = vadd.f32 %v4271_v35, %v4270_v26  ;;  %v4333_v25 = vadd.f32 %v4332_v37, %v4322_v8  ;;  %v4343_v56 = vadd.f32 %v4342_v39, %v4341_v57  ;;  %v4273_v44 = vsel %vm4267_vm2, %v4256_v45, 0.0 }
 0x4b9   :  { %4688 = vmatmul.mubr.bf16.gmra.mrb[52].mxu1 %v4387_v9  ;;  %v4344_v43 = vsel %vm4267_vm2, %v4329_v21, 0.0  ;;  %v4346_v28 = vsel %vm4267_vm2, %v4330_v18, 0.0  ;;  %v6888_v17 = vmov 12   ;;  %v6889_v31 = vmov 13  }
 0x4ba   :  { %4736 = vmatmul.mubr.bf16.gmra.mrb[56].mxu0 %v4389_v36  ;;  %v4274_v41 = vadd.f32 %v4273_v44, %v4272_v13  ;;  %v4345_v40 = vadd.f32 %v4344_v43, %v4343_v56  ;;  %5700 = vset.pattern.permute.xlu0 %v6888_v17 }
 0x4bb   :  { %5701 = vset.pattern.permute.xlu1 %v6888_v17 }
 0x4bc   :  { %4275 = vadd.xlane.f32.xlu1 %v4274_v41  ;;  %v4347_v30 = vadd.f32 %v4346_v28, %v4345_v40 }
 0x4c0   :  { %4334 = vadd.xlane.f32.xlu1 %v4333_v25 }
 0x4c4   :  { %4348 = vadd.xlane.f32.xlu1 %v4347_v30 }
 0x53d   :  { %v4261_v50 = vpop.xlane.xlu0 %4260 }
 0x53e   :  { %v4277_v52 = vadd.f32 %v4261_v50, %v7504_v49 }
 0x540   :  { %6674 = vtanh.f32 %v4277_v52 }
 0x541   :  { %v4266_v51 = vpop.xlane.xlu0 %4265 }
 0x542   :  { %v4278_v54 = vadd.f32 %v4266_v51, %v7504_v49 }
 0x544   :  { %6676 = vtanh.f32 %v4278_v54 }
 0x545   :  { %v4340_v44 = vpop.xlane.xlu0 %4339 }
 0x546   :  { %v4351_v43 = vadd.f32 %v4340_v44, %v7504_v49 }
 0x549   :  { %v4276_v55 = vpop.xlane.xlu1 %4275 }
 0x54a   :  { %v6675_v63 = vpop.eup %6674  ;;  %v4279_v38 = vadd.f32 %v4276_v55, %v7504_v49 }
 0x54b   :  { %v4283_v1 = vmul.f32 1.442695, %v6675_v63 }
 0x54c   :  { %6678 = vtanh.f32 %v4279_v38 }
 0x54d   :  { %6680 = vpow2.f32 %v4283_v1  ;;  %v4335_v36 = vpop.xlane.xlu1 %4334 }
 0x54e   :  { %v6677_v58 = vpop.eup %6676  ;;  %v4350_v13 = vadd.f32 %v4335_v36, %v7504_v49 }
 0x54f   :  { %v4285_v19 = vmul.f32 1.442695, %v6677_v58 }
 0x551   :  { %6682 = vpow2.f32 %v4285_v19  ;;  %v4349_v25 = vpop.xlane.xlu1 %4348 }
 0x552   :  { %v4352_v56 = vadd.f32 %v4349_v25, %v7504_v49 }
 0x556   :  { %v6679_v48 = vpop.eup %6678 }
 0x557   :  { %v6681_v60 = vpop.eup %6680  ;;  %v4287_v6 = vmul.f32 1.442695, %v6679_v48 }
 0x558   :  { %v4289_v33 = vadd.f32 1e-10, %v6681_v60 }
 0x559   :  { %6684 = vpow2.f32 %v4287_v6 }
 0x55a   :  { %6686 = vrcp.f32 %v4289_v33 }
 0x55b   :  { %v6683_v15 = vpop.eup %6682 }
 0x55c   :  { %v4290_v16 = vadd.f32 1e-10, %v6683_v15 }
 0x55e   :  { %6688 = vrcp.f32 %v4290_v16 }
 0x563   :  { %v6685_v14 = vpop.eup %6684 }
 0x564   :  { %v6687_v24 = vpop.eup %6686  ;;  %v4291_v27 = vadd.f32 1e-10, %v6685_v14 }
 0x565   :  { %v4293_v23 = vmul.f32 %v6687_v24, %v6681_v60  ;;  %v4884_v24 = vld [vmem:[#allocation10] sm:$0xf0] }
 0x566   :  { %6690 = vrcp.f32 %v4291_v27  ;;  %v4885_v27 = vld [vmem:[#allocation10 + $0x60] sm:$0xff] }
 0x567   :  { %4745 = vperm.xlu0 %5700, %v4293_v23   ;;  %6692 = vtanh.f32 %v4350_v13  ;;  %v4808_v13 = vadd.s32 16, %v7037_v5 }
 0x568   :  { %v6689_v42 = vpop.eup %6688  ;;  %6694 = vtanh.f32 %v4352_v56 }
 0x569   :  { %v4295_v47 = vmul.f32 %v6689_v42, %v6683_v15  ;;  %6696 = vtanh.f32 %v4351_v43  ;;  %v4891_v42 = vrot.slane %v4884_v24, 4  ;;  %v4810_v43 = vand.u32 127, %v230_v4 }
 0x56b   :  { %4750 = vperm.xlu1 %5701, %v4295_v47   ;;  %5703 = vset.pattern.permute.xlu0 %v6889_v31  ;;  %v4892_v47 = vrot.slane %v4885_v27, 4 }
 0x570   :  { %v6691_v3 = vpop.eup %6690 }
 0x571   :  { %v4297_v9 = vmul.f32 %v6691_v3, %v6685_v14  ;;  %v6693_v41 = vpop.eup %6692 }
 0x572   :  { %v4356_v40 = vmul.f32 1.442695, %v6693_v41  ;;  %v6695_v28 = vpop.eup %6694 }
 0x573   :  { %4755 = vperm.xlu1 %5701, %v4297_v9   ;;  %v4360_v30 = vmul.f32 1.442695, %v6695_v28  ;;  %v6697_v17 = vpop.eup %6696 }
 0x574   :  { %6698 = vpow2.f32 %v4356_v40  ;;  %v4358_v50 = vmul.f32 1.442695, %v6697_v17  ;;  %v4813_v17 = vmul.u32 10, %v4808_v13 }
 0x575   :  { %6700 = vpow2.f32 %v4360_v30  ;;  %v4811_v30 = vmul.u32 10, %v7037_v5 }
 0x576   :  { %6702 = vpow2.f32 %v4358_v50 }
 0x577   :  { %5702 = vset.pattern.permute.xlu1 %v6889_v31  ;;  %v4893_v31 = vsel %vm4890_vm4, %v4891_v42, %v4892_v47 }
 0x57e   :  { %v6699_v51 = vpop.eup %6698 }
 0x57f   :  { %v4362_v63 = vadd.f32 1e-10, %v6699_v51  ;;  %v6701_v1 = vpop.eup %6700 }
 0x580   :  { %v4364_v60 = vadd.f32 1e-10, %v6701_v1  ;;  %v6703_v33 = vpop.eup %6702 }
 0x581   :  { %6704 = vrcp.f32 %v4362_v63  ;;  %v4363_v15 = vadd.f32 1e-10, %v6703_v33 }
 0x582   :  { %6706 = vrcp.f32 %v4364_v60 }
 0x583   :  { %6708 = vrcp.f32 %v4363_v15 }
 0x584   :  { %v5547_v8 = vpop.f32.mrb[48].mxu1 }
 0x585   :  { %v5575_v0 = vpop.f32.mrb[52].mxu0  ;;  %v5548_v59 = vpop.f32.mrb[49].mxu1 }
 0x586   :  { %v5549_v53 = vadd.f32 %v5548_v59, %v5547_v8  ;;  %v5576_v29 = vpop.f32.mrb[53].mxu0  ;;  %v5550_v7 = vpop.f32.mrb[50].mxu1 }
 0x587   :  { %v5577_v11 = vadd.f32 %v5576_v29, %v5575_v0  ;;  %v5578_v61 = vpop.f32.mrb[54].mxu0  ;;  %v5551_v20 = vpop.f32.mrb[51].mxu1 }
 0x588   :  { %v5552_v32 = vadd.f32 %v5551_v20, %v5550_v7  ;;  %v5579_v12 = vpop.f32.mrb[55].mxu0  ;;  %v4886_v7 = vld [vmem:[#allocation10 + $0xc0] sm:$0x1f] }
 0x589   :  { %v5580_v62 = vadd.f32 %v5579_v12, %v5578_v61  ;;  %v7509_v10 = vadd.f32 %v5577_v11, %v5549_v53  ;;  %v4894_v11 = vrot.slane %v4886_v7, 4 }
 0x58b   :  { %v7511_v45 = vadd.f32 %v5580_v62, %v5552_v32  ;;  %v6705_v16 = vpop.eup %6704  ;;  %v4895_v61 = vsel %vm4890_vm4, %v4892_v47, %v4894_v11 }
 0x58c   :  { %v5553_v22 = vpop.f32.mrb[52].mxu1  ;;  %v4366_v14 = vmul.f32 %v6705_v16, %v6699_v51  ;;  %v6707_v23 = vpop.eup %6706 }
 0x58d   :  { %v5581_v46 = vpop.f32.mrb[56].mxu0  ;;  %v5554_v2 = vpop.f32.mrb[53].mxu1  ;;  %v4370_v3 = vmul.f32 %v6707_v23, %v6701_v1  ;;  %v4816_v1 = vadd.s32 %v4813_v17, %v4810_v43 }
 0x58e   :  { %v5555_v34 = vadd.f32 %v5554_v2, %v5553_v22  ;;  %v5582_v26 = vpop.f32.mrb[57].mxu0  ;;  %v5556_v35 = vpop.f32.mrb[54].mxu1 }
 0x58f   :  { %v5583_v37 = vadd.f32 %v5582_v26, %v5581_v46  ;;  %v5584_v21 = vpop.f32.mrb[58].mxu0  ;;  %v5557_v18 = vpop.f32.mrb[55].mxu1 }
 0x590   :  { %v5585_v57 = vpop.f32.mrb[59].mxu0  ;;  %v6709_v9 = vpop.eup %6708  ;;  %v4807_v18 = vadd.s32 8, %v7037_v5 }
 0x591   :  { %v7513_v39 = vadd.f32 %v5583_v37, %v5555_v34  ;;  %v4368_v8 = vmul.f32 %v6709_v9, %v6703_v33 }
 0x592   :  { %v4812_v41 = vmul.u32 10, %v4807_v18 }
 0x594   :  { %v4815_v63 = vadd.s32 %v4812_v41, %v4810_v43 }
 0x5e6   :  { %v4746_v52 = vpop.permute.xlu0 %4745 }
 0x5e7   :  { %v4758_v54 = vmul.f32 %v4746_v52, %v7509_v10 }
 0x5e9   :  { %v7520_v55 = vadd.f32 %v4758_v54, %v7504_v49 }
 0x5ea   :  { %v4751_v38 = vpop.permute.xlu1 %4750 }
 0x5eb   :  { %v4759_v58 = vmul.f32 %v4751_v38, %v7511_v45  ;;  %v4786_v19 = vsel %vm4785_vm3, %v7520_v55, -inf  ;;  %v4814_v38 = vadd.s32 %v4811_v30, %v4810_v43 }
 0x5ec   :  { %4787 = vmax.xlane.f32.xlu1 %v4786_v19 }
 0x5ed   :  { %v7526_v48 = vadd.f32 %v4759_v58, %v7504_v49 }
 0x5ef   :  { %v4789_v6 = vsel %vm4785_vm3, %v7526_v48, -inf }
 0x5f0   :  { %4790 = vmax.xlane.f32.xlu0 %v4789_v6 }
 0x5f2   :  { %v4756_v0 = vpop.permute.xlu1 %4755 }
 0x5f3   :  { %v4760_v59 = vmul.f32 %v4756_v0, %v7513_v39 }
 0x5f5   :  { %v4763_v53 = vadd.f32 %v4760_v59, %v7504_v49 }
 0x5f7   :  { %v4793_v29 = vsel %vm4792_vm5, %v4763_v53, -inf }
 0x5fd   :  { %4766 = vperm.xlu1 %5702, %v4366_v14  }
 0x601   :  { %4776 = vperm.xlu1 %5702, %v4370_v3  }
 0x605   :  { %4896 = vrot.lane.b32.xlu1 %v4893_v31, %s6890_s4 }
 0x606   :  { %4771 = vperm.xlu0 %5703, %v4368_v8  }
 0x629   :  { %4794 = vmax.xlane.f32.xlu1 %v4793_v29 }
 0x63a   :  { %4898 = vrot.lane.b32.xlu1 %v4895_v61, %s6890_s4 }
 0x63e   :  { %4929 = vrot.lane.b32.xlu1 %v4893_v31, %s6882_s15 }
 0x642   :  { %4931 = vrot.lane.b32.xlu1 %v4895_v61, %s6882_s15 }
 0x646   :  { %4900 = vrot.lane.b32.xlu1 %v4894_v11, %s6890_s4 }
 0x64a   :  { %4933 = vrot.lane.b32.xlu1 %v4894_v11, %s6882_s15  ;;  %s6891_s15 = smov 118  }
 0x679   :  { %v4788_v20 = vpop.xlane.xlu1 %4787 }
 0x67d   :  { %v4767_v32 = vpop.permute.xlu1 %4766  ;;  %v4791_v22 = vpop.xlane.xlu0 %4790 }
 0x67e   :  { %v4797_v46 = vmax.f32 %v4788_v20, %v4791_v22  ;;  %v4779_v57 = vmul.f32 %v4767_v32, %v7509_v10 }
 0x680   :  { %v4782_v40 = vadd.f32 %v4779_v57, %v7504_v49 }
 0x681   :  { %v4777_v12 = vpop.permute.xlu1 %4776 }
 0x682   :  { %v4781_v10 = vmul.f32 %v4777_v12, %v7513_v39 }
 0x684   :  { %v4784_v5 = vadd.f32 %v4781_v10, %v7504_v49 }
 0x685   :  { %v4897_v62 = vpop.permute.xlu1 %4896  ;;  %v4772_v26 = vpop.permute.xlu0 %4771 }
 0x686   :  { %v4780_v36 = vmul.f32 %v4772_v26, %v7511_v45  ;;  %v4905_v52 = vmul.f32 %v4897_v62, %v4782_v40 }
 0x688   :  { %v4783_v28 = vadd.f32 %v4780_v36, %v7504_v49  ;;  %v4909_v58 = vsel %vm4908_vm6, %v4905_v52, 0.0 }
 0x6b6   :  { %v4795_v2 = vpop.xlane.xlu1 %4794 }
 0x6b7   :  { %v4796_v34 = vsel %vm4267_vm2, %v4795_v2, -inf }
 0x6b8   :  { %v4798_v35 = vmax.f32 %v4797_v46, %v4796_v34 }
 0x6ba   :  { %v4799_v37 = vrot.slane %v4798_v35, 4  ;;  %v4899_v21 = vpop.permute.xlu1 %4898 }
 0x6bb   :  { %v4906_v45 = vmul.f32 %v4899_v21, %v4783_v28 }
 0x6bc   :  { %v4800_v25 = vmax.f32 %v4798_v35, %v4799_v37 }
 0x6bd   :  { %v4910_v19 = vsel %vm4908_vm6, %v4906_v45, 0.0 }
 0x6be   :  { %v4801_v56 = vrot.slane %v4800_v25, 2  ;;  %v4930_v44 = vpop.permute.xlu1 %4929  ;;  %v4911_v24 = vadd.f32 %v4910_v19, %v4909_v58 }
 0x6bf   :  { %v4938_v6 = vmul.f32 %v4930_v44, %v4782_v40 }
 0x6c0   :  { %v4802_v50 = vmax.f32 %v4800_v25, %v4801_v56 }
 0x6c2   :  { %v4803_v51 = vrot.slane %v4802_v50, 1  ;;  %v4932_v54 = vpop.permute.xlu1 %4931 }
 0x6c3   :  { %v4939_v60 = vmul.f32 %v4932_v54, %v4783_v28 }
 0x6c4   :  { %v4804_v4 = vmax.f32 %v4802_v50, %v4803_v51 }
 0x6c5   :  { %v4942_v47 = vsel %vm4908_vm6, %v4939_v60, 0.0 }
 0x6c6   :  { %v4901_v33 = vpop.permute.xlu1 %4900  ;;  %vm4818_vm8 = vcmp.ge.f32.partialorder %v7526_v48, %v4804_v4  ;;  %vm4817_vm9 = vcmp.ge.f32.partialorder %v7520_v55, %v4804_v4  ;;  %vm4819_vm10 = vcmp.ge.f32.partialorder %v4763_v53, %v4804_v4  ;;  %v4941_v55 = vsel %vm4908_vm6, %v4938_v6, 0.0 }
 0x6c7   :  { %v4907_v39 = vmul.f32 %v4901_v33, %v4784_v5  ;;  %v4821_v15 = vsel %vm4818_vm8, %v4815_v63, 1073741824  ;;  %v4820_v16 = vsel %vm4817_vm9, %v4814_v38, 1073741824  ;;  %v4822_v14 = vsel %vm4819_vm10, %v4816_v1, 1073741824 }
 0x6c8   :  { %v4838_v27 = vsel %vm4785_vm3, %v4821_v15, 2147483647  ;;  %v4823_v23 = vsel %vm4785_vm3, %v4820_v16, 2147483647  ;;  %v4853_v42 = vsel %vm4792_vm5, %v4822_v14, 2147483647  ;;  %v4943_v7 = vadd.f32 %v4942_v47, %v4941_v55 }
 0x6c9   :  { %v4913_v3 = vsel %vm4912_vm7, %v4907_v39, 0.0  ;;  %v4840_v9 = vshra.s32 %v4838_v27, 16  ;;  %v4825_v48 = vshra.s32 %v4823_v23, 16  ;;  %v4855_v29 = vshra.s32 %v4853_v42, 16 }
 0x6ca   :  { %v4914_v31 = vadd.f32 %v4913_v3, %v4911_v24  ;;  %v4934_v8 = vpop.permute.xlu1 %4933  ;;  %v4824_v57 = vand.u32 65535, %v4823_v23  ;;  %v4839_v36 = vand.u32 65535, %v4838_v27  ;;  %v4854_v43 = vand.u32 65535, %v4853_v42 }
 0x6cb   :  { %v4940_v0 = vmul.f32 %v4934_v8, %v4784_v5  ;;  %v4842_v59 = vcvt.s32.f32 %v4840_v9  ;;  %v4827_v53 = vcvt.s32.f32 %v4825_v48  ;;  %v4857_v32 = vcvt.s32.f32 %v4855_v29 }
 0x6cc   :  { %v4915_v11 = vrot.slane %v4914_v31, 4  ;;  %v4826_v56 = vcvt.s32.f32 %v4824_v57  ;;  %v4841_v44 = vcvt.s32.f32 %v4839_v36  ;;  %v4856_v30 = vcvt.s32.f32 %v4854_v43 }
 0x6cd   :  { %v4944_v61 = vsel %vm4912_vm7, %v4940_v0, 0.0  ;;  %4843 = vmin.xlane.f32.xlu0 %v4842_v59  ;;  %4828 = vmin.xlane.f32.xlu1 %v4827_v53  ;;  %vm4966_vm3 = vcmask 8192  }
 0x6ce   :  { %v4945_v20 = vadd.f32 %v4944_v61, %v4943_v7  ;;  %v4916_v12 = vadd.f32 %v4915_v11, %v4914_v31 }
 0x6d0   :  { %v4946_v62 = vrot.slane %v4945_v20, 4  ;;  %v4917_v46 = vrot.slane %v4916_v12, 2 }
 0x6d1   :  { %4858 = vmin.xlane.f32.xlu1 %v4857_v32 }
 0x6d2   :  { %v4947_v22 = vadd.f32 %v4946_v62, %v4945_v20  ;;  %v4918_v34 = vadd.f32 %v4917_v46, %v4916_v12 }
 0x6d4   :  { %v4948_v2 = vrot.slane %v4947_v22, 2  ;;  %v4919_v35 = vrot.slane %v4918_v34, 1 }
 0x6d6   :  { %v4949_v26 = vadd.f32 %v4948_v2, %v4947_v22  ;;  %v4920_v21 = vadd.f32 %v4919_v35, %v4918_v34 }
 0x6d8   :  { %v4950_v37 = vrot.slane %v4949_v26, 1 }
 0x6da   :  { %v4951_v18 = vadd.f32 %v4950_v37, %v4949_v26 }
 0x6e2   :  { %4922 = vrot.lane.b32.xlu1 %v4920_v21, %s6891_s15 }
 0x6e3   :  { %4953 = vrot.lane.b32.xlu0 %v4951_v18, %s6891_s15 }
 0x75a   :  { %v4829_v13 = vpop.xlane.xlu1 %4828  ;;  %v4844_v25 = vpop.xlane.xlu0 %4843 }
 0x75b   :  { %vm4830_vm11 = vcmp.eq.f32.partialorder %v4827_v53, %v4829_v13  ;;  %vm4845_vm12 = vcmp.eq.f32.partialorder %v4842_v59, %v4844_v25  ;;  %v4835_v51 = vcvt.f32.s32 %v4829_v13  ;;  %v4850_v54 = vcvt.f32.s32 %v4844_v25 }
 0x75c   :  { %v4831_v41 = vsel %vm4830_vm11, %v4826_v56, inf  ;;  %v4846_v40 = vsel %vm4845_vm12, %v4841_v44, inf }
 0x75d   :  { %4832 = vmin.xlane.f32.xlu1 %v4831_v41  ;;  %4847 = vmin.xlane.f32.xlu0 %v4846_v40  ;;  %v4836_v63 = vshll.u32 %v4835_v51, 16  ;;  %v4851_v4 = vshll.u32 %v4850_v54, 16 }
 0x75e   :  { %v4859_v28 = vpop.xlane.xlu1 %4858  ;;  %v4954_v50 = vpop.permute.xlu0 %4953 }
 0x75f   :  { %vm4860_vm13 = vcmp.eq.f32.partialorder %v4857_v32, %v4859_v28  ;;  %v4956_v45 = vsel %vm4925_vm14, %v4954_v50, 0.0  ;;  %v4865_v58 = vcvt.f32.s32 %v4859_v28 }
 0x760   :  { %v4861_v17 = vsel %vm4860_vm13, %v4856_v30, inf }
 0x761   :  { %4862 = vmin.xlane.f32.xlu1 %v4861_v17  ;;  %v4866_v39 = vshll.u32 %v4865_v58, 16 }
 0x762   :  { %v4923_v10 = vpop.permute.xlu1 %4922 }
 0x763   :  { %v4926_v52 = vsel %vm4925_vm14, %v4923_v10, 0.0 }
 0x764   :  { %4927 = vadd.xlane.f32.xlu0 %v4926_v52 }
 0x765   :  { %4957 = vadd.xlane.f32.xlu1 %v4956_v45 }
 0x77a   :  { %4962 = vrot.lane.b32.xlu0 %v7504_v49, %s6892_s29 }
 0x7ea   :  { %v4833_v38 = vpop.xlane.xlu1 %4832  ;;  %v4848_v1 = vpop.xlane.xlu0 %4847 }
 0x7eb   :  { %v4834_v19 = vcvt.f32.s32 %v4833_v38  ;;  %v4849_v60 = vcvt.f32.s32 %v4848_v1 }
 0x7ed   :  { %v4837_v5 = vadd.s32 %v4836_v63, %v4834_v19  ;;  %v4852_v6 = vadd.s32 %v4851_v4, %v4849_v60 }
 0x7ee   :  { %v4863_v33 = vpop.xlane.xlu1 %4862 }
 0x7ef   :  { %vm4869_vm15 = vcmp.lt.s32.totalorder %v4837_v5, %v4852_v6  ;;  %v4864_v15 = vcvt.f32.s32 %v4863_v33 }
 0x7f0   :  { %v4870_v16 = vsel %vm4869_vm15, %v4837_v5, %v4852_v6 }
 0x7f1   :  { %v4867_v14 = vadd.s32 %v4866_v39, %v4864_v15  ;;  %v4928_v24 = vpop.xlane.xlu0 %4927 }
 0x7f2   :  { %v4958_v27 = vpop.xlane.xlu1 %4957 }
 0x7f3   :  { %v4868_v49 = vsel %vm4267_vm2, %v4867_v14, 2147483647  ;;  %v4960_v42 = vsel %vm4959_vm0, %v4928_v24, %v4958_v27 }
 0x7f4   :  { %vm4871_vm1 = vcmp.lt.s32.totalorder %v4870_v16, %v4868_v49 }
 0x7f5   :  { %v4872_v23 = vsel %vm4871_vm1, %v4870_v16, %v4868_v49  ;;  %v4963_v47 = vpop.permute.xlu0 %4962 }
 0x7f6   :  { %v4873_v3 = vrot.slane %v4872_v23, 4  ;;  %v4965_v9 = vadd.f32 %v4963_v47, %v4960_v42 }
 0x7f8   :  { %vm4874_vm4 = vcmp.lt.s32.totalorder %v4872_v23, %v4873_v3  ;;  %4967 = vst.msk [vmem:[#allocation12] sm:$0x1] %vm4966_vm3, %v4965_v9 }
 0x7f9   :  { %v4875_v48 = vsel %vm4874_vm4, %v4872_v23, %v4873_v3 }
 0x7fa   :  { %6831 = shalt.err (!%p6828_p2)
}
 0x7fb   :  { %s6832_s11 = scalar_lea.hbm %s7593_s7, 16 }
 0x7fc   :  { %p6833_p3 = scmp.ne.s32.totalorder %s7593_s7, %s6832_s11  ;;  %p6836_p4 = scmp.lt.u32.totalorder %s6832_s11, %s7593_s7 }
 0x7fe   :  { %p6838_p5 = pnand %p6836_p4, %p6833_p3 }
 0x800   :  { %6841 = shalt.err (!%p6838_p5)
}
 0x801   :  { %4987 = dma.vmem_to_hbm [thread:$0]  %s4985_s0, 16, %s7593_s7, [#allocation13]   ;;  %v4876_v55 = vrot.slane %v4875_v48, 2  ;;  %vm4882_vm5 = vcmask 0  }
 0x802   :  { %s6894_s25 = smov [#allocation11]  }
 0x803   :  { %vm4877_vm2 = vcmp.lt.s32.totalorder %v4875_v48, %v4876_v55  ;;  %s4974_s27 = sshll.u32 %s6894_s25, 4  ;;  %s4975_s27 = int_to_ptr.vmem [resolvable:$true] %s4974_s27 }
 0x804   :  { %v4878_v31 = vsel %vm4877_vm2, %v4875_v48, %v4876_v55  ;;  %s6842_s17 = scalar_lea.vmem %s4975_s27, 16  ;;  %s6846_s5 = scalar_lea.vmem %s4975_s27, 32 }
 0x805   :  { %v4879_v8 = vrot.slane %v4878_v31, 1  ;;  %p6843_p6 = scmp.ne.s32.totalorder %s4975_s27, %s6842_s17  ;;  %p6847_p7 = scmp.lt.s32.totalorder %s4975_s27, %s4975_s27 }
 0x806   :  { %p6848_p8 = scmp.lt.s32.totalorder %s6846_s5, %s6842_s17 }
 0x807   :  { %vm4880_vm6 = vcmp.lt.s32.totalorder %v4878_v31, %v4879_v8 }
 0x808   :  { %v4881_v0 = vsel %vm4880_vm6, %v4878_v31, %v4879_v8  ;;  %p6849_p9 = por %p6848_p8, %p6847_p7 }
 0x809   :  { %4883 = vst.msk [vmem:[#allocation11] sm:$0x1] %vm4882_vm5, %v4881_v0 }
 0x80a   :  { %p6850_p10 = pnand %p6849_p9, %p6843_p6 }
 0x80c   :  { %6853 = shalt.err (!%p6850_p10)
}
 0x80d   :  { %s6854_s20 = scalar_lea.hbm %s7592_s6, 16 }
 0x80e   :  { %p6855_p11 = scmp.ne.s32.totalorder %s7592_s6, %s6854_s20  ;;  %p6858_p12 = scmp.lt.u32.totalorder %s6854_s20, %s7592_s6 }
 0x810   :  { %p6860_p13 = pnand %p6858_p12, %p6855_p11 }
 0x812   :  { %6863 = shalt.err (!%p6860_p13)
}
 0x813   :  { %4977 = dma.vmem_to_hbm [thread:$0]  %s4975_s27, 16, %s7592_s6, [#allocation4]  }
 0x814   :  { %6870 = dma.done.wait [#allocation4], 16  }
 0x815   :  { %6871 = vsyncadd [#allocation4], 4294967280 }
 0x816   :  { %6872 = dma.done.wait [#allocation13], 16  }
 0x817   :  { %6873 = vsyncadd [#allocation13], 4294967280 }
 0x818   :  { %4994 = vsyncpa [#allocation3], 1 }
 0x819   :  { %4995 = vsyncpa [#allocation6], 1 }
 0x81a   :  { %4996 = vsyncpa [#allocation9], 1 }
 0x81b   :  { %4997 = vsyncpa [#allocation4], 1 }
 0x81c   :  { %4998 = vsyncpa [#allocation13], 1 }

</bundles_post_ra>
